<compile_context>
chip_gen: v7x
topology: tpu7x:2x2x1
jax: 0.10.0
libtpu: 0.0.40
codegen_flags: <defaults>
</compile_context>

<pallas_src>
import functools

import numpy as np
import jax
import jax.numpy as jnp
from jax.experimental import pallas as pl
from jax.experimental.pallas import tpu as pltpu


def _round_up(n, m):
    return ((n + m - 1) // m) * m


def _leaky(v):
    return jnp.where(v >= 0, v, 0.1 * v)      # nn.LeakyReLU(0.1)


# ----------------------------------------------------------------------------
# Weight packing (done once at init) -> kernel-ready lane-dense bf16 layouts
# ----------------------------------------------------------------------------
def _pack_conv(w):
    """OIHW -> [Cout, kh*kw*Cin] bf16, K ordered (kh, kw, Cin) to match the
    tap stack built inside the kernel."""
    cout, cin, kh, kw = w.shape
    return (jnp.transpose(w, (2, 3, 1, 0))
            .reshape(kh * kw * cin, cout).T.astype(jnp.bfloat16))


def _pack_1x1(w):
    return w[:, :, 0, 0].astype(jnp.bfloat16)


def init_params(key, A, C, n_group, n_block):
    """Synthetic parameters packed into kernel layouts, returned as a FLAT
    list in exactly the order the fused kernel consumes them."""
    AngC, EpiC = C // 4, C // 2
    keys = iter(jax.random.split(key, 16 + 16 * n_group * n_block))

    def w(cout, cin, kh, kw):
        return 0.05 * jax.random.normal(next(keys), (cout, cin, kh, kw),
                                        jnp.float32)

    flat = [_pack_conv(w(C, 1, 3, 3))]                       # init conv
    for _ in range(n_group):
        for _ in range(n_block):
            flat += [
                _pack_conv(w(C, C, 3, 3)),                   # spa1 (dil=A)
                _pack_conv(w(C, C, 3, 3)),                   # spa2 (dil=A)
                _pack_conv(w(AngC, C, A, A)),                # ang1 (AxA, s=A)
                _pack_1x1(w(A * A * AngC, AngC, 1, 1)),      # ang2 1x1
                _pack_conv(w(EpiC, C, 1, A * A)),            # epi1 ([1,A^2])
                _pack_1x1(w(A * EpiC, EpiC, 1, 1)),          # epi2 1x1
                _pack_1x1(w(C, C + AngC + 2 * EpiC, 1, 1)),  # fuse 1x1
                _pack_conv(w(C, C, 3, 3)),                   # fuse 3x3 (dil=A)
            ]
        flat.append(_pack_conv(w(C, C, 3, 3)))               # group conv
    flat.append(_pack_conv(w(C, C, 3, 3)))                   # cascade conv
    flat.append(_pack_conv(w(C, C, 3, 3)))                   # upsample conv3x3
    flat.append(0.05 * jax.random.normal(next(keys), (C, 1), jnp.float32))
    flat.append(_pack_1x1(w(1, C, 1, 1)))                    # final 1x1
    return flat


# ----------------------------------------------------------------------------
# Fused whole-forward kernel
# ----------------------------------------------------------------------------
def build_kernel(A, C, n_group, n_block, Wp, Mpad):
    AngC, EpiC = C // 4, C // 2
    pad_w = A * (A - 1) // 2
    bf16 = jnp.bfloat16

    # Static tap offsets on the flattened per-image canvas (centered writes).
    spa_offs = tuple((i - 1) * A * Wp + (j - 1) * A
                     for i in range(3) for j in range(3))     # 3x3, dil=A, pad=A
    up_offs = tuple((i - 1) * Wp + (j - 1)
                    for i in range(3) for j in range(3))      # 3x3, pad=1
    ang_offs = tuple(i * Wp + j for i in range(A) for j in range(A))   # AxA s=A
    epih_offs = tuple(j - pad_w for j in range(A * A))        # [1,A^2] along W
    epiv_offs = tuple((j - pad_w) * Wp for j in range(A * A))  # along H

    n_inputs = 5 + n_group * (8 * n_block + 1) + 4

    def kernel(*refs):
        x_ref, valid_ref, rp_ref, cp_ref = refs[0:4]
        pos = 4
        w_init = refs[pos]; pos += 1
        groups = []
        for _ in range(n_group):
            blks = []
            for _ in range(n_block):
                blks.append(refs[pos:pos + 8]); pos += 8
            groups.append((blks, refs[pos])); pos += 1
        w_casc, w_up1, b_up1, w_up2 = refs[pos:pos + 4]; pos += 4
        out_ref = refs[pos]
        stack = refs[pos + 1]                      # bf16 tap-stack scratch

        valid = valid_ref[...]                     # [1, Mpad] 1/0 valid mask
        rp = rp_ref[...]                           # [A, Mpad] row-phase masks
        cp = cp_ref[...]                           # [A, Mpad] col-phase masks

        def conv_stacked(x, w_ref, offs):
            """x: f32 [Cin, Mpad] (halo-zero canvas).  Builds the bf16 tap
            stack in scratch and does ONE [Cout, K] x [K, Mpad] MXU dot."""
            cin = x.shape[0]
            for t, off in enumerate(offs):
                rows = x if off == 0 else pltpu.roll(x, (-off) % Mpad, axis=1)
                stack[t * cin:(t + 1) * cin, :] = rows.astype(bf16)
            k = len(offs) * cin
            return jnp.dot(w_ref[...], stack[0:k, :],
                           preferred_element_type=jnp.float32)

        def shuffle2d(m, n_out):
            """nn.PixelShuffle(A) of the over-computed [A*A*n_out, Mpad] map:
            per A x A phase, pick the channel and broadcast the cell anchor."""
            parts = [None] * n_out
            for py in range(A):
                for px in range(A):
                    d = py * Wp + px
                    sh = m if d == 0 else pltpu.roll(m, d, axis=1)
                    pm = rp[py:py + 1, :] * cp[px:px + 1, :]
                    for c in range(n_out):
                        ch = c * A * A + py * A + px
                        v = pm * sh[ch:ch + 1, :]
                        parts[c] = v if parts[c] is None else parts[c] + v
            return jnp.concatenate(parts, axis=0)

        def shuffle1d(m, n_out, along_rows):
            """PixelShuffle1D(A) of the over-computed [A*n_out, Mpad] map,
            along W (EPI-H, along_rows=False) or along H (EPI-V)."""
            phase = rp if along_rows else cp
            step = Wp if along_rows else 1
            parts = [None] * n_out
            for p in range(A):
                d = p * step
                sh = m if d == 0 else pltpu.roll(m, d, axis=1)
                pm = phase[p:p + 1, :]
                for c in range(n_out):
                    v = pm * sh[p * n_out + c:p * n_out + c + 1, :]
                    parts[c] = v if parts[c] is None else parts[c] + v
            return jnp.concatenate(parts, axis=0)

        # ---------------- forward ----------------
        x0 = x_ref[0]                                        # [1, Mpad] MacPI
        buf = conv_stacked(x0, w_init, spa_offs) * valid     # init conv
        casc_in = buf
        for blks, w_g in groups:                             # DisentgGroup(s)
            g_in = buf
            for (w_s1, w_s2, w_a1, w_a2, w_e1, w_e2, w_f1, w_f2) in blks:
                # spatial branch
                s = _leaky(conv_stacked(buf, w_s1, spa_offs)) * valid
                s = _leaky(conv_stacked(s, w_s2, spa_offs)) * valid
                # angular branch (over-complete strided conv + 1x1 + shuffle)
                am = _leaky(conv_stacked(buf, w_a1, ang_offs))
                am = _leaky(jnp.dot(w_a2[...], am.astype(bf16),
                                    preferred_element_type=jnp.float32))
                a = shuffle2d(am, AngC)
                # EPI branches (shared weights): horizontal then vertical
                eh = _leaky(conv_stacked(buf, w_e1, epih_offs))
                eh = _leaky(jnp.dot(w_e2[...], eh.astype(bf16),
                                    preferred_element_type=jnp.float32))
                eh = shuffle1d(eh, EpiC, along_rows=False)
                ev = _leaky(conv_stacked(buf, w_e1, epiv_offs))
                ev = _leaky(jnp.dot(w_e2[...], ev.astype(bf16),
                                    preferred_element_type=jnp.float32))
                ev = shuffle1d(ev, EpiC, along_rows=True)
                # fuse: virtual concat -> single K=(C+AngC+2*EpiC) dot
                stack[0:C, :] = s.astype(bf16)
                stack[C:C + AngC, :] = a.astype(bf16)
                stack[C + AngC:C + AngC + EpiC, :] = eh.astype(bf16)
                stack[C + AngC + EpiC:C + AngC + 2 * EpiC, :] = ev.astype(bf16)
                f = _leaky(jnp.dot(w_f1[...],
                                   stack[0:C + AngC + 2 * EpiC, :],
                                   preferred_element_type=jnp.float32))
                f = conv_stacked(f, w_f2, spa_offs) * valid
                buf = f + buf                                 # block residual
            buf = conv_stacked(buf, w_g, spa_offs) * valid + g_in
        buf = conv_stacked(buf, w_casc, spa_offs) * valid + casc_in
        # upsample head: conv3x3(+bias) + ReLU fused with the final 1x1
        h = jnp.maximum(conv_stacked(buf, w_up1, up_offs) + b_up1[...], 0.0)
        out = jnp.dot(w_up2[...], h.astype(bf16),
                      preferred_element_type=jnp.float32)
        out_ref[0] = out * valid

    return kernel, n_inputs


# ----------------------------------------------------------------------------
# Host-side glue: canvas construction, masks, pallas_call
# ----------------------------------------------------------------------------
def _build_masks(A, H, W, P, Hp, Wp, Mpad):
    """Valid-region mask and per-phase (row / col modulo A) masks, built with
    numpy at trace time (pure constants)."""
    valid = np.zeros((Hp, Wp), np.float32)
    valid[P:P + H, P:P + W] = 1.0
    yy, xx = np.meshgrid(np.arange(Hp) - P, np.arange(Wp) - P, indexing="ij")
    rp = np.stack([(valid * ((yy % A) == p)) for p in range(A)], 0)
    cp = np.stack([(valid * ((xx % A) == p)) for p in range(A)], 0)

    def flat(m):
        m = m.reshape(m.shape[:-2] + (Hp * Wp,)).astype(np.float32)
        return np.pad(m, [(0, 0)] * (m.ndim - 1) + [(0, Mpad - Hp * Wp)])

    return flat(valid[None]), flat(rp), flat(cp)


def _bcast_spec(a):
    r = a.ndim
    return pl.BlockSpec(a.shape, lambda n: (0,) * r)


@functools.partial(jax.jit, static_argnames=("A", "C", "n_group", "n_block"))
def model_forward(x_nchw, weights, A, C, n_group, n_block):
    N, a2, h, w = x_nchw.shape
    assert a2 == A * A
    H, W = h * A, w * A                          # MacPI spatial size
    P = max(A, A * (A - 1) // 2)                 # halo width (covers all taps)
    Hp, Wp = H + 2 * P, W + 2 * P
    Mimg = Hp * Wp
    Mpad = _round_up(Mimg, 128)

    # SAI2MacPI (nn.PixelShuffle(A)) + zero halo + lane padding -> [N,1,Mpad]
    x = x_nchw.reshape(N, 1, A, A, h, w)
    x = jnp.transpose(x, (0, 1, 4, 2, 5, 3)).reshape(N, 1, H, W)
    x = jnp.pad(x, ((0, 0), (0, 0), (P, P), (P, P))).reshape(N, 1, Mimg)
    x = jnp.pad(x, ((0, 0), (0, 0), (0, Mpad - Mimg)))

    valid, rp, cp = _build_masks(A, H, W, P, Hp, Wp, Mpad)
    kernel, n_inputs = build_kernel(A, C, n_group, n_block, Wp, Mpad)

    inputs = [x, jnp.asarray(valid), jnp.asarray(rp), jnp.asarray(cp)]
    inputs += list(weights)
    assert len(inputs) == n_inputs

    in_specs = [pl.BlockSpec((1, 1, Mpad), lambda n: (n, 0, 0))]
    in_specs += [_bcast_spec(a) for a in inputs[1:]]

    stack_rows = max(9 * C, A * A * C)
    out = pl.pallas_call(
        kernel,
        out_shape=jax.ShapeDtypeStruct((N, 1, Mpad), jnp.float32),
        grid=(N,),
        in_specs=in_specs,
        out_specs=pl.BlockSpec((1, 1, Mpad), lambda n: (n, 0, 0)),
        scratch_shapes=[pltpu.VMEM((stack_rows, Mpad), jnp.bfloat16)],
        compiler_params=pltpu.CompilerParams(
            dimension_semantics=("parallel",)),
    )(*inputs)

    out = out[:, :, :Mimg].reshape(N, 1, Hp, Wp)[:, :, P:P + H, P:P + W]
    return out


if __name__ == "__main__":
    # args: angRes_in=2, channels=8, n_group=1, n_block=1, scale_factor=2
    A, C, n_group, n_block = 2, 8, 1, 1
    key = jax.random.PRNGKey(0)
    pkey, xkey = jax.random.split(key)
    weights = init_params(pkey, A, C, n_group, n_block)

    # Model input (NCHW, like the PyTorch module): [b, angRes^2, h, w]
    x = jax.random.normal(xkey, (2, A * A, 8, 8), jnp.float32)

    out = jax.block_until_ready(
        model_forward(x, weights, A=A, C=C, n_group=n_group, n_block=n_block))

    # After SAI2MacPI the spatial size is 8*A = 16; final conv outputs 1 channel
    assert out.shape == (2, 1, 16, 16), out.shape
    assert bool(jnp.all(jnp.isfinite(out)))
    print("KERNEL_OK")
</pallas_src>

<mosaic_0001>
module attributes {stable_mosaic.version = 11 : i64} {
  func.func @kernel(%arg0: i32, %arg1: memref<1x1x512xf32, #tpu.memory_space<vmem>>, %arg2: memref<1x512xf32, #tpu.memory_space<vmem>>, %arg3: memref<2x512xf32, #tpu.memory_space<vmem>>, %arg4: memref<2x512xf32, #tpu.memory_space<vmem>>, %arg5: memref<8x9xbf16, #tpu.memory_space<vmem>>, %arg6: memref<8x72xbf16, #tpu.memory_space<vmem>>, %arg7: memref<8x72xbf16, #tpu.memory_space<vmem>>, %arg8: memref<2x32xbf16, #tpu.memory_space<vmem>>, %arg9: memref<8x2xbf16, #tpu.memory_space<vmem>>, %arg10: memref<4x32xbf16, #tpu.memory_space<vmem>>, %arg11: memref<8x4xbf16, #tpu.memory_space<vmem>>, %arg12: memref<8x18xbf16, #tpu.memory_space<vmem>>, %arg13: memref<8x72xbf16, #tpu.memory_space<vmem>>, %arg14: memref<8x72xbf16, #tpu.memory_space<vmem>>, %arg15: memref<8x72xbf16, #tpu.memory_space<vmem>>, %arg16: memref<8x72xbf16, #tpu.memory_space<vmem>>, %arg17: memref<8x1xf32, #tpu.memory_space<vmem>>, %arg18: memref<1x8xbf16, #tpu.memory_space<vmem>>, %arg19: memref<1x1x512xf32, #tpu.memory_space<vmem>>, %arg20: memref<72x512xbf16, #tpu.memory_space<vmem>>) attributes {dimension_semantics = [#tpu.dimension_semantics<parallel>], iteration_bounds = array<i64: 2>, scalar_prefetch = 0 : i64, scratch_operands = 1 : i64, tpu.core_type = #tpu.core_type<tc>, window_params = [{transform_indices = @transform_0, window_bounds = array<i64: 1, 1, 512>}, {pipeline_mode = #tpu.pipeline_mode<synchronous>, transform_indices = @transform_1, window_bounds = array<i64: 1, 512>}, {pipeline_mode = #tpu.pipeline_mode<synchronous>, transform_indices = @transform_2, window_bounds = array<i64: 2, 512>}, {pipeline_mode = #tpu.pipeline_mode<synchronous>, transform_indices = @transform_3, window_bounds = array<i64: 2, 512>}, {pipeline_mode = #tpu.pipeline_mode<synchronous>, transform_indices = @transform_4, window_bounds = array<i64: 8, 9>}, {pipeline_mode = #tpu.pipeline_mode<synchronous>, transform_indices = @transform_5, window_bounds = array<i64: 8, 72>}, {pipeline_mode = #tpu.pipeline_mode<synchronous>, transform_indices = @transform_6, window_bounds = array<i64: 8, 72>}, {pipeline_mode = #tpu.pipeline_mode<synchronous>, transform_indices = @transform_7, window_bounds = array<i64: 2, 32>}, {pipeline_mode = #tpu.pipeline_mode<synchronous>, transform_indices = @transform_8, window_bounds = array<i64: 8, 2>}, {pipeline_mode = #tpu.pipeline_mode<synchronous>, transform_indices = @transform_9, window_bounds = array<i64: 4, 32>}, {pipeline_mode = #tpu.pipeline_mode<synchronous>, transform_indices = @transform_10, window_bounds = array<i64: 8, 4>}, {pipeline_mode = #tpu.pipeline_mode<synchronous>, transform_indices = @transform_11, window_bounds = array<i64: 8, 18>}, {pipeline_mode = #tpu.pipeline_mode<synchronous>, transform_indices = @transform_12, window_bounds = array<i64: 8, 72>}, {pipeline_mode = #tpu.pipeline_mode<synchronous>, transform_indices = @transform_13, window_bounds = array<i64: 8, 72>}, {pipeline_mode = #tpu.pipeline_mode<synchronous>, transform_indices = @transform_14, window_bounds = array<i64: 8, 72>}, {pipeline_mode = #tpu.pipeline_mode<synchronous>, transform_indices = @transform_15, window_bounds = array<i64: 8, 72>}, {pipeline_mode = #tpu.pipeline_mode<synchronous>, transform_indices = @transform_16, window_bounds = array<i64: 8, 1>}, {pipeline_mode = #tpu.pipeline_mode<synchronous>, transform_indices = @transform_17, window_bounds = array<i64: 1, 8>}, {transform_indices = @transform_18, window_bounds = array<i64: 1, 1, 512>}]} {
    %c0 = arith.constant 0 : index
    %c0_0 = arith.constant 0 : index
    %0 = vector.load %arg2[%c0, %c0_0] : memref<1x512xf32, #tpu.memory_space<vmem>>, vector<1x512xf32>
    %c0_1 = arith.constant 0 : index
    %c0_2 = arith.constant 0 : index
    %1 = vector.load %arg3[%c0_1, %c0_2] : memref<2x512xf32, #tpu.memory_space<vmem>>, vector<2x512xf32>
    %c0_3 = arith.constant 0 : index
    %c0_4 = arith.constant 0 : index
    %2 = vector.load %arg4[%c0_3, %c0_4] : memref<2x512xf32, #tpu.memory_space<vmem>>, vector<2x512xf32>
    %c0_5 = arith.constant 0 : index
    %c0_6 = arith.constant 0 : index
    %c0_7 = arith.constant 0 : index
    %3 = vector.load %arg1[%c0_5, %c0_6, %c0_7] : memref<1x1x512xf32, #tpu.memory_space<vmem>>, vector<1x1x512xf32>
    %4 = vector.shape_cast %3 : vector<1x1x512xf32> to vector<1x512xf32>
    %c42_i32 = arith.constant 42 : i32
    %5 = tpu.dynamic_rotate %4 by %c42_i32 dim 1 : vector<1x512xf32>, i32 -> vector<1x512xf32>
    %6 = arith.truncf %5 : vector<1x512xf32> to vector<1x512xbf16>
    %c0_8 = arith.constant 0 : index
    %c0_9 = arith.constant 0 : index
    %7 = vector.load %arg20[%c0_8, %c0_9] : memref<72x512xbf16, #tpu.memory_space<vmem>>, vector<1x512xbf16>
    tpu.vector_store %arg20[%c0_8, %c0_9], %6 {strides = array<i32>} : memref<72x512xbf16, #tpu.memory_space<vmem>>, vector<1x512xbf16>,
    %c40_i32 = arith.constant 40 : i32
    %8 = tpu.dynamic_rotate %4 by %c40_i32 dim 1 : vector<1x512xf32>, i32 -> vector<1x512xf32>
    %9 = arith.truncf %8 : vector<1x512xf32> to vector<1x512xbf16>
    %c1 = arith.constant 1 : index
    %c0_10 = arith.constant 0 : index
    %10 = vector.load %arg20[%c1, %c0_10] : memref<72x512xbf16, #tpu.memory_space<vmem>>, vector<1x512xbf16>
    tpu.vector_store %arg20[%c1, %c0_10], %9 {strides = array<i32>} : memref<72x512xbf16, #tpu.memory_space<vmem>>, vector<1x512xbf16>,
    %c38_i32 = arith.constant 38 : i32
    %11 = tpu.dynamic_rotate %4 by %c38_i32 dim 1 : vector<1x512xf32>, i32 -> vector<1x512xf32>
    %12 = arith.truncf %11 : vector<1x512xf32> to vector<1x512xbf16>
    %c2 = arith.constant 2 : index
    %c0_11 = arith.constant 0 : index
    %13 = vector.load %arg20[%c2, %c0_11] : memref<72x512xbf16, #tpu.memory_space<vmem>>, vector<1x512xbf16>
    tpu.vector_store %arg20[%c2, %c0_11], %12 {strides = array<i32>} : memref<72x512xbf16, #tpu.memory_space<vmem>>, vector<1x512xbf16>,
    %c2_i32 = arith.constant 2 : i32
    %14 = tpu.dynamic_rotate %4 by %c2_i32 dim 1 : vector<1x512xf32>, i32 -> vector<1x512xf32>
    %15 = arith.truncf %14 : vector<1x512xf32> to vector<1x512xbf16>
    %c3 = arith.constant 3 : index
    %c0_12 = arith.constant 0 : index
    %16 = vector.load %arg20[%c3, %c0_12] : memref<72x512xbf16, #tpu.memory_space<vmem>>, vector<1x512xbf16>
    tpu.vector_store %arg20[%c3, %c0_12], %15 {strides = array<i32>} : memref<72x512xbf16, #tpu.memory_space<vmem>>, vector<1x512xbf16>,
    %17 = arith.truncf %4 : vector<1x512xf32> to vector<1x512xbf16>
    %c4 = arith.constant 4 : index
    %c0_13 = arith.constant 0 : index
    %18 = vector.load %arg20[%c4, %c0_13] : memref<72x512xbf16, #tpu.memory_space<vmem>>, vector<1x512xbf16>
    tpu.vector_store %arg20[%c4, %c0_13], %17 {strides = array<i32>} : memref<72x512xbf16, #tpu.memory_space<vmem>>, vector<1x512xbf16>,
    %c510_i32 = arith.constant 510 : i32
    %19 = tpu.dynamic_rotate %4 by %c510_i32 dim 1 : vector<1x512xf32>, i32 -> vector<1x512xf32>
    %20 = arith.truncf %19 : vector<1x512xf32> to vector<1x512xbf16>
    %c5 = arith.constant 5 : index
    %c0_14 = arith.constant 0 : index
    %21 = vector.load %arg20[%c5, %c0_14] : memref<72x512xbf16, #tpu.memory_space<vmem>>, vector<1x512xbf16>
    tpu.vector_store %arg20[%c5, %c0_14], %20 {strides = array<i32>} : memref<72x512xbf16, #tpu.memory_space<vmem>>, vector<1x512xbf16>,
    %c474_i32 = arith.constant 474 : i32
    %22 = tpu.dynamic_rotate %4 by %c474_i32 dim 1 : vector<1x512xf32>, i32 -> vector<1x512xf32>
    %23 = arith.truncf %22 : vector<1x512xf32> to vector<1x512xbf16>
    %c6 = arith.constant 6 : index
    %c0_15 = arith.constant 0 : index
    %24 = vector.load %arg20[%c6, %c0_15] : memref<72x512xbf16, #tpu.memory_space<vmem>>, vector<1x512xbf16>
    tpu.vector_store %arg20[%c6, %c0_15], %23 {strides = array<i32>} : memref<72x512xbf16, #tpu.memory_space<vmem>>, vector<1x512xbf16>,
    %c472_i32 = arith.constant 472 : i32
    %25 = tpu.dynamic_rotate %4 by %c472_i32 dim 1 : vector<1x512xf32>, i32 -> vector<1x512xf32>
    %26 = arith.truncf %25 : vector<1x512xf32> to vector<1x512xbf16>
    %c7 = arith.constant 7 : index
    %c0_16 = arith.constant 0 : index
    %27 = vector.load %arg20[%c7, %c0_16] : memref<72x512xbf16, #tpu.memory_space<vmem>>, vector<1x512xbf16>
    tpu.vector_store %arg20[%c7, %c0_16], %26 {strides = array<i32>} : memref<72x512xbf16, #tpu.memory_space<vmem>>, vector<1x512xbf16>,
    %c470_i32 = arith.constant 470 : i32
    %28 = tpu.dynamic_rotate %4 by %c470_i32 dim 1 : vector<1x512xf32>, i32 -> vector<1x512xf32>
    %29 = arith.truncf %28 : vector<1x512xf32> to vector<1x512xbf16>
    %c8 = arith.constant 8 : index
    %c0_17 = arith.constant 0 : index
    %30 = vector.load %arg20[%c8, %c0_17] : memref<72x512xbf16, #tpu.memory_space<vmem>>, vector<1x512xbf16>
    tpu.vector_store %arg20[%c8, %c0_17], %29 {strides = array<i32>} : memref<72x512xbf16, #tpu.memory_space<vmem>>, vector<1x512xbf16>,
    %c0_18 = arith.constant 0 : index
    %c0_19 = arith.constant 0 : index
    %31 = vector.load %arg5[%c0_18, %c0_19] : memref<8x9xbf16, #tpu.memory_space<vmem>>, vector<8x9xbf16>
    %c0_20 = arith.constant 0 : index
    %c0_21 = arith.constant 0 : index
    %32 = vector.load %arg20[%c0_20, %c0_21] : memref<72x512xbf16, #tpu.memory_space<vmem>>, vector<9x512xbf16>
    %cst = arith.constant dense<0.000000e+00> : vector<8x512xf32>
    %33 = tpu.matmul %31, %32, %cst {dimension_numbers = #tpu.dot_dimension_numbers<[1], [0], [0], [1], [0, 0, 1, 1], [], []>} : vector<8x9xbf16>, vector<9x512xbf16>, vector<8x512xf32> -> vector<8x512xf32>
    %34 = vector.broadcast %0 : vector<1x512xf32> to vector<8x512xf32>
    %35 = arith.mulf %33, %34 : vector<8x512xf32>
    %c42_i32_22 = arith.constant 42 : i32
    %36 = tpu.dynamic_rotate %35 by %c42_i32_22 dim 1 : vector<8x512xf32>, i32 -> vector<8x512xf32>
    %37 = arith.truncf %36 : vector<8x512xf32> to vector<8x512xbf16>
    %c0_23 = arith.constant 0 : index
    %c0_24 = arith.constant 0 : index
    %38 = vector.load %arg20[%c0_23, %c0_24] : memref<72x512xbf16, #tpu.memory_space<vmem>>, vector<8x512xbf16>
    tpu.vector_store %arg20[%c0_23, %c0_24], %37 {strides = array<i32>} : memref<72x512xbf16, #tpu.memory_space<vmem>>, vector<8x512xbf16>,
    %c40_i32_25 = arith.constant 40 : i32
    %39 = tpu.dynamic_rotate %35 by %c40_i32_25 dim 1 : vector<8x512xf32>, i32 -> vector<8x512xf32>
    %40 = arith.truncf %39 : vector<8x512xf32> to vector<8x512xbf16>
    %c8_26 = arith.constant 8 : index
    %c0_27 = arith.constant 0 : index
    %41 = vector.load %arg20[%c8_26, %c0_27] : memref<72x512xbf16, #tpu.memory_space<vmem>>, vector<8x512xbf16>
    tpu.vector_store %arg20[%c8_26, %c0_27], %40 {strides = array<i32>} : memref<72x512xbf16, #tpu.memory_space<vmem>>, vector<8x512xbf16>,
    %c38_i32_28 = arith.constant 38 : i32
    %42 = tpu.dynamic_rotate %35 by %c38_i32_28 dim 1 : vector<8x512xf32>, i32 -> vector<8x512xf32>
    %43 = arith.truncf %42 : vector<8x512xf32> to vector<8x512xbf16>
    %c16 = arith.constant 16 : index
    %c0_29 = arith.constant 0 : index
    %44 = vector.load %arg20[%c16, %c0_29] : memref<72x512xbf16, #tpu.memory_space<vmem>>, vector<8x512xbf16>
    tpu.vector_store %arg20[%c16, %c0_29], %43 {strides = array<i32>} : memref<72x512xbf16, #tpu.memory_space<vmem>>, vector<8x512xbf16>,
    %c2_i32_30 = arith.constant 2 : i32
    %45 = tpu.dynamic_rotate %35 by %c2_i32_30 dim 1 : vector<8x512xf32>, i32 -> vector<8x512xf32>
    %46 = arith.truncf %45 : vector<8x512xf32> to vector<8x512xbf16>
    %c24 = arith.constant 24 : index
    %c0_31 = arith.constant 0 : index
    %47 = vector.load %arg20[%c24, %c0_31] : memref<72x512xbf16, #tpu.memory_space<vmem>>, vector<8x512xbf16>
    tpu.vector_store %arg20[%c24, %c0_31], %46 {strides = array<i32>} : memref<72x512xbf16, #tpu.memory_space<vmem>>, vector<8x512xbf16>,
    %48 = arith.truncf %35 : vector<8x512xf32> to vector<8x512xbf16>
    %c32 = arith.constant 32 : index
    %c0_32 = arith.constant 0 : index
    %49 = vector.load %arg20[%c32, %c0_32] : memref<72x512xbf16, #tpu.memory_space<vmem>>, vector<8x512xbf16>
    tpu.vector_store %arg20[%c32, %c0_32], %48 {strides = array<i32>} : memref<72x512xbf16, #tpu.memory_space<vmem>>, vector<8x512xbf16>,
    %c510_i32_33 = arith.constant 510 : i32
    %50 = tpu.dynamic_rotate %35 by %c510_i32_33 dim 1 : vector<8x512xf32>, i32 -> vector<8x512xf32>
    %51 = arith.truncf %50 : vector<8x512xf32> to vector<8x512xbf16>
    %c40 = arith.constant 40 : index
    %c0_34 = arith.constant 0 : index
    %52 = vector.load %arg20[%c40, %c0_34] : memref<72x512xbf16, #tpu.memory_space<vmem>>, vector<8x512xbf16>
    tpu.vector_store %arg20[%c40, %c0_34], %51 {strides = array<i32>} : memref<72x512xbf16, #tpu.memory_space<vmem>>, vector<8x512xbf16>,
    %c474_i32_35 = arith.constant 474 : i32
    %53 = tpu.dynamic_rotate %35 by %c474_i32_35 dim 1 : vector<8x512xf32>, i32 -> vector<8x512xf32>
    %54 = arith.truncf %53 : vector<8x512xf32> to vector<8x512xbf16>
    %c48 = arith.constant 48 : index
    %c0_36 = arith.constant 0 : index
    %55 = vector.load %arg20[%c48, %c0_36] : memref<72x512xbf16, #tpu.memory_space<vmem>>, vector<8x512xbf16>
    tpu.vector_store %arg20[%c48, %c0_36], %54 {strides = array<i32>} : memref<72x512xbf16, #tpu.memory_space<vmem>>, vector<8x512xbf16>,
    %c472_i32_37 = arith.constant 472 : i32
    %56 = tpu.dynamic_rotate %35 by %c472_i32_37 dim 1 : vector<8x512xf32>, i32 -> vector<8x512xf32>
    %57 = arith.truncf %56 : vector<8x512xf32> to vector<8x512xbf16>
    %c56 = arith.constant 56 : index
    %c0_38 = arith.constant 0 : index
    %58 = vector.load %arg20[%c56, %c0_38] : memref<72x512xbf16, #tpu.memory_space<vmem>>, vector<8x512xbf16>
    tpu.vector_store %arg20[%c56, %c0_38], %57 {strides = array<i32>} : memref<72x512xbf16, #tpu.memory_space<vmem>>, vector<8x512xbf16>,
    %c470_i32_39 = arith.constant 470 : i32
    %59 = tpu.dynamic_rotate %35 by %c470_i32_39 dim 1 : vector<8x512xf32>, i32 -> vector<8x512xf32>
    %60 = arith.truncf %59 : vector<8x512xf32> to vector<8x512xbf16>
    %c64 = arith.constant 64 : index
    %c0_40 = arith.constant 0 : index
    %61 = vector.load %arg20[%c64, %c0_40] : memref<72x512xbf16, #tpu.memory_space<vmem>>, vector<8x512xbf16>
    tpu.vector_store %arg20[%c64, %c0_40], %60 {strides = array<i32>} : memref<72x512xbf16, #tpu.memory_space<vmem>>, vector<8x512xbf16>,
    %c0_41 = arith.constant 0 : index
    %c0_42 = arith.constant 0 : index
    %62 = vector.load %arg6[%c0_41, %c0_42] : memref<8x72xbf16, #tpu.memory_space<vmem>>, vector<8x72xbf16>
    %c0_43 = arith.constant 0 : index
    %c0_44 = arith.constant 0 : index
    %63 = vector.load %arg20[%c0_43, %c0_44] : memref<72x512xbf16, #tpu.memory_space<vmem>>, vector<72x512xbf16>
    %cst_45 = arith.constant dense<0.000000e+00> : vector<8x512xf32>
    %64 = tpu.matmul %62, %63, %cst_45 {dimension_numbers = #tpu.dot_dimension_numbers<[1], [0], [0], [1], [0, 0, 1, 1], [], []>} : vector<8x72xbf16>, vector<72x512xbf16>, vector<8x512xf32> -> vector<8x512xf32>
    %cst_46 = arith.constant 0.000000e+00 : f32
    %65 = vector.broadcast %cst_46 : f32 to vector<8x512xf32>
    %66 = arith.cmpf oge, %64, %65 : vector<8x512xf32>
    %cst_47 = arith.constant 1.000000e-01 : f32
    %67 = vector.broadcast %cst_47 : f32 to vector<8x512xf32>
    %68 = arith.mulf %67, %64 : vector<8x512xf32>
    %69 = arith.select %66, %64, %68 : vector<8x512xi1>, vector<8x512xf32>
    %70 = vector.broadcast %0 : vector<1x512xf32> to vector<8x512xf32>
    %71 = arith.mulf %69, %70 : vector<8x512xf32>
    %c42_i32_48 = arith.constant 42 : i32
    %72 = tpu.dynamic_rotate %71 by %c42_i32_48 dim 1 : vector<8x512xf32>, i32 -> vector<8x512xf32>
    %73 = arith.truncf %72 : vector<8x512xf32> to vector<8x512xbf16>
    %c0_49 = arith.constant 0 : index
    %c0_50 = arith.constant 0 : index
    %74 = vector.load %arg20[%c0_49, %c0_50] : memref<72x512xbf16, #tpu.memory_space<vmem>>, vector<8x512xbf16>
    tpu.vector_store %arg20[%c0_49, %c0_50], %73 {strides = array<i32>} : memref<72x512xbf16, #tpu.memory_space<vmem>>, vector<8x512xbf16>,
    %c40_i32_51 = arith.constant 40 : i32
    %75 = tpu.dynamic_rotate %71 by %c40_i32_51 dim 1 : vector<8x512xf32>, i32 -> vector<8x512xf32>
    %76 = arith.truncf %75 : vector<8x512xf32> to vector<8x512xbf16>
    %c8_52 = arith.constant 8 : index
    %c0_53 = arith.constant 0 : index
    %77 = vector.load %arg20[%c8_52, %c0_53] : memref<72x512xbf16, #tpu.memory_space<vmem>>, vector<8x512xbf16>
    tpu.vector_store %arg20[%c8_52, %c0_53], %76 {strides = array<i32>} : memref<72x512xbf16, #tpu.memory_space<vmem>>, vector<8x512xbf16>,
    %c38_i32_54 = arith.constant 38 : i32
    %78 = tpu.dynamic_rotate %71 by %c38_i32_54 dim 1 : vector<8x512xf32>, i32 -> vector<8x512xf32>
    %79 = arith.truncf %78 : vector<8x512xf32> to vector<8x512xbf16>
    %c16_55 = arith.constant 16 : index
    %c0_56 = arith.constant 0 : index
    %80 = vector.load %arg20[%c16_55, %c0_56] : memref<72x512xbf16, #tpu.memory_space<vmem>>, vector<8x512xbf16>
    tpu.vector_store %arg20[%c16_55, %c0_56], %79 {strides = array<i32>} : memref<72x512xbf16, #tpu.memory_space<vmem>>, vector<8x512xbf16>,
    %c2_i32_57 = arith.constant 2 : i32
    %81 = tpu.dynamic_rotate %71 by %c2_i32_57 dim 1 : vector<8x512xf32>, i32 -> vector<8x512xf32>
    %82 = arith.truncf %81 : vector<8x512xf32> to vector<8x512xbf16>
    %c24_58 = arith.constant 24 : index
    %c0_59 = arith.constant 0 : index
    %83 = vector.load %arg20[%c24_58, %c0_59] : memref<72x512xbf16, #tpu.memory_space<vmem>>, vector<8x512xbf16>
    tpu.vector_store %arg20[%c24_58, %c0_59], %82 {strides = array<i32>} : memref<72x512xbf16, #tpu.memory_space<vmem>>, vector<8x512xbf16>,
    %84 = arith.truncf %71 : vector<8x512xf32> to vector<8x512xbf16>
    %c32_60 = arith.constant 32 : index
    %c0_61 = arith.constant 0 : index
    %85 = vector.load %arg20[%c32_60, %c0_61] : memref<72x512xbf16, #tpu.memory_space<vmem>>, vector<8x512xbf16>
    tpu.vector_store %arg20[%c32_60, %c0_61], %84 {strides = array<i32>} : memref<72x512xbf16, #tpu.memory_space<vmem>>, vector<8x512xbf16>,
    %c510_i32_62 = arith.constant 510 : i32
    %86 = tpu.dynamic_rotate %71 by %c510_i32_62 dim 1 : vector<8x512xf32>, i32 -> vector<8x512xf32>
    %87 = arith.truncf %86 : vector<8x512xf32> to vector<8x512xbf16>
    %c40_63 = arith.constant 40 : index
    %c0_64 = arith.constant 0 : index
    %88 = vector.load %arg20[%c40_63, %c0_64] : memref<72x512xbf16, #tpu.memory_space<vmem>>, vector<8x512xbf16>
    tpu.vector_store %arg20[%c40_63, %c0_64], %87 {strides = array<i32>} : memref<72x512xbf16, #tpu.memory_space<vmem>>, vector<8x512xbf16>,
    %c474_i32_65 = arith.constant 474 : i32
    %89 = tpu.dynamic_rotate %71 by %c474_i32_65 dim 1 : vector<8x512xf32>, i32 -> vector<8x512xf32>
    %90 = arith.truncf %89 : vector<8x512xf32> to vector<8x512xbf16>
    %c48_66 = arith.constant 48 : index
    %c0_67 = arith.constant 0 : index
    %91 = vector.load %arg20[%c48_66, %c0_67] : memref<72x512xbf16, #tpu.memory_space<vmem>>, vector<8x512xbf16>
    tpu.vector_store %arg20[%c48_66, %c0_67], %90 {strides = array<i32>} : memref<72x512xbf16, #tpu.memory_space<vmem>>, vector<8x512xbf16>,
    %c472_i32_68 = arith.constant 472 : i32
    %92 = tpu.dynamic_rotate %71 by %c472_i32_68 dim 1 : vector<8x512xf32>, i32 -> vector<8x512xf32>
    %93 = arith.truncf %92 : vector<8x512xf32> to vector<8x512xbf16>
    %c56_69 = arith.constant 56 : index
    %c0_70 = arith.constant 0 : index
    %94 = vector.load %arg20[%c56_69, %c0_70] : memref<72x512xbf16, #tpu.memory_space<vmem>>, vector<8x512xbf16>
    tpu.vector_store %arg20[%c56_69, %c0_70], %93 {strides = array<i32>} : memref<72x512xbf16, #tpu.memory_space<vmem>>, vector<8x512xbf16>,
    %c470_i32_71 = arith.constant 470 : i32
    %95 = tpu.dynamic_rotate %71 by %c470_i32_71 dim 1 : vector<8x512xf32>, i32 -> vector<8x512xf32>
    %96 = arith.truncf %95 : vector<8x512xf32> to vector<8x512xbf16>
    %c64_72 = arith.constant 64 : index
    %c0_73 = arith.constant 0 : index
    %97 = vector.load %arg20[%c64_72, %c0_73] : memref<72x512xbf16, #tpu.memory_space<vmem>>, vector<8x512xbf16>
    tpu.vector_store %arg20[%c64_72, %c0_73], %96 {strides = array<i32>} : memref<72x512xbf16, #tpu.memory_space<vmem>>, vector<8x512xbf16>,
    %c0_74 = arith.constant 0 : index
    %c0_75 = arith.constant 0 : index
    %98 = vector.load %arg7[%c0_74, %c0_75] : memref<8x72xbf16, #tpu.memory_space<vmem>>, vector<8x72xbf16>
    %c0_76 = arith.constant 0 : index
    %c0_77 = arith.constant 0 : index
    %99 = vector.load %arg20[%c0_76, %c0_77] : memref<72x512xbf16, #tpu.memory_space<vmem>>, vector<72x512xbf16>
    %cst_78 = arith.constant dense<0.000000e+00> : vector<8x512xf32>
    %100 = tpu.matmul %98, %99, %cst_78 {dimension_numbers = #tpu.dot_dimension_numbers<[1], [0], [0], [1], [0, 0, 1, 1], [], []>} : vector<8x72xbf16>, vector<72x512xbf16>, vector<8x512xf32> -> vector<8x512xf32>
    %cst_79 = arith.constant 0.000000e+00 : f32
    %101 = vector.broadcast %cst_79 : f32 to vector<8x512xf32>
    %102 = arith.cmpf oge, %100, %101 : vector<8x512xf32>
    %cst_80 = arith.constant 1.000000e-01 : f32
    %103 = vector.broadcast %cst_80 : f32 to vector<8x512xf32>
    %104 = arith.mulf %103, %100 : vector<8x512xf32>
    %105 = arith.select %102, %100, %104 : vector<8x512xi1>, vector<8x512xf32>
    %106 = vector.broadcast %0 : vector<1x512xf32> to vector<8x512xf32>
    %107 = arith.mulf %105, %106 : vector<8x512xf32>
    %108 = arith.truncf %35 : vector<8x512xf32> to vector<8x512xbf16>
    %c0_81 = arith.constant 0 : index
    %c0_82 = arith.constant 0 : index
    %109 = vector.load %arg20[%c0_81, %c0_82] : memref<72x512xbf16, #tpu.memory_space<vmem>>, vector<8x512xbf16>
    tpu.vector_store %arg20[%c0_81, %c0_82], %108 {strides = array<i32>} : memref<72x512xbf16, #tpu.memory_space<vmem>>, vector<8x512xbf16>,
    %c511_i32 = arith.constant 511 : i32
    %110 = tpu.dynamic_rotate %35 by %c511_i32 dim 1 : vector<8x512xf32>, i32 -> vector<8x512xf32>
    %111 = arith.truncf %110 : vector<8x512xf32> to vector<8x512xbf16>
    %c8_83 = arith.constant 8 : index
    %c0_84 = arith.constant 0 : index
    %112 = vector.load %arg20[%c8_83, %c0_84] : memref<72x512xbf16, #tpu.memory_space<vmem>>, vector<8x512xbf16>
    tpu.vector_store %arg20[%c8_83, %c0_84], %111 {strides = array<i32>} : memref<72x512xbf16, #tpu.memory_space<vmem>>, vector<8x512xbf16>,
    %c492_i32 = arith.constant 492 : i32
    %113 = tpu.dynamic_rotate %35 by %c492_i32 dim 1 : vector<8x512xf32>, i32 -> vector<8x512xf32>
    %114 = arith.truncf %113 : vector<8x512xf32> to vector<8x512xbf16>
    %c16_85 = arith.constant 16 : index
    %c0_86 = arith.constant 0 : index
    %115 = vector.load %arg20[%c16_85, %c0_86] : memref<72x512xbf16, #tpu.memory_space<vmem>>, vector<8x512xbf16>
    tpu.vector_store %arg20[%c16_85, %c0_86], %114 {strides = array<i32>} : memref<72x512xbf16, #tpu.memory_space<vmem>>, vector<8x512xbf16>,
    %c491_i32 = arith.constant 491 : i32
    %116 = tpu.dynamic_rotate %35 by %c491_i32 dim 1 : vector<8x512xf32>, i32 -> vector<8x512xf32>
    %117 = arith.truncf %116 : vector<8x512xf32> to vector<8x512xbf16>
    %c24_87 = arith.constant 24 : index
    %c0_88 = arith.constant 0 : index
    %118 = vector.load %arg20[%c24_87, %c0_88] : memref<72x512xbf16, #tpu.memory_space<vmem>>, vector<8x512xbf16>
    tpu.vector_store %arg20[%c24_87, %c0_88], %117 {strides = array<i32>} : memref<72x512xbf16, #tpu.memory_space<vmem>>, vector<8x512xbf16>,
    %c0_89 = arith.constant 0 : index
    %c0_90 = arith.constant 0 : index
    %119 = vector.load %arg8[%c0_89, %c0_90] : memref<2x32xbf16, #tpu.memory_space<vmem>>, vector<2x32xbf16>
    %c0_91 = arith.constant 0 : index
    %c0_92 = arith.constant 0 : index
    %120 = vector.load %arg20[%c0_91, %c0_92] : memref<72x512xbf16, #tpu.memory_space<vmem>>, vector<32x512xbf16>
    %cst_93 = arith.constant dense<0.000000e+00> : vector<2x512xf32>
    %121 = tpu.matmul %119, %120, %cst_93 {dimension_numbers = #tpu.dot_dimension_numbers<[1], [0], [0], [1], [0, 0, 1, 1], [], []>} : vector<2x32xbf16>, vector<32x512xbf16>, vector<2x512xf32> -> vector<2x512xf32>
    %cst_94 = arith.constant 0.000000e+00 : f32
    %122 = vector.broadcast %cst_94 : f32 to vector<2x512xf32>
    %123 = arith.cmpf oge, %121, %122 : vector<2x512xf32>
    %cst_95 = arith.constant 1.000000e-01 : f32
    %124 = vector.broadcast %cst_95 : f32 to vector<2x512xf32>
    %125 = arith.mulf %124, %121 : vector<2x512xf32>
    %126 = arith.select %123, %121, %125 : vector<2x512xi1>, vector<2x512xf32>
    %c0_96 = arith.constant 0 : index
    %c0_97 = arith.constant 0 : index
    %127 = vector.load %arg9[%c0_96, %c0_97] : memref<8x2xbf16, #tpu.memory_space<vmem>>, vector<8x2xbf16>
    %128 = arith.truncf %126 : vector<2x512xf32> to vector<2x512xbf16>
    %cst_98 = arith.constant dense<0.000000e+00> : vector<8x512xf32>
    %129 = tpu.matmul %127, %128, %cst_98 {dimension_numbers = #tpu.dot_dimension_numbers<[1], [0], [0], [1], [0, 0, 1, 1], [], []>} : vector<8x2xbf16>, vector<2x512xbf16>, vector<8x512xf32> -> vector<8x512xf32>
    %cst_99 = arith.constant 0.000000e+00 : f32
    %130 = vector.broadcast %cst_99 : f32 to vector<8x512xf32>
    %131 = arith.cmpf oge, %129, %130 : vector<8x512xf32>
    %cst_100 = arith.constant 1.000000e-01 : f32
    %132 = vector.broadcast %cst_100 : f32 to vector<8x512xf32>
    %133 = arith.mulf %132, %129 : vector<8x512xf32>
    %134 = arith.select %131, %129, %133 : vector<8x512xi1>, vector<8x512xf32>
    %135 = vector.extract_strided_slice %1 {offsets = [0, 0], sizes = [1, 512], strides = [1, 1]} : vector<2x512xf32> to vector<1x512xf32>
    %136 = vector.extract_strided_slice %2 {offsets = [0, 0], sizes = [1, 512], strides = [1, 1]} : vector<2x512xf32> to vector<1x512xf32>
    %137 = arith.mulf %135, %136 : vector<1x512xf32>
    %138 = vector.extract_strided_slice %134 {offsets = [0, 0], sizes = [1, 512], strides = [1, 1]} : vector<8x512xf32> to vector<1x512xf32>
    %139 = arith.mulf %137, %138 : vector<1x512xf32>
    %140 = vector.extract_strided_slice %134 {offsets = [4, 0], sizes = [1, 512], strides = [1, 1]} : vector<8x512xf32> to vector<1x512xf32>
    %141 = arith.mulf %137, %140 : vector<1x512xf32>
    %c1_i32 = arith.constant 1 : i32
    %142 = tpu.dynamic_rotate %134 by %c1_i32 dim 1 : vector<8x512xf32>, i32 -> vector<8x512xf32>
    %143 = vector.extract_strided_slice %1 {offsets = [0, 0], sizes = [1, 512], strides = [1, 1]} : vector<2x512xf32> to vector<1x512xf32>
    %144 = vector.extract_strided_slice %2 {offsets = [1, 0], sizes = [1, 512], strides = [1, 1]} : vector<2x512xf32> to vector<1x512xf32>
    %145 = arith.mulf %143, %144 : vector<1x512xf32>
    %146 = vector.extract_strided_slice %142 {offsets = [1, 0], sizes = [1, 512], strides = [1, 1]} : vector<8x512xf32> to vector<1x512xf32>
    %147 = arith.mulf %145, %146 : vector<1x512xf32>
    %148 = arith.addf %139, %147 : vector<1x512xf32>
    %149 = vector.extract_strided_slice %142 {offsets = [5, 0], sizes = [1, 512], strides = [1, 1]} : vector<8x512xf32> to vector<1x512xf32>
    %150 = arith.mulf %145, %149 : vector<1x512xf32>
    %151 = arith.addf %141, %150 : vector<1x512xf32>
    %c20_i32 = arith.constant 20 : i32
    %152 = tpu.dynamic_rotate %134 by %c20_i32 dim 1 : vector<8x512xf32>, i32 -> vector<8x512xf32>
    %153 = vector.extract_strided_slice %1 {offsets = [1, 0], sizes = [1, 512], strides = [1, 1]} : vector<2x512xf32> to vector<1x512xf32>
    %154 = vector.extract_strided_slice %2 {offsets = [0, 0], sizes = [1, 512], strides = [1, 1]} : vector<2x512xf32> to vector<1x512xf32>
    %155 = arith.mulf %153, %154 : vector<1x512xf32>
    %156 = vector.extract_strided_slice %152 {offsets = [2, 0], sizes = [1, 512], strides = [1, 1]} : vector<8x512xf32> to vector<1x512xf32>
    %157 = arith.mulf %155, %156 : vector<1x512xf32>
    %158 = arith.addf %148, %157 : vector<1x512xf32>
    %159 = vector.extract_strided_slice %152 {offsets = [6, 0], sizes = [1, 512], strides = [1, 1]} : vector<8x512xf32> to vector<1x512xf32>
    %160 = arith.mulf %155, %159 : vector<1x512xf32>
    %161 = arith.addf %151, %160 : vector<1x512xf32>
    %c21_i32 = arith.constant 21 : i32
    %162 = tpu.dynamic_rotate %134 by %c21_i32 dim 1 : vector<8x512xf32>, i32 -> vector<8x512xf32>
    %163 = vector.extract_strided_slice %1 {offsets = [1, 0], sizes = [1, 512], strides = [1, 1]} : vector<2x512xf32> to vector<1x512xf32>
    %164 = vector.extract_strided_slice %2 {offsets = [1, 0], sizes = [1, 512], strides = [1, 1]} : vector<2x512xf32> to vector<1x512xf32>
    %165 = arith.mulf %163, %164 : vector<1x512xf32>
    %166 = vector.extract_strided_slice %162 {offsets = [3, 0], sizes = [1, 512], strides = [1, 1]} : vector<8x512xf32> to vector<1x512xf32>
    %167 = arith.mulf %165, %166 : vector<1x512xf32>
    %168 = arith.addf %158, %167 : vector<1x512xf32>
    %169 = vector.extract_strided_slice %162 {offsets = [7, 0], sizes = [1, 512], strides = [1, 1]} : vector<8x512xf32> to vector<1x512xf32>
    %170 = arith.mulf %165, %169 : vector<1x512xf32>
    %171 = arith.addf %161, %170 : vector<1x512xf32>
    %172 = tpu.concatenate %168, %171 in 0 : vector<1x512xf32>, vector<1x512xf32> -> vector<2x512xf32>
    %c1_i32_101 = arith.constant 1 : i32
    %173 = tpu.dynamic_rotate %35 by %c1_i32_101 dim 1 : vector<8x512xf32>, i32 -> vector<8x512xf32>
    %174 = arith.truncf %173 : vector<8x512xf32> to vector<8x512xbf16>
    %c0_102 = arith.constant 0 : index
    %c0_103 = arith.constant 0 : index
    %175 = vector.load %arg20[%c0_102, %c0_103] : memref<72x512xbf16, #tpu.memory_space<vmem>>, vector<8x512xbf16>
    tpu.vector_store %arg20[%c0_102, %c0_103], %174 {strides = array<i32>} : memref<72x512xbf16, #tpu.memory_space<vmem>>, vector<8x512xbf16>,
    %176 = arith.truncf %35 : vector<8x512xf32> to vector<8x512xbf16>
    %c8_104 = arith.constant 8 : index
    %c0_105 = arith.constant 0 : index
    %177 = vector.load %arg20[%c8_104, %c0_105] : memref<72x512xbf16, #tpu.memory_space<vmem>>, vector<8x512xbf16>
    tpu.vector_store %arg20[%c8_104, %c0_105], %176 {strides = array<i32>} : memref<72x512xbf16, #tpu.memory_space<vmem>>, vector<8x512xbf16>,
    %c511_i32_106 = arith.constant 511 : i32
    %178 = tpu.dynamic_rotate %35 by %c511_i32_106 dim 1 : vector<8x512xf32>, i32 -> vector<8x512xf32>
    %179 = arith.truncf %178 : vector<8x512xf32> to vector<8x512xbf16>
    %c16_107 = arith.constant 16 : index
    %c0_108 = arith.constant 0 : index
    %180 = vector.load %arg20[%c16_107, %c0_108] : memref<72x512xbf16, #tpu.memory_space<vmem>>, vector<8x512xbf16>
    tpu.vector_store %arg20[%c16_107, %c0_108], %179 {strides = array<i32>} : memref<72x512xbf16, #tpu.memory_space<vmem>>, vector<8x512xbf16>,
    %c510_i32_109 = arith.constant 510 : i32
    %181 = tpu.dynamic_rotate %35 by %c510_i32_109 dim 1 : vector<8x512xf32>, i32 -> vector<8x512xf32>
    %182 = arith.truncf %181 : vector<8x512xf32> to vector<8x512xbf16>
    %c24_110 = arith.constant 24 : index
    %c0_111 = arith.constant 0 : index
    %183 = vector.load %arg20[%c24_110, %c0_111] : memref<72x512xbf16, #tpu.memory_space<vmem>>, vector<8x512xbf16>
    tpu.vector_store %arg20[%c24_110, %c0_111], %182 {strides = array<i32>} : memref<72x512xbf16, #tpu.memory_space<vmem>>, vector<8x512xbf16>,
    %c0_112 = arith.constant 0 : index
    %c0_113 = arith.constant 0 : index
    %184 = vector.load %arg10[%c0_112, %c0_113] : memref<4x32xbf16, #tpu.memory_space<vmem>>, vector<4x32xbf16>
    %c0_114 = arith.constant 0 : index
    %c0_115 = arith.constant 0 : index
    %185 = vector.load %arg20[%c0_114, %c0_115] : memref<72x512xbf16, #tpu.memory_space<vmem>>, vector<32x512xbf16>
    %cst_116 = arith.constant dense<0.000000e+00> : vector<4x512xf32>
    %186 = tpu.matmul %184, %185, %cst_116 {dimension_numbers = #tpu.dot_dimension_numbers<[1], [0], [0], [1], [0, 0, 1, 1], [], []>} : vector<4x32xbf16>, vector<32x512xbf16>, vector<4x512xf32> -> vector<4x512xf32>
    %cst_117 = arith.constant 0.000000e+00 : f32
    %187 = vector.broadcast %cst_117 : f32 to vector<4x512xf32>
    %188 = arith.cmpf oge, %186, %187 : vector<4x512xf32>
    %cst_118 = arith.constant 1.000000e-01 : f32
    %189 = vector.broadcast %cst_118 : f32 to vector<4x512xf32>
    %190 = arith.mulf %189, %186 : vector<4x512xf32>
    %191 = arith.select %188, %186, %190 : vector<4x512xi1>, vector<4x512xf32>
    %c0_119 = arith.constant 0 : index
    %c0_120 = arith.constant 0 : index
    %192 = vector.load %arg11[%c0_119, %c0_120] : memref<8x4xbf16, #tpu.memory_space<vmem>>, vector<8x4xbf16>
    %193 = arith.truncf %191 : vector<4x512xf32> to vector<4x512xbf16>
    %cst_121 = arith.constant dense<0.000000e+00> : vector<8x512xf32>
    %194 = tpu.matmul %192, %193, %cst_121 {dimension_numbers = #tpu.dot_dimension_numbers<[1], [0], [0], [1], [0, 0, 1, 1], [], []>} : vector<8x4xbf16>, vector<4x512xbf16>, vector<8x512xf32> -> vector<8x512xf32>
    %cst_122 = arith.constant 0.000000e+00 : f32
    %195 = vector.broadcast %cst_122 : f32 to vector<8x512xf32>
    %196 = arith.cmpf oge, %194, %195 : vector<8x512xf32>
    %cst_123 = arith.constant 1.000000e-01 : f32
    %197 = vector.broadcast %cst_123 : f32 to vector<8x512xf32>
    %198 = arith.mulf %197, %194 : vector<8x512xf32>
    %199 = arith.select %196, %194, %198 : vector<8x512xi1>, vector<8x512xf32>
    %200 = vector.extract_strided_slice %2 {offsets = [0, 0], sizes = [1, 512], strides = [1, 1]} : vector<2x512xf32> to vector<1x512xf32>
    %201 = vector.extract_strided_slice %199 {offsets = [0, 0], sizes = [1, 512], strides = [1, 1]} : vector<8x512xf32> to vector<1x512xf32>
    %202 = arith.mulf %200, %201 : vector<1x512xf32>
    %203 = vector.extract_strided_slice %199 {offsets = [1, 0], sizes = [1, 512], strides = [1, 1]} : vector<8x512xf32> to vector<1x512xf32>
    %204 = arith.mulf %200, %203 : vector<1x512xf32>
    %205 = vector.extract_strided_slice %199 {offsets = [2, 0], sizes = [1, 512], strides = [1, 1]} : vector<8x512xf32> to vector<1x512xf32>
    %206 = arith.mulf %200, %205 : vector<1x512xf32>
    %207 = vector.extract_strided_slice %199 {offsets = [3, 0], sizes = [1, 512], strides = [1, 1]} : vector<8x512xf32> to vector<1x512xf32>
    %208 = arith.mulf %200, %207 : vector<1x512xf32>
    %c1_i32_124 = arith.constant 1 : i32
    %209 = tpu.dynamic_rotate %199 by %c1_i32_124 dim 1 : vector<8x512xf32>, i32 -> vector<8x512xf32>
    %210 = vector.extract_strided_slice %2 {offsets = [1, 0], sizes = [1, 512], strides = [1, 1]} : vector<2x512xf32> to vector<1x512xf32>
    %211 = vector.extract_strided_slice %209 {offsets = [4, 0], sizes = [1, 512], strides = [1, 1]} : vector<8x512xf32> to vector<1x512xf32>
    %212 = arith.mulf %210, %211 : vector<1x512xf32>
    %213 = arith.addf %202, %212 : vector<1x512xf32>
    %214 = vector.extract_strided_slice %209 {offsets = [5, 0], sizes = [1, 512], strides = [1, 1]} : vector<8x512xf32> to vector<1x512xf32>
    %215 = arith.mulf %210, %214 : vector<1x512xf32>
    %216 = arith.addf %204, %215 : vector<1x512xf32>
    %217 = vector.extract_strided_slice %209 {offsets = [6, 0], sizes = [1, 512], strides = [1, 1]} : vector<8x512xf32> to vector<1x512xf32>
    %218 = arith.mulf %210, %217 : vector<1x512xf32>
    %219 = arith.addf %206, %218 : vector<1x512xf32>
    %220 = vector.extract_strided_slice %209 {offsets = [7, 0], sizes = [1, 512], strides = [1, 1]} : vector<8x512xf32> to vector<1x512xf32>
    %221 = arith.mulf %210, %220 : vector<1x512xf32>
    %222 = arith.addf %208, %221 : vector<1x512xf32>
    %223 = tpu.concatenate %213, %216, %219, %222 in 0 : vector<1x512xf32>, vector<1x512xf32>, vector<1x512xf32>, vector<1x512xf32> -> vector<4x512xf32>
    %c20_i32_125 = arith.constant 20 : i32
    %224 = tpu.dynamic_rotate %35 by %c20_i32_125 dim 1 : vector<8x512xf32>, i32 -> vector<8x512xf32>
    %225 = arith.truncf %224 : vector<8x512xf32> to vector<8x512xbf16>
    %c0_126 = arith.constant 0 : index
    %c0_127 = arith.constant 0 : index
    %226 = vector.load %arg20[%c0_126, %c0_127] : memref<72x512xbf16, #tpu.memory_space<vmem>>, vector<8x512xbf16>
    tpu.vector_store %arg20[%c0_126, %c0_127], %225 {strides = array<i32>} : memref<72x512xbf16, #tpu.memory_space<vmem>>, vector<8x512xbf16>,
    %227 = arith.truncf %35 : vector<8x512xf32> to vector<8x512xbf16>
    %c8_128 = arith.constant 8 : index
    %c0_129 = arith.constant 0 : index
    %228 = vector.load %arg20[%c8_128, %c0_129] : memref<72x512xbf16, #tpu.memory_space<vmem>>, vector<8x512xbf16>
    tpu.vector_store %arg20[%c8_128, %c0_129], %227 {strides = array<i32>} : memref<72x512xbf16, #tpu.memory_space<vmem>>, vector<8x512xbf16>,
    %c492_i32_130 = arith.constant 492 : i32
    %229 = tpu.dynamic_rotate %35 by %c492_i32_130 dim 1 : vector<8x512xf32>, i32 -> vector<8x512xf32>
    %230 = arith.truncf %229 : vector<8x512xf32> to vector<8x512xbf16>
    %c16_131 = arith.constant 16 : index
    %c0_132 = arith.constant 0 : index
    %231 = vector.load %arg20[%c16_131, %c0_132] : memref<72x512xbf16, #tpu.memory_space<vmem>>, vector<8x512xbf16>
    tpu.vector_store %arg20[%c16_131, %c0_132], %230 {strides = array<i32>} : memref<72x512xbf16, #tpu.memory_space<vmem>>, vector<8x512xbf16>,
    %c472_i32_133 = arith.constant 472 : i32
    %232 = tpu.dynamic_rotate %35 by %c472_i32_133 dim 1 : vector<8x512xf32>, i32 -> vector<8x512xf32>
    %233 = arith.truncf %232 : vector<8x512xf32> to vector<8x512xbf16>
    %c24_134 = arith.constant 24 : index
    %c0_135 = arith.constant 0 : index
    %234 = vector.load %arg20[%c24_134, %c0_135] : memref<72x512xbf16, #tpu.memory_space<vmem>>, vector<8x512xbf16>
    tpu.vector_store %arg20[%c24_134, %c0_135], %233 {strides = array<i32>} : memref<72x512xbf16, #tpu.memory_space<vmem>>, vector<8x512xbf16>,
    %c0_136 = arith.constant 0 : index
    %c0_137 = arith.constant 0 : index
    %235 = vector.load %arg10[%c0_136, %c0_137] : memref<4x32xbf16, #tpu.memory_space<vmem>>, vector<4x32xbf16>
    %c0_138 = arith.constant 0 : index
    %c0_139 = arith.constant 0 : index
    %236 = vector.load %arg20[%c0_138, %c0_139] : memref<72x512xbf16, #tpu.memory_space<vmem>>, vector<32x512xbf16>
    %cst_140 = arith.constant dense<0.000000e+00> : vector<4x512xf32>
    %237 = tpu.matmul %235, %236, %cst_140 {dimension_numbers = #tpu.dot_dimension_numbers<[1], [0], [0], [1], [0, 0, 1, 1], [], []>} : vector<4x32xbf16>, vector<32x512xbf16>, vector<4x512xf32> -> vector<4x512xf32>
    %cst_141 = arith.constant 0.000000e+00 : f32
    %238 = vector.broadcast %cst_141 : f32 to vector<4x512xf32>
    %239 = arith.cmpf oge, %237, %238 : vector<4x512xf32>
    %cst_142 = arith.constant 1.000000e-01 : f32
    %240 = vector.broadcast %cst_142 : f32 to vector<4x512xf32>
    %241 = arith.mulf %240, %237 : vector<4x512xf32>
    %242 = arith.select %239, %237, %241 : vector<4x512xi1>, vector<4x512xf32>
    %c0_143 = arith.constant 0 : index
    %c0_144 = arith.constant 0 : index
    %243 = vector.load %arg11[%c0_143, %c0_144] : memref<8x4xbf16, #tpu.memory_space<vmem>>, vector<8x4xbf16>
    %244 = arith.truncf %242 : vector<4x512xf32> to vector<4x512xbf16>
    %cst_145 = arith.constant dense<0.000000e+00> : vector<8x512xf32>
    %245 = tpu.matmul %243, %244, %cst_145 {dimension_numbers = #tpu.dot_dimension_numbers<[1], [0], [0], [1], [0, 0, 1, 1], [], []>} : vector<8x4xbf16>, vector<4x512xbf16>, vector<8x512xf32> -> vector<8x512xf32>
    %cst_146 = arith.constant 0.000000e+00 : f32
    %246 = vector.broadcast %cst_146 : f32 to vector<8x512xf32>
    %247 = arith.cmpf oge, %245, %246 : vector<8x512xf32>
    %cst_147 = arith.constant 1.000000e-01 : f32
    %248 = vector.broadcast %cst_147 : f32 to vector<8x512xf32>
    %249 = arith.mulf %248, %245 : vector<8x512xf32>
    %250 = arith.select %247, %245, %249 : vector<8x512xi1>, vector<8x512xf32>
    %251 = vector.extract_strided_slice %1 {offsets = [0, 0], sizes = [1, 512], strides = [1, 1]} : vector<2x512xf32> to vector<1x512xf32>
    %252 = vector.extract_strided_slice %250 {offsets = [0, 0], sizes = [1, 512], strides = [1, 1]} : vector<8x512xf32> to vector<1x512xf32>
    %253 = arith.mulf %251, %252 : vector<1x512xf32>
    %254 = vector.extract_strided_slice %250 {offsets = [1, 0], sizes = [1, 512], strides = [1, 1]} : vector<8x512xf32> to vector<1x512xf32>
    %255 = arith.mulf %251, %254 : vector<1x512xf32>
    %256 = vector.extract_strided_slice %250 {offsets = [2, 0], sizes = [1, 512], strides = [1, 1]} : vector<8x512xf32> to vector<1x512xf32>
    %257 = arith.mulf %251, %256 : vector<1x512xf32>
    %258 = vector.extract_strided_slice %250 {offsets = [3, 0], sizes = [1, 512], strides = [1, 1]} : vector<8x512xf32> to vector<1x512xf32>
    %259 = arith.mulf %251, %258 : vector<1x512xf32>
    %c20_i32_148 = arith.constant 20 : i32
    %260 = tpu.dynamic_rotate %250 by %c20_i32_148 dim 1 : vector<8x512xf32>, i32 -> vector<8x512xf32>
    %261 = vector.extract_strided_slice %1 {offsets = [1, 0], sizes = [1, 512], strides = [1, 1]} : vector<2x512xf32> to vector<1x512xf32>
    %262 = vector.extract_strided_slice %260 {offsets = [4, 0], sizes = [1, 512], strides = [1, 1]} : vector<8x512xf32> to vector<1x512xf32>
    %263 = arith.mulf %261, %262 : vector<1x512xf32>
    %264 = arith.addf %253, %263 : vector<1x512xf32>
    %265 = vector.extract_strided_slice %260 {offsets = [5, 0], sizes = [1, 512], strides = [1, 1]} : vector<8x512xf32> to vector<1x512xf32>
    %266 = arith.mulf %261, %265 : vector<1x512xf32>
    %267 = arith.addf %255, %266 : vector<1x512xf32>
    %268 = vector.extract_strided_slice %260 {offsets = [6, 0], sizes = [1, 512], strides = [1, 1]} : vector<8x512xf32> to vector<1x512xf32>
    %269 = arith.mulf %261, %268 : vector<1x512xf32>
    %270 = arith.addf %257, %269 : vector<1x512xf32>
    %271 = vector.extract_strided_slice %260 {offsets = [7, 0], sizes = [1, 512], strides = [1, 1]} : vector<8x512xf32> to vector<1x512xf32>
    %272 = arith.mulf %261, %271 : vector<1x512xf32>
    %273 = arith.addf %259, %272 : vector<1x512xf32>
    %274 = tpu.concatenate %264, %267, %270, %273 in 0 : vector<1x512xf32>, vector<1x512xf32>, vector<1x512xf32>, vector<1x512xf32> -> vector<4x512xf32>
    %275 = arith.truncf %107 : vector<8x512xf32> to vector<8x512xbf16>
    %c0_149 = arith.constant 0 : index
    %c0_150 = arith.constant 0 : index
    %276 = vector.load %arg20[%c0_149, %c0_150] : memref<72x512xbf16, #tpu.memory_space<vmem>>, vector<8x512xbf16>
    tpu.vector_store %arg20[%c0_149, %c0_150], %275 {strides = array<i32>} : memref<72x512xbf16, #tpu.memory_space<vmem>>, vector<8x512xbf16>,
    %277 = arith.truncf %172 : vector<2x512xf32> to vector<2x512xbf16>
    %c8_151 = arith.constant 8 : index
    %c0_152 = arith.constant 0 : index
    %278 = vector.load %arg20[%c8_151, %c0_152] : memref<72x512xbf16, #tpu.memory_space<vmem>>, vector<2x512xbf16>
    tpu.vector_store %arg20[%c8_151, %c0_152], %277 {strides = array<i32>} : memref<72x512xbf16, #tpu.memory_space<vmem>>, vector<2x512xbf16>,
    %279 = arith.truncf %223 : vector<4x512xf32> to vector<4x512xbf16>
    %c10 = arith.constant 10 : index
    %c0_153 = arith.constant 0 : index
    %280 = vector.load %arg20[%c10, %c0_153] : memref<72x512xbf16, #tpu.memory_space<vmem>>, vector<4x512xbf16>
    tpu.vector_store %arg20[%c10, %c0_153], %279 {strides = array<i32>} : memref<72x512xbf16, #tpu.memory_space<vmem>>, vector<4x512xbf16>,
    %281 = arith.truncf %274 : vector<4x512xf32> to vector<4x512xbf16>
    %c14 = arith.constant 14 : index
    %c0_154 = arith.constant 0 : index
    %282 = vector.load %arg20[%c14, %c0_154] : memref<72x512xbf16, #tpu.memory_space<vmem>>, vector<4x512xbf16>
    tpu.vector_store %arg20[%c14, %c0_154], %281 {strides = array<i32>} : memref<72x512xbf16, #tpu.memory_space<vmem>>, vector<4x512xbf16>,
    %c0_155 = arith.constant 0 : index
    %c0_156 = arith.constant 0 : index
    %283 = vector.load %arg12[%c0_155, %c0_156] : memref<8x18xbf16, #tpu.memory_space<vmem>>, vector<8x18xbf16>
    %c0_157 = arith.constant 0 : index
    %c0_158 = arith.constant 0 : index
    %284 = vector.load %arg20[%c0_157, %c0_158] : memref<72x512xbf16, #tpu.memory_space<vmem>>, vector<18x512xbf16>
    %cst_159 = arith.constant dense<0.000000e+00> : vector<8x512xf32>
    %285 = tpu.matmul %283, %284, %cst_159 {dimension_numbers = #tpu.dot_dimension_numbers<[1], [0], [0], [1], [0, 0, 1, 1], [], []>} : vector<8x18xbf16>, vector<18x512xbf16>, vector<8x512xf32> -> vector<8x512xf32>
    %cst_160 = arith.constant 0.000000e+00 : f32
    %286 = vector.broadcast %cst_160 : f32 to vector<8x512xf32>
    %287 = arith.cmpf oge, %285, %286 : vector<8x512xf32>
    %cst_161 = arith.constant 1.000000e-01 : f32
    %288 = vector.broadcast %cst_161 : f32 to vector<8x512xf32>
    %289 = arith.mulf %288, %285 : vector<8x512xf32>
    %290 = arith.select %287, %285, %289 : vector<8x512xi1>, vector<8x512xf32>
    %c42_i32_162 = arith.constant 42 : i32
    %291 = tpu.dynamic_rotate %290 by %c42_i32_162 dim 1 : vector<8x512xf32>, i32 -> vector<8x512xf32>
    %292 = arith.truncf %291 : vector<8x512xf32> to vector<8x512xbf16>
    %c0_163 = arith.constant 0 : index
    %c0_164 = arith.constant 0 : index
    %293 = vector.load %arg20[%c0_163, %c0_164] : memref<72x512xbf16, #tpu.memory_space<vmem>>, vector<8x512xbf16>
    tpu.vector_store %arg20[%c0_163, %c0_164], %292 {strides = array<i32>} : memref<72x512xbf16, #tpu.memory_space<vmem>>, vector<8x512xbf16>,
    %c40_i32_165 = arith.constant 40 : i32
    %294 = tpu.dynamic_rotate %290 by %c40_i32_165 dim 1 : vector<8x512xf32>, i32 -> vector<8x512xf32>
    %295 = arith.truncf %294 : vector<8x512xf32> to vector<8x512xbf16>
    %c8_166 = arith.constant 8 : index
    %c0_167 = arith.constant 0 : index
    %296 = vector.load %arg20[%c8_166, %c0_167] : memref<72x512xbf16, #tpu.memory_space<vmem>>, vector<8x512xbf16>
    tpu.vector_store %arg20[%c8_166, %c0_167], %295 {strides = array<i32>} : memref<72x512xbf16, #tpu.memory_space<vmem>>, vector<8x512xbf16>,
    %c38_i32_168 = arith.constant 38 : i32
    %297 = tpu.dynamic_rotate %290 by %c38_i32_168 dim 1 : vector<8x512xf32>, i32 -> vector<8x512xf32>
    %298 = arith.truncf %297 : vector<8x512xf32> to vector<8x512xbf16>
    %c16_169 = arith.constant 16 : index
    %c0_170 = arith.constant 0 : index
    %299 = vector.load %arg20[%c16_169, %c0_170] : memref<72x512xbf16, #tpu.memory_space<vmem>>, vector<8x512xbf16>
    tpu.vector_store %arg20[%c16_169, %c0_170], %298 {strides = array<i32>} : memref<72x512xbf16, #tpu.memory_space<vmem>>, vector<8x512xbf16>,
    %c2_i32_171 = arith.constant 2 : i32
    %300 = tpu.dynamic_rotate %290 by %c2_i32_171 dim 1 : vector<8x512xf32>, i32 -> vector<8x512xf32>
    %301 = arith.truncf %300 : vector<8x512xf32> to vector<8x512xbf16>
    %c24_172 = arith.constant 24 : index
    %c0_173 = arith.constant 0 : index
    %302 = vector.load %arg20[%c24_172, %c0_173] : memref<72x512xbf16, #tpu.memory_space<vmem>>, vector<8x512xbf16>
    tpu.vector_store %arg20[%c24_172, %c0_173], %301 {strides = array<i32>} : memref<72x512xbf16, #tpu.memory_space<vmem>>, vector<8x512xbf16>,
    %303 = arith.truncf %290 : vector<8x512xf32> to vector<8x512xbf16>
    %c32_174 = arith.constant 32 : index
    %c0_175 = arith.constant 0 : index
    %304 = vector.load %arg20[%c32_174, %c0_175] : memref<72x512xbf16, #tpu.memory_space<vmem>>, vector<8x512xbf16>
    tpu.vector_store %arg20[%c32_174, %c0_175], %303 {strides = array<i32>} : memref<72x512xbf16, #tpu.memory_space<vmem>>, vector<8x512xbf16>,
    %c510_i32_176 = arith.constant 510 : i32
    %305 = tpu.dynamic_rotate %290 by %c510_i32_176 dim 1 : vector<8x512xf32>, i32 -> vector<8x512xf32>
    %306 = arith.truncf %305 : vector<8x512xf32> to vector<8x512xbf16>
    %c40_177 = arith.constant 40 : index
    %c0_178 = arith.constant 0 : index
    %307 = vector.load %arg20[%c40_177, %c0_178] : memref<72x512xbf16, #tpu.memory_space<vmem>>, vector<8x512xbf16>
    tpu.vector_store %arg20[%c40_177, %c0_178], %306 {strides = array<i32>} : memref<72x512xbf16, #tpu.memory_space<vmem>>, vector<8x512xbf16>,
    %c474_i32_179 = arith.constant 474 : i32
    %308 = tpu.dynamic_rotate %290 by %c474_i32_179 dim 1 : vector<8x512xf32>, i32 -> vector<8x512xf32>
    %309 = arith.truncf %308 : vector<8x512xf32> to vector<8x512xbf16>
    %c48_180 = arith.constant 48 : index
    %c0_181 = arith.constant 0 : index
    %310 = vector.load %arg20[%c48_180, %c0_181] : memref<72x512xbf16, #tpu.memory_space<vmem>>, vector<8x512xbf16>
    tpu.vector_store %arg20[%c48_180, %c0_181], %309 {strides = array<i32>} : memref<72x512xbf16, #tpu.memory_space<vmem>>, vector<8x512xbf16>,
    %c472_i32_182 = arith.constant 472 : i32
    %311 = tpu.dynamic_rotate %290 by %c472_i32_182 dim 1 : vector<8x512xf32>, i32 -> vector<8x512xf32>
    %312 = arith.truncf %311 : vector<8x512xf32> to vector<8x512xbf16>
    %c56_183 = arith.constant 56 : index
    %c0_184 = arith.constant 0 : index
    %313 = vector.load %arg20[%c56_183, %c0_184] : memref<72x512xbf16, #tpu.memory_space<vmem>>, vector<8x512xbf16>
    tpu.vector_store %arg20[%c56_183, %c0_184], %312 {strides = array<i32>} : memref<72x512xbf16, #tpu.memory_space<vmem>>, vector<8x512xbf16>,
    %c470_i32_185 = arith.constant 470 : i32
    %314 = tpu.dynamic_rotate %290 by %c470_i32_185 dim 1 : vector<8x512xf32>, i32 -> vector<8x512xf32>
    %315 = arith.truncf %314 : vector<8x512xf32> to vector<8x512xbf16>
    %c64_186 = arith.constant 64 : index
    %c0_187 = arith.constant 0 : index
    %316 = vector.load %arg20[%c64_186, %c0_187] : memref<72x512xbf16, #tpu.memory_space<vmem>>, vector<8x512xbf16>
    tpu.vector_store %arg20[%c64_186, %c0_187], %315 {strides = array<i32>} : memref<72x512xbf16, #tpu.memory_space<vmem>>, vector<8x512xbf16>,
    %c0_188 = arith.constant 0 : index
    %c0_189 = arith.constant 0 : index
    %317 = vector.load %arg13[%c0_188, %c0_189] : memref<8x72xbf16, #tpu.memory_space<vmem>>, vector<8x72xbf16>
    %c0_190 = arith.constant 0 : index
    %c0_191 = arith.constant 0 : index
    %318 = vector.load %arg20[%c0_190, %c0_191] : memref<72x512xbf16, #tpu.memory_space<vmem>>, vector<72x512xbf16>
    %cst_192 = arith.constant dense<0.000000e+00> : vector<8x512xf32>
    %319 = tpu.matmul %317, %318, %cst_192 {dimension_numbers = #tpu.dot_dimension_numbers<[1], [0], [0], [1], [0, 0, 1, 1], [], []>} : vector<8x72xbf16>, vector<72x512xbf16>, vector<8x512xf32> -> vector<8x512xf32>
    %320 = vector.broadcast %0 : vector<1x512xf32> to vector<8x512xf32>
    %321 = arith.mulf %319, %320 : vector<8x512xf32>
    %322 = arith.addf %321, %35 : vector<8x512xf32>
    %c42_i32_193 = arith.constant 42 : i32
    %323 = tpu.dynamic_rotate %322 by %c42_i32_193 dim 1 : vector<8x512xf32>, i32 -> vector<8x512xf32>
    %324 = arith.truncf %323 : vector<8x512xf32> to vector<8x512xbf16>
    %c0_194 = arith.constant 0 : index
    %c0_195 = arith.constant 0 : index
    %325 = vector.load %arg20[%c0_194, %c0_195] : memref<72x512xbf16, #tpu.memory_space<vmem>>, vector<8x512xbf16>
    tpu.vector_store %arg20[%c0_194, %c0_195], %324 {strides = array<i32>} : memref<72x512xbf16, #tpu.memory_space<vmem>>, vector<8x512xbf16>,
    %c40_i32_196 = arith.constant 40 : i32
    %326 = tpu.dynamic_rotate %322 by %c40_i32_196 dim 1 : vector<8x512xf32>, i32 -> vector<8x512xf32>
    %327 = arith.truncf %326 : vector<8x512xf32> to vector<8x512xbf16>
    %c8_197 = arith.constant 8 : index
    %c0_198 = arith.constant 0 : index
    %328 = vector.load %arg20[%c8_197, %c0_198] : memref<72x512xbf16, #tpu.memory_space<vmem>>, vector<8x512xbf16>
    tpu.vector_store %arg20[%c8_197, %c0_198], %327 {strides = array<i32>} : memref<72x512xbf16, #tpu.memory_space<vmem>>, vector<8x512xbf16>,
    %c38_i32_199 = arith.constant 38 : i32
    %329 = tpu.dynamic_rotate %322 by %c38_i32_199 dim 1 : vector<8x512xf32>, i32 -> vector<8x512xf32>
    %330 = arith.truncf %329 : vector<8x512xf32> to vector<8x512xbf16>
    %c16_200 = arith.constant 16 : index
    %c0_201 = arith.constant 0 : index
    %331 = vector.load %arg20[%c16_200, %c0_201] : memref<72x512xbf16, #tpu.memory_space<vmem>>, vector<8x512xbf16>
    tpu.vector_store %arg20[%c16_200, %c0_201], %330 {strides = array<i32>} : memref<72x512xbf16, #tpu.memory_space<vmem>>, vector<8x512xbf16>,
    %c2_i32_202 = arith.constant 2 : i32
    %332 = tpu.dynamic_rotate %322 by %c2_i32_202 dim 1 : vector<8x512xf32>, i32 -> vector<8x512xf32>
    %333 = arith.truncf %332 : vector<8x512xf32> to vector<8x512xbf16>
    %c24_203 = arith.constant 24 : index
    %c0_204 = arith.constant 0 : index
    %334 = vector.load %arg20[%c24_203, %c0_204] : memref<72x512xbf16, #tpu.memory_space<vmem>>, vector<8x512xbf16>
    tpu.vector_store %arg20[%c24_203, %c0_204], %333 {strides = array<i32>} : memref<72x512xbf16, #tpu.memory_space<vmem>>, vector<8x512xbf16>,
    %335 = arith.truncf %322 : vector<8x512xf32> to vector<8x512xbf16>
    %c32_205 = arith.constant 32 : index
    %c0_206 = arith.constant 0 : index
    %336 = vector.load %arg20[%c32_205, %c0_206] : memref<72x512xbf16, #tpu.memory_space<vmem>>, vector<8x512xbf16>
    tpu.vector_store %arg20[%c32_205, %c0_206], %335 {strides = array<i32>} : memref<72x512xbf16, #tpu.memory_space<vmem>>, vector<8x512xbf16>,
    %c510_i32_207 = arith.constant 510 : i32
    %337 = tpu.dynamic_rotate %322 by %c510_i32_207 dim 1 : vector<8x512xf32>, i32 -> vector<8x512xf32>
    %338 = arith.truncf %337 : vector<8x512xf32> to vector<8x512xbf16>
    %c40_208 = arith.constant 40 : index
    %c0_209 = arith.constant 0 : index
    %339 = vector.load %arg20[%c40_208, %c0_209] : memref<72x512xbf16, #tpu.memory_space<vmem>>, vector<8x512xbf16>
    tpu.vector_store %arg20[%c40_208, %c0_209], %338 {strides = array<i32>} : memref<72x512xbf16, #tpu.memory_space<vmem>>, vector<8x512xbf16>,
    %c474_i32_210 = arith.constant 474 : i32
    %340 = tpu.dynamic_rotate %322 by %c474_i32_210 dim 1 : vector<8x512xf32>, i32 -> vector<8x512xf32>
    %341 = arith.truncf %340 : vector<8x512xf32> to vector<8x512xbf16>
    %c48_211 = arith.constant 48 : index
    %c0_212 = arith.constant 0 : index
    %342 = vector.load %arg20[%c48_211, %c0_212] : memref<72x512xbf16, #tpu.memory_space<vmem>>, vector<8x512xbf16>
    tpu.vector_store %arg20[%c48_211, %c0_212], %341 {strides = array<i32>} : memref<72x512xbf16, #tpu.memory_space<vmem>>, vector<8x512xbf16>,
    %c472_i32_213 = arith.constant 472 : i32
    %343 = tpu.dynamic_rotate %322 by %c472_i32_213 dim 1 : vector<8x512xf32>, i32 -> vector<8x512xf32>
    %344 = arith.truncf %343 : vector<8x512xf32> to vector<8x512xbf16>
    %c56_214 = arith.constant 56 : index
    %c0_215 = arith.constant 0 : index
    %345 = vector.load %arg20[%c56_214, %c0_215] : memref<72x512xbf16, #tpu.memory_space<vmem>>, vector<8x512xbf16>
    tpu.vector_store %arg20[%c56_214, %c0_215], %344 {strides = array<i32>} : memref<72x512xbf16, #tpu.memory_space<vmem>>, vector<8x512xbf16>,
    %c470_i32_216 = arith.constant 470 : i32
    %346 = tpu.dynamic_rotate %322 by %c470_i32_216 dim 1 : vector<8x512xf32>, i32 -> vector<8x512xf32>
    %347 = arith.truncf %346 : vector<8x512xf32> to vector<8x512xbf16>
    %c64_217 = arith.constant 64 : index
    %c0_218 = arith.constant 0 : index
    %348 = vector.load %arg20[%c64_217, %c0_218] : memref<72x512xbf16, #tpu.memory_space<vmem>>, vector<8x512xbf16>
    tpu.vector_store %arg20[%c64_217, %c0_218], %347 {strides = array<i32>} : memref<72x512xbf16, #tpu.memory_space<vmem>>, vector<8x512xbf16>,
    %c0_219 = arith.constant 0 : index
    %c0_220 = arith.constant 0 : index
    %349 = vector.load %arg14[%c0_219, %c0_220] : memref<8x72xbf16, #tpu.memory_space<vmem>>, vector<8x72xbf16>
    %c0_221 = arith.constant 0 : index
    %c0_222 = arith.constant 0 : index
    %350 = vector.load %arg20[%c0_221, %c0_222] : memref<72x512xbf16, #tpu.memory_space<vmem>>, vector<72x512xbf16>
    %cst_223 = arith.constant dense<0.000000e+00> : vector<8x512xf32>
    %351 = tpu.matmul %349, %350, %cst_223 {dimension_numbers = #tpu.dot_dimension_numbers<[1], [0], [0], [1], [0, 0, 1, 1], [], []>} : vector<8x72xbf16>, vector<72x512xbf16>, vector<8x512xf32> -> vector<8x512xf32>
    %352 = vector.broadcast %0 : vector<1x512xf32> to vector<8x512xf32>
    %353 = arith.mulf %351, %352 : vector<8x512xf32>
    %354 = arith.addf %353, %35 : vector<8x512xf32>
    %c42_i32_224 = arith.constant 42 : i32
    %355 = tpu.dynamic_rotate %354 by %c42_i32_224 dim 1 : vector<8x512xf32>, i32 -> vector<8x512xf32>
    %356 = arith.truncf %355 : vector<8x512xf32> to vector<8x512xbf16>
    %c0_225 = arith.constant 0 : index
    %c0_226 = arith.constant 0 : index
    %357 = vector.load %arg20[%c0_225, %c0_226] : memref<72x512xbf16, #tpu.memory_space<vmem>>, vector<8x512xbf16>
    tpu.vector_store %arg20[%c0_225, %c0_226], %356 {strides = array<i32>} : memref<72x512xbf16, #tpu.memory_space<vmem>>, vector<8x512xbf16>,
    %c40_i32_227 = arith.constant 40 : i32
    %358 = tpu.dynamic_rotate %354 by %c40_i32_227 dim 1 : vector<8x512xf32>, i32 -> vector<8x512xf32>
    %359 = arith.truncf %358 : vector<8x512xf32> to vector<8x512xbf16>
    %c8_228 = arith.constant 8 : index
    %c0_229 = arith.constant 0 : index
    %360 = vector.load %arg20[%c8_228, %c0_229] : memref<72x512xbf16, #tpu.memory_space<vmem>>, vector<8x512xbf16>
    tpu.vector_store %arg20[%c8_228, %c0_229], %359 {strides = array<i32>} : memref<72x512xbf16, #tpu.memory_space<vmem>>, vector<8x512xbf16>,
    %c38_i32_230 = arith.constant 38 : i32
    %361 = tpu.dynamic_rotate %354 by %c38_i32_230 dim 1 : vector<8x512xf32>, i32 -> vector<8x512xf32>
    %362 = arith.truncf %361 : vector<8x512xf32> to vector<8x512xbf16>
    %c16_231 = arith.constant 16 : index
    %c0_232 = arith.constant 0 : index
    %363 = vector.load %arg20[%c16_231, %c0_232] : memref<72x512xbf16, #tpu.memory_space<vmem>>, vector<8x512xbf16>
    tpu.vector_store %arg20[%c16_231, %c0_232], %362 {strides = array<i32>} : memref<72x512xbf16, #tpu.memory_space<vmem>>, vector<8x512xbf16>,
    %c2_i32_233 = arith.constant 2 : i32
    %364 = tpu.dynamic_rotate %354 by %c2_i32_233 dim 1 : vector<8x512xf32>, i32 -> vector<8x512xf32>
    %365 = arith.truncf %364 : vector<8x512xf32> to vector<8x512xbf16>
    %c24_234 = arith.constant 24 : index
    %c0_235 = arith.constant 0 : index
    %366 = vector.load %arg20[%c24_234, %c0_235] : memref<72x512xbf16, #tpu.memory_space<vmem>>, vector<8x512xbf16>
    tpu.vector_store %arg20[%c24_234, %c0_235], %365 {strides = array<i32>} : memref<72x512xbf16, #tpu.memory_space<vmem>>, vector<8x512xbf16>,
    %367 = arith.truncf %354 : vector<8x512xf32> to vector<8x512xbf16>
    %c32_236 = arith.constant 32 : index
    %c0_237 = arith.constant 0 : index
    %368 = vector.load %arg20[%c32_236, %c0_237] : memref<72x512xbf16, #tpu.memory_space<vmem>>, vector<8x512xbf16>
    tpu.vector_store %arg20[%c32_236, %c0_237], %367 {strides = array<i32>} : memref<72x512xbf16, #tpu.memory_space<vmem>>, vector<8x512xbf16>,
    %c510_i32_238 = arith.constant 510 : i32
    %369 = tpu.dynamic_rotate %354 by %c510_i32_238 dim 1 : vector<8x512xf32>, i32 -> vector<8x512xf32>
    %370 = arith.truncf %369 : vector<8x512xf32> to vector<8x512xbf16>
    %c40_239 = arith.constant 40 : index
    %c0_240 = arith.constant 0 : index
    %371 = vector.load %arg20[%c40_239, %c0_240] : memref<72x512xbf16, #tpu.memory_space<vmem>>, vector<8x512xbf16>
    tpu.vector_store %arg20[%c40_239, %c0_240], %370 {strides = array<i32>} : memref<72x512xbf16, #tpu.memory_space<vmem>>, vector<8x512xbf16>,
    %c474_i32_241 = arith.constant 474 : i32
    %372 = tpu.dynamic_rotate %354 by %c474_i32_241 dim 1 : vector<8x512xf32>, i32 -> vector<8x512xf32>
    %373 = arith.truncf %372 : vector<8x512xf32> to vector<8x512xbf16>
    %c48_242 = arith.constant 48 : index
    %c0_243 = arith.constant 0 : index
    %374 = vector.load %arg20[%c48_242, %c0_243] : memref<72x512xbf16, #tpu.memory_space<vmem>>, vector<8x512xbf16>
    tpu.vector_store %arg20[%c48_242, %c0_243], %373 {strides = array<i32>} : memref<72x512xbf16, #tpu.memory_space<vmem>>, vector<8x512xbf16>,
    %c472_i32_244 = arith.constant 472 : i32
    %375 = tpu.dynamic_rotate %354 by %c472_i32_244 dim 1 : vector<8x512xf32>, i32 -> vector<8x512xf32>
    %376 = arith.truncf %375 : vector<8x512xf32> to vector<8x512xbf16>
    %c56_245 = arith.constant 56 : index
    %c0_246 = arith.constant 0 : index
    %377 = vector.load %arg20[%c56_245, %c0_246] : memref<72x512xbf16, #tpu.memory_space<vmem>>, vector<8x512xbf16>
    tpu.vector_store %arg20[%c56_245, %c0_246], %376 {strides = array<i32>} : memref<72x512xbf16, #tpu.memory_space<vmem>>, vector<8x512xbf16>,
    %c470_i32_247 = arith.constant 470 : i32
    %378 = tpu.dynamic_rotate %354 by %c470_i32_247 dim 1 : vector<8x512xf32>, i32 -> vector<8x512xf32>
    %379 = arith.truncf %378 : vector<8x512xf32> to vector<8x512xbf16>
    %c64_248 = arith.constant 64 : index
    %c0_249 = arith.constant 0 : index
    %380 = vector.load %arg20[%c64_248, %c0_249] : memref<72x512xbf16, #tpu.memory_space<vmem>>, vector<8x512xbf16>
    tpu.vector_store %arg20[%c64_248, %c0_249], %379 {strides = array<i32>} : memref<72x512xbf16, #tpu.memory_space<vmem>>, vector<8x512xbf16>,
    %c0_250 = arith.constant 0 : index
    %c0_251 = arith.constant 0 : index
    %381 = vector.load %arg15[%c0_250, %c0_251] : memref<8x72xbf16, #tpu.memory_space<vmem>>, vector<8x72xbf16>
    %c0_252 = arith.constant 0 : index
    %c0_253 = arith.constant 0 : index
    %382 = vector.load %arg20[%c0_252, %c0_253] : memref<72x512xbf16, #tpu.memory_space<vmem>>, vector<72x512xbf16>
    %cst_254 = arith.constant dense<0.000000e+00> : vector<8x512xf32>
    %383 = tpu.matmul %381, %382, %cst_254 {dimension_numbers = #tpu.dot_dimension_numbers<[1], [0], [0], [1], [0, 0, 1, 1], [], []>} : vector<8x72xbf16>, vector<72x512xbf16>, vector<8x512xf32> -> vector<8x512xf32>
    %384 = vector.broadcast %0 : vector<1x512xf32> to vector<8x512xf32>
    %385 = arith.mulf %383, %384 : vector<8x512xf32>
    %386 = arith.addf %385, %35 : vector<8x512xf32>
    %c21_i32_255 = arith.constant 21 : i32
    %387 = tpu.dynamic_rotate %386 by %c21_i32_255 dim 1 : vector<8x512xf32>, i32 -> vector<8x512xf32>
    %388 = arith.truncf %387 : vector<8x512xf32> to vector<8x512xbf16>
    %c0_256 = arith.constant 0 : index
    %c0_257 = arith.constant 0 : index
    %389 = vector.load %arg20[%c0_256, %c0_257] : memref<72x512xbf16, #tpu.memory_space<vmem>>, vector<8x512xbf16>
    tpu.vector_store %arg20[%c0_256, %c0_257], %388 {strides = array<i32>} : memref<72x512xbf16, #tpu.memory_space<vmem>>, vector<8x512xbf16>,
    %c20_i32_258 = arith.constant 20 : i32
    %390 = tpu.dynamic_rotate %386 by %c20_i32_258 dim 1 : vector<8x512xf32>, i32 -> vector<8x512xf32>
    %391 = arith.truncf %390 : vector<8x512xf32> to vector<8x512xbf16>
    %c8_259 = arith.constant 8 : index
    %c0_260 = arith.constant 0 : index
    %392 = vector.load %arg20[%c8_259, %c0_260] : memref<72x512xbf16, #tpu.memory_space<vmem>>, vector<8x512xbf16>
    tpu.vector_store %arg20[%c8_259, %c0_260], %391 {strides = array<i32>} : memref<72x512xbf16, #tpu.memory_space<vmem>>, vector<8x512xbf16>,
    %c19_i32 = arith.constant 19 : i32
    %393 = tpu.dynamic_rotate %386 by %c19_i32 dim 1 : vector<8x512xf32>, i32 -> vector<8x512xf32>
    %394 = arith.truncf %393 : vector<8x512xf32> to vector<8x512xbf16>
    %c16_261 = arith.constant 16 : index
    %c0_262 = arith.constant 0 : index
    %395 = vector.load %arg20[%c16_261, %c0_262] : memref<72x512xbf16, #tpu.memory_space<vmem>>, vector<8x512xbf16>
    tpu.vector_store %arg20[%c16_261, %c0_262], %394 {strides = array<i32>} : memref<72x512xbf16, #tpu.memory_space<vmem>>, vector<8x512xbf16>,
    %c1_i32_263 = arith.constant 1 : i32
    %396 = tpu.dynamic_rotate %386 by %c1_i32_263 dim 1 : vector<8x512xf32>, i32 -> vector<8x512xf32>
    %397 = arith.truncf %396 : vector<8x512xf32> to vector<8x512xbf16>
    %c24_264 = arith.constant 24 : index
    %c0_265 = arith.constant 0 : index
    %398 = vector.load %arg20[%c24_264, %c0_265] : memref<72x512xbf16, #tpu.memory_space<vmem>>, vector<8x512xbf16>
    tpu.vector_store %arg20[%c24_264, %c0_265], %397 {strides = array<i32>} : memref<72x512xbf16, #tpu.memory_space<vmem>>, vector<8x512xbf16>,
    %399 = arith.truncf %386 : vector<8x512xf32> to vector<8x512xbf16>
    %c32_266 = arith.constant 32 : index
    %c0_267 = arith.constant 0 : index
    %400 = vector.load %arg20[%c32_266, %c0_267] : memref<72x512xbf16, #tpu.memory_space<vmem>>, vector<8x512xbf16>
    tpu.vector_store %arg20[%c32_266, %c0_267], %399 {strides = array<i32>} : memref<72x512xbf16, #tpu.memory_space<vmem>>, vector<8x512xbf16>,
    %c511_i32_268 = arith.constant 511 : i32
    %401 = tpu.dynamic_rotate %386 by %c511_i32_268 dim 1 : vector<8x512xf32>, i32 -> vector<8x512xf32>
    %402 = arith.truncf %401 : vector<8x512xf32> to vector<8x512xbf16>
    %c40_269 = arith.constant 40 : index
    %c0_270 = arith.constant 0 : index
    %403 = vector.load %arg20[%c40_269, %c0_270] : memref<72x512xbf16, #tpu.memory_space<vmem>>, vector<8x512xbf16>
    tpu.vector_store %arg20[%c40_269, %c0_270], %402 {strides = array<i32>} : memref<72x512xbf16, #tpu.memory_space<vmem>>, vector<8x512xbf16>,
    %c493_i32 = arith.constant 493 : i32
    %404 = tpu.dynamic_rotate %386 by %c493_i32 dim 1 : vector<8x512xf32>, i32 -> vector<8x512xf32>
    %405 = arith.truncf %404 : vector<8x512xf32> to vector<8x512xbf16>
    %c48_271 = arith.constant 48 : index
    %c0_272 = arith.constant 0 : index
    %406 = vector.load %arg20[%c48_271, %c0_272] : memref<72x512xbf16, #tpu.memory_space<vmem>>, vector<8x512xbf16>
    tpu.vector_store %arg20[%c48_271, %c0_272], %405 {strides = array<i32>} : memref<72x512xbf16, #tpu.memory_space<vmem>>, vector<8x512xbf16>,
    %c492_i32_273 = arith.constant 492 : i32
    %407 = tpu.dynamic_rotate %386 by %c492_i32_273 dim 1 : vector<8x512xf32>, i32 -> vector<8x512xf32>
    %408 = arith.truncf %407 : vector<8x512xf32> to vector<8x512xbf16>
    %c56_274 = arith.constant 56 : index
    %c0_275 = arith.constant 0 : index
    %409 = vector.load %arg20[%c56_274, %c0_275] : memref<72x512xbf16, #tpu.memory_space<vmem>>, vector<8x512xbf16>
    tpu.vector_store %arg20[%c56_274, %c0_275], %408 {strides = array<i32>} : memref<72x512xbf16, #tpu.memory_space<vmem>>, vector<8x512xbf16>,
    %c491_i32_276 = arith.constant 491 : i32
    %410 = tpu.dynamic_rotate %386 by %c491_i32_276 dim 1 : vector<8x512xf32>, i32 -> vector<8x512xf32>
    %411 = arith.truncf %410 : vector<8x512xf32> to vector<8x512xbf16>
    %c64_277 = arith.constant 64 : index
    %c0_278 = arith.constant 0 : index
    %412 = vector.load %arg20[%c64_277, %c0_278] : memref<72x512xbf16, #tpu.memory_space<vmem>>, vector<8x512xbf16>
    tpu.vector_store %arg20[%c64_277, %c0_278], %411 {strides = array<i32>} : memref<72x512xbf16, #tpu.memory_space<vmem>>, vector<8x512xbf16>,
    %c0_279 = arith.constant 0 : index
    %c0_280 = arith.constant 0 : index
    %413 = vector.load %arg16[%c0_279, %c0_280] : memref<8x72xbf16, #tpu.memory_space<vmem>>, vector<8x72xbf16>
    %c0_281 = arith.constant 0 : index
    %c0_282 = arith.constant 0 : index
    %414 = vector.load %arg20[%c0_281, %c0_282] : memref<72x512xbf16, #tpu.memory_space<vmem>>, vector<72x512xbf16>
    %cst_283 = arith.constant dense<0.000000e+00> : vector<8x512xf32>
    %415 = tpu.matmul %413, %414, %cst_283 {dimension_numbers = #tpu.dot_dimension_numbers<[1], [0], [0], [1], [0, 0, 1, 1], [], []>} : vector<8x72xbf16>, vector<72x512xbf16>, vector<8x512xf32> -> vector<8x512xf32>
    %c0_284 = arith.constant 0 : index
    %c0_285 = arith.constant 0 : index
    %416 = vector.load %arg17[%c0_284, %c0_285] : memref<8x1xf32, #tpu.memory_space<vmem>>, vector<8x1xf32>
    %417 = vector.broadcast %416 : vector<8x1xf32> to vector<8x512xf32>
    %418 = arith.addf %415, %417 : vector<8x512xf32>
    %cst_286 = arith.constant 0.000000e+00 : f32
    %419 = vector.broadcast %cst_286 : f32 to vector<8x512xf32>
    %420 = arith.maximumf %418, %419 : vector<8x512xf32>
    %c0_287 = arith.constant 0 : index
    %c0_288 = arith.constant 0 : index
    %421 = vector.load %arg18[%c0_287, %c0_288] : memref<1x8xbf16, #tpu.memory_space<vmem>>, vector<1x8xbf16>
    %422 = arith.truncf %420 : vector<8x512xf32> to vector<8x512xbf16>
    %cst_289 = arith.constant dense<0.000000e+00> : vector<1x512xf32>
    %423 = tpu.matmul %421, %422, %cst_289 {dimension_numbers = #tpu.dot_dimension_numbers<[1], [0], [0], [1], [0, 0, 1, 1], [], []>} : vector<1x8xbf16>, vector<8x512xbf16>, vector<1x512xf32> -> vector<1x512xf32>
    %424 = arith.mulf %423, %0 : vector<1x512xf32>
    %c0_290 = arith.constant 0 : index
    %c0_291 = arith.constant 0 : index
    %c0_292 = arith.constant 0 : index
    %425 = vector.load %arg19[%c0_290, %c0_291, %c0_292] : memref<1x1x512xf32, #tpu.memory_space<vmem>>, vector<1x1x512xf32>
    %426 = vector.shape_cast %425 : vector<1x1x512xf32> to vector<1x512xf32>
    %427 = vector.shape_cast %424 : vector<1x512xf32> to vector<1x1x512xf32>
    tpu.vector_store %arg19[%c0_290, %c0_291, %c0_292], %427 {strides = array<i32>} : memref<1x1x512xf32, #tpu.memory_space<vmem>>, vector<1x1x512xf32>,
    return
  }
  func.func @transform_0(%arg0: i32) -> (i32, i32, i32) {
    %c0_i32 = arith.constant 0 : i32
    %c0_i32_0 = arith.constant 0 : i32
    %c0_i32_1 = arith.constant 0 : i32
    return %arg0, %c0_i32, %c0_i32_0 : i32, i32, i32
  }
  func.func @transform_1(%arg0: i32) -> (i32, i32) {
    %c0_i32 = arith.constant 0 : i32
    %c0_i32_0 = arith.constant 0 : i32
    %c0_i32_1 = arith.constant 0 : i32
    return %c0_i32, %c0_i32_0 : i32, i32
  }
  func.func @transform_2(%arg0: i32) -> (i32, i32) {
    %c0_i32 = arith.constant 0 : i32
    %c0_i32_0 = arith.constant 0 : i32
    %c0_i32_1 = arith.constant 0 : i32
    return %c0_i32, %c0_i32_0 : i32, i32
  }
  func.func @transform_3(%arg0: i32) -> (i32, i32) {
    %c0_i32 = arith.constant 0 : i32
    %c0_i32_0 = arith.constant 0 : i32
    %c0_i32_1 = arith.constant 0 : i32
    return %c0_i32, %c0_i32_0 : i32, i32
  }
  func.func @transform_4(%arg0: i32) -> (i32, i32) {
    %c0_i32 = arith.constant 0 : i32
    %c0_i32_0 = arith.constant 0 : i32
    %c0_i32_1 = arith.constant 0 : i32
    return %c0_i32, %c0_i32_0 : i32, i32
  }
  func.func @transform_5(%arg0: i32) -> (i32, i32) {
    %c0_i32 = arith.constant 0 : i32
    %c0_i32_0 = arith.constant 0 : i32
    %c0_i32_1 = arith.constant 0 : i32
    return %c0_i32, %c0_i32_0 : i32, i32
  }
  func.func @transform_6(%arg0: i32) -> (i32, i32) {
    %c0_i32 = arith.constant 0 : i32
    %c0_i32_0 = arith.constant 0 : i32
    %c0_i32_1 = arith.constant 0 : i32
    return %c0_i32, %c0_i32_0 : i32, i32
  }
  func.func @transform_7(%arg0: i32) -> (i32, i32) {
    %c0_i32 = arith.constant 0 : i32
    %c0_i32_0 = arith.constant 0 : i32
    %c0_i32_1 = arith.constant 0 : i32
    return %c0_i32, %c0_i32_0 : i32, i32
  }
  func.func @transform_8(%arg0: i32) -> (i32, i32) {
    %c0_i32 = arith.constant 0 : i32
    %c0_i32_0 = arith.constant 0 : i32
    %c0_i32_1 = arith.constant 0 : i32
    return %c0_i32, %c0_i32_0 : i32, i32
  }
  func.func @transform_9(%arg0: i32) -> (i32, i32) {
    %c0_i32 = arith.constant 0 : i32
    %c0_i32_0 = arith.constant 0 : i32
    %c0_i32_1 = arith.constant 0 : i32
    return %c0_i32, %c0_i32_0 : i32, i32
  }
  func.func @transform_10(%arg0: i32) -> (i32, i32) {
    %c0_i32 = arith.constant 0 : i32
    %c0_i32_0 = arith.constant 0 : i32
    %c0_i32_1 = arith.constant 0 : i32
    return %c0_i32, %c0_i32_0 : i32, i32
  }
  func.func @transform_11(%arg0: i32) -> (i32, i32) {
    %c0_i32 = arith.constant 0 : i32
    %c0_i32_0 = arith.constant 0 : i32
    %c0_i32_1 = arith.constant 0 : i32
    return %c0_i32, %c0_i32_0 : i32, i32
  }
  func.func @transform_12(%arg0: i32) -> (i32, i32) {
    %c0_i32 = arith.constant 0 : i32
    %c0_i32_0 = arith.constant 0 : i32
    %c0_i32_1 = arith.constant 0 : i32
    return %c0_i32, %c0_i32_0 : i32, i32
  }
  func.func @transform_13(%arg0: i32) -> (i32, i32) {
    %c0_i32 = arith.constant 0 : i32
    %c0_i32_0 = arith.constant 0 : i32
    %c0_i32_1 = arith.constant 0 : i32
    return %c0_i32, %c0_i32_0 : i32, i32
  }
  func.func @transform_14(%arg0: i32) -> (i32, i32) {
    %c0_i32 = arith.constant 0 : i32
    %c0_i32_0 = arith.constant 0 : i32
    %c0_i32_1 = arith.constant 0 : i32
    return %c0_i32, %c0_i32_0 : i32, i32
  }
  func.func @transform_15(%arg0: i32) -> (i32, i32) {
    %c0_i32 = arith.constant 0 : i32
    %c0_i32_0 = arith.constant 0 : i32
    %c0_i32_1 = arith.constant 0 : i32
    return %c0_i32, %c0_i32_0 : i32, i32
  }
  func.func @transform_16(%arg0: i32) -> (i32, i32) {
    %c0_i32 = arith.constant 0 : i32
    %c0_i32_0 = arith.constant 0 : i32
    %c0_i32_1 = arith.constant 0 : i32
    return %c0_i32, %c0_i32_0 : i32, i32
  }
  func.func @transform_17(%arg0: i32) -> (i32, i32) {
    %c0_i32 = arith.constant 0 : i32
    %c0_i32_0 = arith.constant 0 : i32
    %c0_i32_1 = arith.constant 0 : i32
    return %c0_i32, %c0_i32_0 : i32, i32
  }
  func.func @transform_18(%arg0: i32) -> (i32, i32, i32) {
    %c0_i32 = arith.constant 0 : i32
    %c0_i32_0 = arith.constant 0 : i32
    %c0_i32_1 = arith.constant 0 : i32
    return %arg0, %c0_i32, %c0_i32_0 : i32, i32, i32
  }
}

</mosaic_0001>

<bundles_post_ra>
// kernel: model_forward.1
= control target key start
LH: loop header
LB: loop body
LE: loop exit
PB: predicated region body
PF: predicated region fallthrough
CT: control target
= control target key end

     0   :  { %s7472_s27 = smov 0   ;;  %s8993_s0 = inlined_call_operand.vmem [shape: f32[2,1,512], index: 0, kind: input, shape index: {}]   ;;  %s8994_s1 = inlined_call_operand.vmem [shape: f32[1,512], index: 1, kind: input, shape index: {}]   ;;  %s8995_s2 = inlined_call_operand.vmem [shape: f32[2,512], index: 2, kind: input, shape index: {}]   ;;  %s8996_s3 = inlined_call_operand.vmem [shape: f32[2,512], index: 3, kind: input, shape index: {}]   ;;  %s8997_s4 = inlined_call_operand.vmem [shape: bf16[8,9], index: 4, kind: input, shape index: {}]   ;;  %s8998_s5 = inlined_call_operand.vmem [shape: bf16[8,72], index: 5, kind: input, shape index: {}]   ;;  %s8999_s6 = inlined_call_operand.vmem [shape: bf16[8,72], index: 6, kind: input, shape index: {}]   ;;  %s9000_s7 = inlined_call_operand.vmem [shape: bf16[2,32], index: 7, kind: input, shape index: {}]   ;;  %s9001_s8 = inlined_call_operand.vmem [shape: bf16[8,2], index: 8, kind: input, shape index: {}]   ;;  %s9002_s9 = inlined_call_operand.vmem [shape: bf16[4,32], index: 9, kind: input, shape index: {}]   ;;  %s9003_s10 = inlined_call_operand.vmem [shape: bf16[8,4], index: 10, kind: input, shape index: {}]   ;;  %s9004_s11 = inlined_call_operand.vmem [shape: bf16[8,18], index: 11, kind: input, shape index: {}]   ;;  %s9005_s12 = inlined_call_operand.vmem [shape: bf16[8,72], index: 12, kind: input, shape index: {}]   ;;  %s9006_s13 = inlined_call_operand.vmem [shape: bf16[8,72], index: 13, kind: input, shape index: {}]   ;;  %s9007_s14 = inlined_call_operand.vmem [shape: bf16[8,72], index: 14, kind: input, shape index: {}]   ;;  %s9008_s15 = inlined_call_operand.vmem [shape: bf16[8,72], index: 15, kind: input, shape index: {}]   ;;  %s9009_s16 = inlined_call_operand.vmem [shape: f32[8,1], index: 16, kind: input, shape index: {}]   ;;  %s9010_s17 = inlined_call_operand.vmem [shape: bf16[1,8], index: 17, kind: input, shape index: {}]   ;;  %s9011_s18 = inlined_call_operand.vmem [shape: f32[2,1,512], index: 18, kind: output, shape index: {}]  }
   0x1   :  { %9026 = sst [smem:[#allocation3_spill]] %s8993_s0 }
   0x2   :  { %9027 = sst [smem:[#allocation4_spill]] %s8994_s1 }
   0x3   :  { %9028 = sst [smem:[#allocation5_spill]] %s8995_s2 }
   0x4 LB: > { %s6039_s28 = sadd.s32 4294967295, %s7355_s27   ;;  %p6043_p0 = scmp.ge.s32.totalorder %s7355_s27, 1  ;;  %s7355_s27 = sphi %s7472_s27, %s28_s27  }
   0x5   : > { %p511_p1 = scmp.lt.s32.totalorder %s7355_s27, 3 }
   0x7   : > { %p512_p2 = pnand %p6043_p0, %p511_p1 }
   0x8   : > { %p563_p3 = scmp.lt.s32.totalorder (!%p512_p2), %s6039_s28, 1  ;;  %v577_v0 = vlaneseq (!%p512_p2)  ;;  %s9029_s19 = sld [smem:[#allocation3_spill]] (!%p512_p2)  ;;  %vm797_vm0 = vcmask (!%p512_p2), 1042434   ;;  %vm798_vm1 = vsmask.f32 (!%p512_p2), 2304  ;;  %vm800_vm2 = vcmask (!%p512_p2), 1046534  }
   0x9   : > { %515 = sbr.rel (%p512_p2) target bundleno = 3947 (0xf6b), region = 92  ;;  %s7357_s20 = smov (!%p512_p2), 90   ;;  %vm801_vm3 = vsmask.f32 (!%p512_p2), 6400  ;;  %vm7510_vm4 = vmand (!%p512_p2), %vm797_vm0, %vm798_vm1  ;;  %v804_v18 = vld [vmem:[#allocation2] sm:$0x44] (!%p512_p2) }
   0xa   : > { %v7483_v1 = vshrl.u32 (!%p512_p2), %v577_v0, 7  ;;  %s7358_s21 = smov (!%p512_p2), 38   ;;  %s7359_s22 = smov (!%p512_p2), 42   ;;  %vm802_vm5 = vmand (!%p512_p2), %vm800_vm2, %vm801_vm3  ;;  %v807_v19 = vld [vmem:[#allocation2 + $0x8] sm:$0x44] (!%p512_p2)  ;;  %v7365_v24 = vmov (!%p512_p2), 0  }
   0xb   : > { %vm803_vm6 = vmor (!%p512_p2), %vm802_vm5, %vm7510_vm4  ;;  %vm847_vm7 = vsmask.f32 (!%p512_p2), 7946  ;;  %vm849_vm8 = vsmask.f32 (!%p512_p2), 7962  ;;  %s7360_s2 = smov (!%p512_p2), 2   ;;  %s7361_s23 = smov (!%p512_p2), 126   ;;  %1058 = vmatprep.mubr.bf16.mxu0 (!%p512_p2), %v7365_v24  ;;  %1099 = vmatprep.mubr.bf16.mxu1 (!%p512_p2), %v7365_v24 }
   0xc   : > { %v7487_v2 = vsub.s32 (!%p512_p2), 0, %v7483_v1  ;;  %v583_v3 = vsub.s32 (!%p512_p2), 1, %v7483_v1  ;;  %v7491_v4 = vsub.s32 (!%p512_p2), 2, %v7483_v1  ;;  %v591_v5 = vsub.s32 (!%p512_p2), 3, %v7483_v1  ;;  %vm7522_vm9 = vmand (!%p512_p2), %vm797_vm0, %vm847_vm7  ;;  %s7362_s24 = smov (!%p512_p2), 88   ;;  %s7363_s25 = smov (!%p512_p2), 40   ;;  %7200 = vset.pattern.permute.xlu0 (!%p512_p2), %v7365_v24 }
   0xd   : > { %vm7527_vm10 = vmand (!%p512_p2), %vm800_vm2, %vm849_vm8  ;;  %s7364_s26 = smov (!%p512_p2), 86   ;;  %v7547_v25 = vand.u32 (!%p512_p2), 127, %v577_v0  ;;  %vm9012_vm12 = vcmask (!%p512_p2), 1043459   ;;  %vm890_vm13 = vsmask.f32 (!%p512_p2), 3328  ;;  %vm9013_vm14 = vcmask (!%p512_p2), 1047559  }
   0xe   : > { %vm893_vm15 = vsmask.f32 (!%p512_p2), 7424  ;;  %vm7552_vm2 = vmand (!%p512_p2), %vm9012_vm12, %vm890_vm13  ;;  %vm719_vm5 = vsmask.f32 (!%p512_p2), 1280  ;;  %vm722_vm7 = vsmask.f32 (!%p512_p2), 5376 }
   0xf   : > { %vm9014_vm0 = vcmp.lt.s32.totalorder (!%p512_p2), %v7547_v25, 90  ;;  %vm7557_vm4 = vmand (!%p512_p2), %vm9013_vm14, %vm893_vm15  ;;  %vm9015_vm13 = vcmask (!%p512_p2), 1040384   ;;  %vm629_vm11 = vsmask.f32 (!%p512_p2), 256  ;;  %vm9040_vm15 = vcmp.lt.s32.totalorder (!%p512_p2), %v7547_v25, 38  ;;  %s7370_s30 = smov (!%p512_p2), 1  }
  0x10   : > { %s9176_s28 = smov (!%p563_p3, %s6039_s28), 1  ;;  %vm895_vm1 = vmor %vm7557_vm4, %vm7552_vm2  ;;  %vm9041_vm14 = vcmask 1041409   ;;  %vm739_vm12 = vcmp.lt.s32.totalorder %v7547_v25, 2  ;;  %v896_v55 = vld [vmem:[#allocation2] sm:$0x88]  ;;  %vm910_vm2 = vcmp.lt.s32.totalorder %v7547_v25, 88 }
  0x11   : > { %s9016_s29 = sshll.u32 %s9176_s28, 2  ;;  %vm7572_vm8 = vmand %vm9041_vm14, %vm719_vm5  ;;  %vm9046_vm14 = vcmp.lt.s32.totalorder %v7547_v25, 38  ;;  %v899_v56 = vld [vmem:[#allocation2 + $0x8] sm:$0x88]  ;;  %v725_v63 = vld [vmem:[#allocation2] sm:$0x22] }
  0x12   : > { %s566_s1 = scalar_lea.vmem %s9029_s19, %s9016_s29  ;;  %vm9047_vm5 = vmmov %vm9046_vm14  ;;  %v638_v15 = vld [vmem:[#allocation2 + $0x8] sm:$0x11]  ;;  %vm9058_vm4 = vsmask.f32 7942  ;;  %s9078_s29 = sld [smem:[#allocation4_spill]] }
  0x13   : > { %v575_v6 = vld [vmem:[%s566_s1] sm:$0xf]  ;;  %vm9048_vm3 = vmmov %vm9047_vm5  ;;  %s9019_s19 = smov 108   ;;  %s9017_s1 = smov 107  }
  0x14   : > { %v580_v7 = vrot.slane %v575_v6, %v7487_v2  ;;  %v584_v8 = vrot.slane %v575_v6, %v583_v3  ;;  %v588_v9 = vrot.slane %v575_v6, %v7491_v4  ;;  %v592_v10 = vrot.slane %v575_v6, %v591_v5  ;;  %v728_v6 = vld [vmem:[#allocation2 + $0x8] sm:$0x22]  ;;  %s7371_s0 = smov 20  }
  0x16   : > { %v6600_v11 = vpack.i.bf16 %v584_v8, %v580_v7  ;;  %v6605_v12 = vpack.i.bf16 %v592_v10, %v588_v9  ;;  %v6427_v13 = vpack.c.bf16 %v592_v10, %v588_v9  ;;  %v6426_v14 = vpack.c.bf16 %v584_v8, %v580_v7 }
  0x18   : > { %6601 = vrot.lane.b32.xlu1 %v6600_v11, %s7357_s20  ;;  %6591 = vrot.lane.b32.xlu0 %v6600_v11, %s7358_s21  ;;  %v794_v16 = vrot.slane %v6427_v13, 6  ;;  %v793_v17 = vrot.slane %v6426_v14, 6  ;;  %v985_v14 = vld [vmem:[%s8997_s4] sm:$0xf] }
  0x1a   : > { %v808_v20 = vsel %vm803_vm6, %v794_v16, %v807_v19  ;;  %v805_v22 = vsel %vm803_vm6, %v793_v17, %v804_v18  ;;  %vm721_vm6 = vcmask 1045509  }
  0x1b   : > { %809 = vst [vmem:[#allocation2 + $0x8] sm:$0x44] %v808_v20  ;;  %806 = vst [vmem:[#allocation2] sm:$0x44] %v805_v22 }
  0x1c   : > { %6606 = vrot.lane.b32.xlu1 %v6605_v12, %s7357_s20  ;;  %6596 = vrot.lane.b32.xlu0 %v6605_v12, %s7358_s21 }
  0x20   : > { %6616 = vrot.lane.b32.xlu1 %v6605_v12, %s7359_s22  ;;  %6611 = vrot.lane.b32.xlu0 %v6600_v11, %s7359_s22 }
  0x24   : > { %6626 = vrot.lane.b32.xlu1 %v6605_v12, %s7360_s2  ;;  %6621 = vrot.lane.b32.xlu0 %v6600_v11, %s7360_s2 }
  0x28   : > { %6636 = vrot.lane.b32.xlu1 %v6605_v12, %s7361_s23  ;;  %6631 = vrot.lane.b32.xlu0 %v6600_v11, %s7361_s23 }
  0x2c   : > { %6646 = vrot.lane.b32.xlu1 %v6605_v12, %s7362_s24  ;;  %6641 = vrot.lane.b32.xlu0 %v6600_v11, %s7362_s24 }
  0x30   : > { %6656 = vrot.lane.b32.xlu1 %v6605_v12, %s7363_s25  ;;  %6651 = vrot.lane.b32.xlu0 %v6600_v11, %s7363_s25 }
  0x34   : > { %6666 = vrot.lane.b32.xlu1 %v6605_v12, %s7364_s26  ;;  %6661 = vrot.lane.b32.xlu0 %v6600_v11, %s7364_s26 }
  0x8a   : > { %v6602_v26 = vpop.permute.xlu1 %6601  ;;  %v6592_v27 = vpop.permute.xlu0 %6591 }
  0x8b   : > { %v6604_v29 = vunpack.i.h.bf16 %v6602_v26  ;;  %v6603_v30 = vunpack.i.l.bf16 %v6602_v26  ;;  %v6594_v31 = vunpack.i.h.bf16 %v6592_v27  ;;  %v6593_v32 = vunpack.i.l.bf16 %v6592_v27  ;;  %v635_v26 = vld [vmem:[#allocation2] sm:$0x11] }
  0x8d   : > { %v869_v40 = vsel %vm9014_vm0, %v6603_v30, %v6604_v29  ;;  %v698_v41 = vsel %vm9040_vm15, %v6593_v32, %v6594_v31  ;;  %vm7585_vm15 = vmand %vm721_vm6, %vm722_vm7  ;;  %vm9051_vm7 = vsmask.f32 4352 }
  0x8e   : > { %v6607_v34 = vpop.permute.xlu1 %6606  ;;  %v6597_v35 = vpop.permute.xlu0 %6596 }
  0x8f   : > { %v6609_v36 = vunpack.i.h.bf16 %v6607_v34  ;;  %v6608_v37 = vunpack.i.l.bf16 %v6607_v34  ;;  %v6599_v38 = vunpack.i.h.bf16 %v6597_v35  ;;  %v6598_v39 = vunpack.i.l.bf16 %v6597_v35 }
  0x91   : > { %v867_v43 = vsel %vm9014_vm0, %v6608_v37, %v6609_v36  ;;  %v868_v44 = vsel %vm9014_vm0, %v6604_v29, %v6608_v37  ;;  %v870_v45 = vsel %vm9014_vm0, %v6609_v36, %v6603_v30  ;;  %v696_v47 = vsel %vm9046_vm14, %v6598_v39, %v6599_v38  ;;  %vm7597_vm0 = vmand %vm9015_vm13, %vm629_vm11 }
  0x92   : > { %v6430_v48 = vpack.c.bf16 %v868_v44, %v869_v40  ;;  %v6431_v49 = vpack.c.bf16 %v870_v45, %v867_v43  ;;  %v697_v50 = vsel %vm9047_vm5, %v6594_v31, %v6598_v39  ;;  %v699_v51 = vsel %vm9048_vm3, %v6599_v38, %v6593_v32  ;;  %v6617_v52 = vpop.permute.xlu1 %6616  ;;  %v6612_v54 = vpop.permute.xlu0 %6611  ;;  %vm724_vm11 = vmor %vm7585_vm15, %vm7572_vm8 }
  0x93   : > { %v6422_v57 = vpack.c.bf16 %v698_v41, %v699_v51  ;;  %v6423_v58 = vpack.c.bf16 %v696_v47, %v697_v50  ;;  %v6619_v59 = vunpack.i.h.bf16 %v6617_v52  ;;  %v6618_v60 = vunpack.i.l.bf16 %v6617_v52 }
  0x94   : > { %vm9052_vm14 = vcmask 1044484   ;;  %v885_v61 = vrot.slane %v6430_v48, 5  ;;  %v886_v62 = vrot.slane %v6431_v49, 5  ;;  %v6614_v7 = vunpack.i.h.bf16 %v6612_v54 }
  0x95   : > { %vm633_vm5 = vmand %vm9052_vm14, %vm9051_vm7  ;;  %v6613_v8 = vunpack.i.l.bf16 %v6612_v54  ;;  %v714_v9 = vrot.slane %v6422_v57, 7  ;;  %v715_v10 = vrot.slane %v6423_v58, 7  ;;  %vm9053_vm3 = vcmp.lt.s32.totalorder %v7547_v25, 42 }
  0x96   : > { %v608_v11 = vsel %vm9053_vm3, %v6618_v60, %v6619_v59  ;;  %vm770_vm13 = vsmask.f32 7958  ;;  %v897_v12 = vsel %vm895_vm1, %v885_v61, %v896_v55  ;;  %v900_v13 = vsel %vm895_vm1, %v886_v62, %v899_v56  ;;  %vm7621_vm7 = vmor %vm633_vm5, %vm7597_vm0  ;;  %v6627_v18 = vpop.permute.xlu1 %6626  ;;  %v6622_v19 = vpop.permute.xlu0 %6621 }
  0x97   : > { %vm9056_vm14 = vmmov %vm9053_vm3  ;;  %v610_v17 = vsel %vm9053_vm3, %v6613_v8, %v6614_v7  ;;  %898 = vst [vmem:[#allocation2] sm:$0x88] %v897_v12  ;;  %v726_v20 = vsel %vm724_vm11, %v714_v9, %v725_v63  ;;  %v729_v22 = vsel %vm724_vm11, %v715_v10, %v728_v6  ;;  %v6629_v30 = vunpack.i.h.bf16 %v6627_v18 }
  0x98   : > { %v609_v16 = vsel %vm9056_vm14, %v6614_v7, %v6618_v60  ;;  %901 = vst [vmem:[#allocation2 + $0x8] sm:$0x88] %v900_v13  ;;  %vm9057_vm0 = vmmov %vm9053_vm3  ;;  %v6628_v31 = vunpack.i.l.bf16 %v6627_v18  ;;  %v6624_v32 = vunpack.i.h.bf16 %v6622_v19  ;;  %v6623_v34 = vunpack.i.l.bf16 %v6622_v19 }
  0x99   : > { %v6419_v27 = vpack.c.bf16 %v608_v11, %v609_v16  ;;  %v611_v28 = vsel %vm9057_vm0, %v6619_v59, %v6613_v8  ;;  %727 = vst [vmem:[#allocation2] sm:$0x22] %v726_v20  ;;  %730 = vst [vmem:[#allocation2 + $0x8] sm:$0x22] %v729_v22  ;;  %vm818_vm1 = vcmp.lt.s32.totalorder %v7547_v25, 126  ;;  %vm9059_vm8 = vcmask 1041409  }
  0x9a   : > { %v6418_v29 = vpack.c.bf16 %v610_v17, %v611_v28  ;;  %v740_v36 = vsel %vm739_vm12, %v6628_v31, %v6629_v30  ;;  %vm7651_vm15 = vmand %vm9059_vm8, %vm9058_vm4  ;;  %v741_v38 = vsel %vm739_vm12, %v6624_v32, %v6628_v31  ;;  %v6637_v39 = vpop.permute.xlu1 %6636  ;;  %v6632_v40 = vpop.permute.xlu0 %6631  ;;  %vm939_vm5 = vsmask.f32 7950  ;;  %v855_v20 = vld [vmem:[#allocation2 + $0x8] sm:$0x44] }
  0x9b   : > { %v639_v33 = vsel %vm7621_vm7, %v6419_v27, %v638_v15  ;;  %vm7659_vm11 = vmand %vm721_vm6, %vm770_vm13  ;;  %v6425_v42 = vpack.c.bf16 %v740_v36, %v741_v38  ;;  %v742_v43 = vsel %vm739_vm12, %v6623_v34, %v6624_v32  ;;  %v743_v44 = vsel %vm739_vm12, %v6629_v30, %v6623_v34  ;;  %v852_v15 = vld [vmem:[#allocation2] sm:$0x44] }
  0x9c   : > { %640 = vst [vmem:[#allocation2 + $0x8] sm:$0x11] %v639_v33  ;;  %v636_v35 = vsel %vm7621_vm7, %v6418_v29, %v635_v26  ;;  %v6639_v45 = vunpack.i.h.bf16 %v6637_v39  ;;  %v6424_v46 = vpack.c.bf16 %v742_v43, %v743_v44  ;;  %v6638_v47 = vunpack.i.l.bf16 %v6637_v39  ;;  %vm772_vm13 = vmor %vm7659_vm11, %vm7651_vm15 }
  0x9d   : > { %637 = vst [vmem:[#allocation2] sm:$0x11] %v636_v35  ;;  %v6634_v48 = vunpack.i.h.bf16 %v6632_v40  ;;  %v6633_v49 = vunpack.i.l.bf16 %v6632_v40  ;;  %v763_v50 = vshll.u32 %v6425_v42, 16  ;;  %vm941_vm14 = vsmask.f32 7966 }
  0x9e   : > { %vm649_vm3 = vcmp.lt.s32.totalorder %v7547_v25, 40  ;;  %vm676_vm6 = vsmask.f32 7938  ;;  %v759_v51 = vshll.u32 %v6424_v46, 16  ;;  %v819_v52 = vsel %vm818_vm1, %v6638_v47, %v6639_v45  ;;  %v6647_v55 = vpop.permute.xlu1 %6646  ;;  %v6642_v56 = vpop.permute.xlu0 %6641 }
  0x9f   : > { %v820_v53 = vsel %vm818_vm1, %v6634_v48, %v6638_v47  ;;  %v821_v54 = vsel %vm818_vm1, %v6633_v49, %v6634_v48  ;;  %v765_v59 = vrot.slane %v763_v50, 7  ;;  %v822_v60 = vsel %vm818_vm1, %v6639_v45, %v6633_v49 }
  0xa0   : > { %v773_v57 = vld [vmem:[#allocation2] sm:$0x22]  ;;  %v776_v58 = vld [vmem:[#allocation2 + $0x8] sm:$0x22]  ;;  %v6428_v61 = vpack.c.bf16 %v820_v53, %v821_v54  ;;  %v6649_v62 = vunpack.i.h.bf16 %v6647_v55  ;;  %v761_v63 = vrot.slane %v759_v51, 7  ;;  %v6429_v6 = vpack.c.bf16 %v822_v60, %v819_v52 }
  0xa1   : > { %v6648_v7 = vunpack.i.l.bf16 %v6647_v55  ;;  %v6644_v8 = vunpack.i.h.bf16 %v6642_v56  ;;  %v777_v9 = vsel %vm772_vm13, %v765_v59, %v776_v58  ;;  %v6643_v11 = vunpack.i.l.bf16 %v6642_v56  ;;  %v944_v52 = vld [vmem:[#allocation2] sm:$0x88]  ;;  %v947_v53 = vld [vmem:[#allocation2 + $0x8] sm:$0x88] }
  0xa2   : > { %v838_v10 = vshll.u32 %v6428_v61, 16  ;;  %vm678_vm0 = vsmask.f32 7954  ;;  %v774_v12 = vsel %vm772_vm13, %v761_v63, %v773_v57  ;;  %778 = vst [vmem:[#allocation2 + $0x8] sm:$0x22] %v777_v9  ;;  %v842_v13 = vshll.u32 %v6429_v6, 16  ;;  %v6657_v18 = vpop.permute.xlu1 %6656  ;;  %v6652_v19 = vpop.permute.xlu0 %6651 }
  0xa3   : > { %v911_v16 = vsel %vm910_vm2, %v6648_v7, %v6649_v62  ;;  %v912_v17 = vsel %vm910_vm2, %v6644_v8, %v6648_v7  ;;  %775 = vst [vmem:[#allocation2] sm:$0x22] %v774_v12  ;;  %vm9064_vm4 = vcmask 1043459   ;;  %v913_v27 = vsel %vm910_vm2, %v6643_v11, %v6644_v8  ;;  %v979_v61 = vld [vmem:[#allocation2 + $0x10] sm:$0x11] }
  0xa4   : > { %v840_v22 = vrot.slane %v838_v10, 6  ;;  %vm7696_vm8 = vmand %vm9064_vm4, %vm939_vm5  ;;  %v914_v28 = vsel %vm910_vm2, %v6649_v62, %v6643_v11  ;;  %v6659_v29 = vunpack.i.h.bf16 %v6657_v18  ;;  %v844_v30 = vrot.slane %v842_v13, 6  ;;  %v684_v62 = vld [vmem:[#allocation2 + $0x8] sm:$0x11]  ;;  %v681_v63 = vld [vmem:[#allocation2] sm:$0x11] }
  0xa5   : > { %vm9067_vm15 = vcmask 1047559   ;;  %v6432_v32 = vpack.c.bf16 %v912_v17, %v913_v27  ;;  %v6433_v33 = vpack.c.bf16 %v914_v28, %v911_v16  ;;  %v6658_v34 = vunpack.i.l.bf16 %v6657_v18  ;;  %vm9070_vm5 = vmor %vm7527_vm10, %vm7522_vm9  ;;  %v982_v7 = vld [vmem:[#allocation2 + $0x18] sm:$0x11] }
  0xa6   : > { %vm7706_vm11 = vmand %vm9067_vm15, %vm941_vm14  ;;  %v853_v35 = vsel %vm9070_vm5, %v840_v22, %v852_v15  ;;  %vm9071_vm13 = vcmask 1040384   ;;  %v6654_v37 = vunpack.i.h.bf16 %v6652_v19  ;;  %v6653_v38 = vunpack.i.l.bf16 %v6652_v19  ;;  %v6667_v44 = vpop.permute.xlu1 %6666  ;;  %v6662_v45 = vpop.permute.xlu0 %6661 }
  0xa7   : > { %vm7717_vm4 = vmand %vm9071_vm13, %vm676_vm6  ;;  %vm958_vm14 = vcmp.lt.s32.totalorder %v7547_v25, 86  ;;  %854 = vst [vmem:[#allocation2] sm:$0x44] %v853_v35  ;;  %v930_v40 = vshll.u32 %v6432_v32, 16  ;;  %v934_v41 = vshll.u32 %v6433_v33, 16  ;;  %v650_v42 = vsel %vm649_vm3, %v6658_v34, %v6659_v29 }
  0xa8   : > { %vm9074_vm15 = vmmov %vm9070_vm5  ;;  %vm9075_vm6 = vcmask 1044484   ;;  %v651_v21 = vsel %vm649_vm3, %v6654_v37, %v6658_v34  ;;  %v652_v23 = vsel %vm649_vm3, %v6653_v38, %v6654_v37  ;;  %v653_v46 = vsel %vm649_vm3, %v6659_v29, %v6653_v38  ;;  %v572_v33 = vld [vmem:[%s9078_s29] sm:$0xf]  ;;  %s9023_s29 = smov 127  }
  0xa9   : > { %v856_v39 = vsel %vm9074_vm15, %v844_v30, %v855_v20  ;;  %vm7731_vm5 = vmand %vm9075_vm6, %vm678_vm0  ;;  %v6669_v47 = vunpack.i.h.bf16 %v6667_v44  ;;  %v932_v48 = vrot.slane %v930_v40, 5  ;;  %v936_v49 = vrot.slane %v934_v41, 5 }
  0xaa   : > { %857 = vst [vmem:[#allocation2 + $0x8] sm:$0x44] %v856_v39  ;;  %vm943_vm9 = vmor %vm7706_vm11, %vm7696_vm8  ;;  %v6421_v50 = vpack.c.bf16 %v650_v42, %v651_v21  ;;  %v6420_v51 = vpack.c.bf16 %v652_v23, %v653_v46  ;;  %v6668_v54 = vunpack.i.l.bf16 %v6667_v44  ;;  %v6664_v55 = vunpack.i.h.bf16 %v6662_v45 }
  0xab   : > { %vm680_vm10 = vmor %vm7731_vm5, %vm7717_vm4  ;;  %v6663_v56 = vunpack.i.l.bf16 %v6662_v45  ;;  %v945_v57 = vsel %vm943_vm9, %v932_v48, %v944_v52  ;;  %v948_v58 = vsel %vm943_vm9, %v936_v49, %v947_v53  ;;  %vm1010_vm0 = vcmask 1043456  }
  0xac   : > { %v672_v59 = vshll.u32 %v6421_v50, 16  ;;  %v669_v60 = vshll.u32 %v6420_v51, 16  ;;  %946 = vst [vmem:[#allocation2] sm:$0x88] %v945_v57  ;;  %949 = vst [vmem:[#allocation2 + $0x8] sm:$0x88] %v948_v58  ;;  %v959_v6 = vsel %vm958_vm14, %v6668_v54, %v6669_v47  ;;  %v960_v8 = vsel %vm958_vm14, %v6664_v55, %v6668_v54 }
  0xad   : > { %v961_v9 = vsel %vm958_vm14, %v6663_v56, %v6664_v55  ;;  %v962_v10 = vsel %vm958_vm14, %v6669_v47, %v6663_v56  ;;  %vm1011_vm8 = vcmask 1044480   ;;  %v7366_v18 = vmov 65535  }
  0xae   : > { %v682_v11 = vsel %vm680_vm10, %v669_v60, %v681_v63  ;;  %v685_v12 = vsel %vm680_vm10, %v672_v59, %v684_v62  ;;  %v6434_v13 = vpack.c.bf16 %v960_v8, %v961_v9  ;;  %v6435_v15 = vpack.c.bf16 %v962_v10, %v959_v6 }
  0xaf   : > { %683 = vst [vmem:[#allocation2] sm:$0x11] %v682_v11  ;;  %686 = vst [vmem:[#allocation2 + $0x8] sm:$0x11] %v685_v12  ;;  %v1012_v19 = vsel %vm1010_vm0, 4294967295, %v7366_v18  ;;  %v7791_v34 = vrot.slane %v572_v33, %v7487_v2  ;;  %v7794_v35 = vrot.slane %v572_v33, %v7491_v4  ;;  %v7798_v36 = vrot.slane %v572_v33, %v583_v3 }
  0xb0   : > { %v980_v16 = vsel %vm7621_vm7, %v6434_v13, %v979_v61  ;;  %v983_v17 = vsel %vm7621_vm7, %v6435_v15, %v982_v7  ;;  %v1013_v20 = vsel %vm1011_vm8, %v1012_v19, 0  ;;  %vm1006_vm7 = vcmask 72704  }
  0xb1   : > { %981 = vst [vmem:[#allocation2 + $0x10] sm:$0x11] %v980_v16  ;;  %984 = vst [vmem:[#allocation2 + $0x18] sm:$0x11] %v983_v17  ;;  %v7802_v37 = vrot.slane %v572_v33, %v591_v5  ;;  %vm9079_vm11 = vcmp.lt.s32.totalorder %v7547_v25, 42  ;;  %vm9083_vm6 = vcmp.lt.s32.totalorder %v7547_v25, 38 }
  0xb2   : > { %vm9080_vm13 = vmmov %vm9079_vm11  ;;  %vm9087_vm8 = vcmp.lt.s32.totalorder %v7547_v25, 90 }
  0xb3   : > { %vm9081_vm4 = vmmov %vm9079_vm11 }
  0xb4   : > { %vm9082_vm15 = vmmov %vm9081_vm4 }
  0xb5   : > { %vm9084_vm5 = vmmov %vm9083_vm6 }
  0xb6   : > { %vm9085_vm9 = vmmov %vm9084_vm5 }
  0xb7   : > { %vm9086_vm10 = vmmov %vm9084_vm5 }
  0xb8   : > { %v7201_v22 = vld [vmem:[#allocation2 + $0x4] ss:$16 sps:$4 sm:$0x1f]   ;;  %v7203_v26 = vld [vmem:[#allocation2 + $0xc] ss:$16 sps:$4 sm:$0x1f]  }
  0xb9   : > { %v1018_v27 = vand.u32 %v7201_v22, %v1013_v20  ;;  %v7205_v28 = vld [vmem:[#allocation2] ss:$16 sps:$4 sm:$0x1f]   ;;  %v7206_v29 = vld [vmem:[#allocation2 + $0x8] ss:$16 sps:$4 sm:$0x1f]   ;;  %v1024_v30 = vand.u32 %v7203_v26, %v1013_v20 }
  0xba   : > { %v1015_v31 = vand.u32 %v7205_v28, %v1013_v20  ;;  %v1021_v32 = vand.u32 %v7206_v29, %v1013_v20 }
  0xbb   : > { %1026 = vmatprep.subr.bf16.mxu0 %v1018_v27  ;;  %1067 = vmatprep.subr.bf16.mxu1 %v1024_v30 }
  0xbc   : > { %1027 = vmatpush1.bf16.msra.mxu0 %v1015_v31  ;;  %1068 = vmatpush1.bf16.msra.mxu1 %v1021_v32 }
  0xbf   : > { %6068 = vmatmul.mubr.msk.bf16.vlgmr.msra.gmra.mrb[0].mxu0 %vm1006_vm7, %v985_v14  ;;  %6069 = vmatmul.mubr.msk.bf16.vlgmr.msra.gmra.mrb[0].mxu1 %vm1006_vm7, %v985_v14  ;;  %vm9088_vm7 = vmmov %vm9087_vm8 }
  0xc0   : > { %1548 = vmatprep.mubr.bf16.mxu0 %v7365_v24  ;;  %1589 = vmatprep.mubr.bf16.mxu1 %v7365_v24 }
 0x192   : > { %v1060_v38 = vpop.f32.mrb[0].mxu0  ;;  %v1101_v39 = vpop.f32.mrb[0].mxu1 }
 0x193   : > { %v7805_v40 = vmul.f32 %v7791_v34, %v1060_v38  ;;  %v7808_v41 = vmul.f32 %v7794_v35, %v1101_v39  ;;  %v1062_v42 = vpop.f32.mrb[1].mxu0  ;;  %v1103_v43 = vpop.f32.mrb[1].mxu1 }
 0x194   : > { %v7811_v44 = vmul.f32 %v7798_v36, %v1062_v42  ;;  %v7814_v3 = vmul.f32 %v7802_v37, %v1103_v43  ;;  %v1064_v45 = vpop.f32.mrb[2].mxu0  ;;  %v1105_v21 = vpop.f32.mrb[2].mxu1 }
 0x195   : > { %v1065_v5 = vpop.f32.mrb[3].mxu0  ;;  %v1106_v23 = vpop.f32.mrb[3].mxu1 }
 0x196   : > { %v7818_v46 = vpack.i.bf16 %v7814_v3, %v7808_v41  ;;  %v7822_v47 = vpack.i.bf16 %v7811_v44, %v7805_v40  ;;  %v6444_v48 = vpack.c.bf16 %v7811_v44, %v7805_v40  ;;  %v6445_v49 = vpack.c.bf16 %v7814_v3, %v7808_v41 }
 0x198   : > { %6676 = vrot.lane.b32.xlu1 %v7818_v46, %s7359_s22  ;;  %6671 = vrot.lane.b32.xlu0 %v7822_v47, %s7359_s22  ;;  %3264 = vst [vmem:[#allocation2 + $0x10] sm:$0xff] %v6444_v48  ;;  %3265 = vst [vmem:[#allocation2 + $0x18] sm:$0xff] %v6445_v49 }
 0x19c   : > { %6686 = vrot.lane.b32.xlu1 %v7818_v46, %s7363_s25  ;;  %6681 = vrot.lane.b32.xlu0 %v7822_v47, %s7363_s25 }
 0x1a0   : > { %6696 = vrot.lane.b32.xlu1 %v7818_v46, %s7358_s21  ;;  %6691 = vrot.lane.b32.xlu0 %v7822_v47, %s7358_s21 }
 0x1a4   : > { %6706 = vrot.lane.b32.xlu1 %v7818_v46, %s7360_s2  ;;  %6701 = vrot.lane.b32.xlu0 %v7822_v47, %s7360_s2 }
 0x1a8   : > { %6716 = vrot.lane.b32.xlu1 %v7818_v46, %s7361_s23  ;;  %6711 = vrot.lane.b32.xlu0 %v7822_v47, %s7361_s23 }
 0x1ac   : > { %6726 = vrot.lane.b32.xlu1 %v7818_v46, %s7357_s20  ;;  %6721 = vrot.lane.b32.xlu0 %v7822_v47, %s7357_s20 }
 0x1b0   : > { %6736 = vrot.lane.b32.xlu1 %v7818_v46, %s7362_s24  ;;  %6731 = vrot.lane.b32.xlu0 %v7822_v47, %s7362_s24 }
 0x1b4   : > { %6746 = vrot.lane.b32.xlu1 %v7818_v46, %s7364_s26  ;;  %6741 = vrot.lane.b32.xlu0 %v7822_v47, %s7364_s26 }
 0x1b8   : > { %6756 = vrot.lane.b32.xlu1 %v7818_v46, %s9023_s29  ;;  %6751 = vrot.lane.b32.xlu0 %v7822_v47, %s9023_s29  ;;  %s9107_s29 = sld [smem:[#allocation5_spill]] }
 0x20a   : > { %v6677_v50 = vpop.permute.xlu1 %6676  ;;  %v6672_v51 = vpop.permute.xlu0 %6671 }
 0x20b   : > { %v6679_v52 = vunpack.i.h.bf16 %v6677_v50  ;;  %v6678_v53 = vunpack.i.l.bf16 %v6677_v50  ;;  %v6674_v54 = vunpack.i.h.bf16 %v6672_v51  ;;  %v6673_v55 = vunpack.i.l.bf16 %v6672_v51 }
 0x20d   : > { %v1141_v56 = vsel %vm9079_vm11, %v6678_v53, %v6679_v52  ;;  %v1142_v57 = vsel %vm9080_vm13, %v6674_v54, %v6678_v53  ;;  %v1143_v58 = vsel %vm9081_vm4, %v6673_v55, %v6674_v54  ;;  %v1144_v59 = vsel %vm9082_vm15, %v6679_v52, %v6673_v55  ;;  %vm9089_vm11 = vmmov %vm9088_vm7 }
 0x20e   : > { %v6687_v60 = vpop.permute.xlu1 %6686  ;;  %v6682_v61 = vpop.permute.xlu0 %6681  ;;  %vm9090_vm13 = vmmov %vm9088_vm7  ;;  %vm9025_vm4 = vcmp.lt.s32.totalorder %v7547_v25, 127  ;;  %vm1500_vm15 = vcmask 588800  }
 0x20f   : > { %v6689_v62 = vunpack.i.h.bf16 %v6687_v60  ;;  %v6688_v63 = vunpack.i.l.bf16 %v6687_v60  ;;  %v6684_v6 = vunpack.i.h.bf16 %v6682_v61  ;;  %v6683_v7 = vunpack.i.l.bf16 %v6682_v61 }
 0x211   : > { %v1171_v8 = vsel %vm649_vm3, %v6688_v63, %v6689_v62  ;;  %v1172_v9 = vsel %vm649_vm3, %v6684_v6, %v6688_v63  ;;  %v1173_v10 = vsel %vm649_vm3, %v6683_v7, %v6684_v6  ;;  %v1174_v11 = vsel %vm649_vm3, %v6689_v62, %v6683_v7 }
 0x212   : > { %v6697_v12 = vpop.permute.xlu1 %6696  ;;  %v6692_v13 = vpop.permute.xlu0 %6691  ;;  %v7213_v19 = vpack.c.bf16 %v1173_v10, %v1143_v58  ;;  %v7214_v20 = vpack.c.bf16 %v1171_v8, %v1141_v56  ;;  %v7215_v22 = vpack.c.bf16 %v1174_v11, %v1144_v59  ;;  %v7216_v26 = vpack.c.bf16 %v1172_v9, %v1142_v57 }
 0x213   : > { %v6699_v15 = vunpack.i.h.bf16 %v6697_v12  ;;  %v6698_v16 = vunpack.i.l.bf16 %v6697_v12  ;;  %v6694_v17 = vunpack.i.h.bf16 %v6692_v13  ;;  %v6693_v18 = vunpack.i.l.bf16 %v6692_v13 }
 0x214   : > { %1516 = vmatprep.subr.bf16.mxu0 %v7213_v19  ;;  %1557 = vmatprep.subr.bf16.mxu1 %v7214_v20 }
 0x215   : > { %v1201_v27 = vsel %vm9083_vm6, %v6698_v16, %v6699_v15  ;;  %v1202_v28 = vsel %vm9084_vm5, %v6694_v17, %v6698_v16  ;;  %v1203_v29 = vsel %vm9085_vm9, %v6693_v18, %v6694_v17  ;;  %v1204_v30 = vsel %vm9086_vm10, %v6699_v15, %v6693_v18  ;;  %1517 = vmatpush1.bf16.msra.mxu0 %v7215_v22 }
 0x216   : > { %v6707_v31 = vpop.permute.xlu1 %6706  ;;  %v6702_v32 = vpop.permute.xlu0 %6701  ;;  %1558 = vmatpush1.bf16.msra.mxu1 %v7216_v26 }
 0x217   : > { %v6709_v14 = vunpack.i.h.bf16 %v6707_v31  ;;  %v6708_v33 = vunpack.i.l.bf16 %v6707_v31  ;;  %v6704_v38 = vunpack.i.h.bf16 %v6702_v32  ;;  %v6703_v39 = vunpack.i.l.bf16 %v6702_v32 }
 0x219   : > { %v1231_v42 = vsel %vm739_vm12, %v6708_v33, %v6709_v14  ;;  %v1232_v43 = vsel %vm739_vm12, %v6704_v38, %v6708_v33  ;;  %v1233_v45 = vsel %vm739_vm12, %v6703_v39, %v6704_v38  ;;  %v1234_v21 = vsel %vm739_vm12, %v6709_v14, %v6703_v39 }
 0x21a   : > { %v6717_v5 = vpop.permute.xlu1 %6716  ;;  %v6712_v23 = vpop.permute.xlu0 %6711  ;;  %v7217_v52 = vpack.c.bf16 %v1233_v45, %v1203_v29  ;;  %v7218_v53 = vpack.c.bf16 %v1231_v42, %v1201_v27  ;;  %v7219_v54 = vpack.c.bf16 %v1234_v21, %v1204_v30  ;;  %v7220_v55 = vpack.c.bf16 %v1232_v43, %v1202_v28 }
 0x21b   : > { %v6719_v48 = vunpack.i.h.bf16 %v6717_v5  ;;  %v6718_v49 = vunpack.i.l.bf16 %v6717_v5  ;;  %v6714_v50 = vunpack.i.h.bf16 %v6712_v23  ;;  %v6713_v51 = vunpack.i.l.bf16 %v6712_v23 }
 0x21c   : > { %1518 = vmatprep.subr.bf16.mxu0 %v7217_v52  ;;  %1559 = vmatprep.subr.bf16.mxu1 %v7218_v53 }
 0x21d   : > { %v7898_v56 = vsel %vm818_vm1, %v6718_v49, %v6719_v48  ;;  %v7902_v57 = vsel %vm818_vm1, %v6714_v50, %v6718_v49  ;;  %v7906_v58 = vsel %vm818_vm1, %v6713_v51, %v6714_v50  ;;  %v7910_v59 = vsel %vm818_vm1, %v6719_v48, %v6713_v51  ;;  %1519 = vmatpush1.bf16.msra.mxu0 %v7219_v54 }
 0x21e   : > { %v6727_v60 = vpop.permute.xlu1 %6726  ;;  %v6722_v61 = vpop.permute.xlu0 %6721  ;;  %1560 = vmatpush1.bf16.msra.mxu1 %v7220_v55  ;;  %v7221_v8 = vpack.c.bf16 %v7902_v57, %v7811_v44  ;;  %v7222_v9 = vpack.c.bf16 %v7910_v59, %v7814_v3  ;;  %v7223_v10 = vpack.c.bf16 %v7906_v58, %v7805_v40  ;;  %v7224_v11 = vpack.c.bf16 %v7898_v56, %v7808_v41 }
 0x21f   : > { %v6729_v62 = vunpack.i.h.bf16 %v6727_v60  ;;  %v6728_v63 = vunpack.i.l.bf16 %v6727_v60  ;;  %v6724_v6 = vunpack.i.h.bf16 %v6722_v61  ;;  %v6723_v7 = vunpack.i.l.bf16 %v6722_v61 }
 0x220   : > { %1520 = vmatprep.subr.bf16.mxu0 %v7221_v8  ;;  %1561 = vmatprep.subr.bf16.mxu1 %v7222_v9 }
 0x221   : > { %v1309_v12 = vsel %vm9087_vm8, %v6728_v63, %v6729_v62  ;;  %v1310_v13 = vsel %vm9088_vm7, %v6724_v6, %v6728_v63  ;;  %v1311_v15 = vsel %vm9089_vm11, %v6723_v7, %v6724_v6  ;;  %v1312_v16 = vsel %vm9090_vm13, %v6729_v62, %v6723_v7  ;;  %1521 = vmatpush1.bf16.msra.mxu0 %v7223_v10 }
 0x222   : > { %v6737_v17 = vpop.permute.xlu1 %6736  ;;  %v6732_v18 = vpop.permute.xlu0 %6731  ;;  %1562 = vmatpush1.bf16.msra.mxu1 %v7224_v11  ;;  %vm9091_vm8 = vcmp.lt.s32.totalorder %v7547_v25, 42 }
 0x223   : > { %v6739_v19 = vunpack.i.h.bf16 %v6737_v17  ;;  %v6738_v20 = vunpack.i.l.bf16 %v6737_v17  ;;  %v6734_v22 = vunpack.i.h.bf16 %v6732_v18  ;;  %v6733_v26 = vunpack.i.l.bf16 %v6732_v18  ;;  %vm9092_vm7 = vmmov %vm9091_vm8 }
 0x224   : > { %vm9093_vm11 = vmmov %vm9092_vm7 }
 0x225   : > { %v7930_v27 = vsel %vm910_vm2, %v6738_v20, %v6739_v19  ;;  %v7934_v28 = vsel %vm910_vm2, %v6734_v22, %v6738_v20  ;;  %v7938_v29 = vsel %vm910_vm2, %v6733_v26, %v6734_v22  ;;  %v7942_v30 = vsel %vm910_vm2, %v6739_v19, %v6733_v26  ;;  %vm9094_vm13 = vmmov %vm9092_vm7 }
 0x226   : > { %v6747_v31 = vpop.permute.xlu1 %6746  ;;  %v6742_v32 = vpop.permute.xlu0 %6741  ;;  %v7225_v42 = vpack.c.bf16 %v7934_v28, %v1310_v13  ;;  %v7226_v43 = vpack.c.bf16 %v7942_v30, %v1312_v16  ;;  %v7227_v45 = vpack.c.bf16 %v7938_v29, %v1311_v15  ;;  %v7228_v21 = vpack.c.bf16 %v7930_v27, %v1309_v12  ;;  %v1391_v12 = vld [vmem:[%s8998_s5] sm:$0xf] }
 0x227   : > { %v6749_v14 = vunpack.i.h.bf16 %v6747_v31  ;;  %v6748_v33 = vunpack.i.l.bf16 %v6747_v31  ;;  %v6744_v38 = vunpack.i.h.bf16 %v6742_v32  ;;  %v6743_v39 = vunpack.i.l.bf16 %v6742_v32 }
 0x228   : > { %1522 = vmatprep.subr.bf16.mxu0 %v7225_v42  ;;  %1563 = vmatprep.subr.bf16.mxu1 %v7226_v43 }
 0x229   : > { %v1369_v5 = vsel %vm958_vm14, %v6748_v33, %v6749_v14  ;;  %v1370_v23 = vsel %vm958_vm14, %v6744_v38, %v6748_v33  ;;  %v1371_v48 = vsel %vm958_vm14, %v6743_v39, %v6744_v38  ;;  %v1372_v49 = vsel %vm958_vm14, %v6749_v14, %v6743_v39  ;;  %1523 = vmatpush1.bf16.msra.mxu0 %v7227_v45 }
 0x22a   : > { %v6757_v50 = vpop.permute.xlu1 %6756  ;;  %v6752_v51 = vpop.permute.xlu0 %6751  ;;  %1564 = vmatpush1.bf16.msra.mxu1 %v7228_v21  ;;  %v7229_v60 = vpack.c.bf16 %v1370_v23, %v1370_v23  ;;  %v7230_v61 = vpack.c.bf16 %v1372_v49, %v1372_v49  ;;  %v7231_v62 = vpack.c.bf16 %v1371_v48, %v1371_v48  ;;  %v7232_v63 = vpack.c.bf16 %v1369_v5, %v1369_v5 }
 0x22b   : > { %v6759_v52 = vunpack.i.h.bf16 %v6757_v50  ;;  %v6758_v53 = vunpack.i.l.bf16 %v6757_v50  ;;  %v6754_v54 = vunpack.i.h.bf16 %v6752_v51  ;;  %v6753_v55 = vunpack.i.l.bf16 %v6752_v51 }
 0x22c   : > { %6108 = vmatprep.subr.msk.bf16.mxu0 %vm1010_vm0, %v7229_v60  ;;  %6110 = vmatprep.subr.msk.bf16.mxu1 %vm1010_vm0, %v7230_v61  ;;  %v1505_v10 = vsel %vm1010_vm0, %v7231_v62, 0  ;;  %v1511_v11 = vsel %vm1010_vm0, %v7232_v63, 0 }
 0x22d   : > { %v7959_v6 = vsel %vm9025_vm4, %v6758_v53, %v6759_v52  ;;  %v7963_v7 = vsel %vm9025_vm4, %v6754_v54, %v6758_v53  ;;  %v7967_v8 = vsel %vm9025_vm4, %v6753_v55, %v6754_v54  ;;  %v7971_v9 = vsel %vm9025_vm4, %v6759_v52, %v6753_v55  ;;  %1525 = vmatpush1.bf16.msra.mxu0 %v1505_v10 }
 0x22e   : > { %1566 = vmatpush1.bf16.msra.mxu1 %v1511_v11  ;;  %v7233_v13 = vpack.c.bf16 %v7902_v57, %v7963_v7  ;;  %v7234_v15 = vpack.c.bf16 %v7910_v59, %v7971_v9  ;;  %v7235_v16 = vpack.c.bf16 %v7906_v58, %v7967_v8  ;;  %v7236_v17 = vpack.c.bf16 %v7898_v56, %v7959_v6 }
 0x230   : > { %6109 = vmatmul.mubr.msk.bf16.vlgmr.msra.gmra.mrb[4].mxu0 %vm1500_vm15, %v1391_v12 }
 0x231   : > { %6111 = vmatmul.mubr.msk.bf16.vlgmr.msra.gmra.mrb[4].mxu1 %vm1500_vm15, %v1391_v12  ;;  %2028 = vmatprep.mubr.bf16.mxu0 %v7365_v24 }
 0x232   : > { %2069 = vmatprep.mubr.bf16.mxu1 %v7365_v24 }
 0x303   : > { %v1550_v18 = vpop.f32.mrb[4].mxu0 }
 0x304   : > { %v1591_v19 = vpop.f32.mrb[4].mxu1  ;;  %vm1598_vm6 = vcmp.ge.f32.partialorder %v1550_v18, 0.0  ;;  %v1602_v20 = vmul.f32 0.1, %v1550_v18  ;;  %v1552_v26 = vpop.f32.mrb[5].mxu0 }
 0x305   : > { %vm1600_vm5 = vcmp.ge.f32.partialorder %v1591_v19, 0.0  ;;  %v1604_v22 = vmul.f32 0.1, %v1591_v19  ;;  %v1593_v31 = vpop.f32.mrb[5].mxu1  ;;  %vm1599_vm9 = vcmp.ge.f32.partialorder %v1552_v26, 0.0  ;;  %v1554_v38 = vpop.f32.mrb[6].mxu0 }
 0x306   : > { %v1606_v32 = vsel %vm1598_vm6, %v1550_v18, %v1602_v20  ;;  %v1603_v33 = vmul.f32 0.1, %v1552_v26  ;;  %v1595_v39 = vpop.f32.mrb[6].mxu1  ;;  %vm1601_vm10 = vcmp.ge.f32.partialorder %v1593_v31, 0.0  ;;  %v1605_v43 = vmul.f32 0.1, %v1593_v31 }
 0x307   : > { %v1608_v14 = vsel %vm1600_vm5, %v1591_v19, %v1604_v22  ;;  %v7993_v42 = vmul.f32 %v1606_v32, %v7791_v34  ;;  %v1555_v45 = vpop.f32.mrb[7].mxu0  ;;  %v1596_v21 = vpop.f32.mrb[7].mxu1  ;;  %vm9095_vm6 = vcmp.lt.s32.totalorder %v7547_v25, 38 }
 0x308   : > { %v7996_v5 = vmul.f32 %v1608_v14, %v7794_v35  ;;  %v1607_v23 = vsel %vm1599_vm9, %v1552_v26, %v1603_v33  ;;  %v1609_v49 = vsel %vm1601_vm10, %v1593_v31, %v1605_v43  ;;  %vm9096_vm5 = vmmov %vm9095_vm6 }
 0x309   : > { %v7999_v48 = vmul.f32 %v1607_v23, %v7798_v36  ;;  %v8002_v50 = vmul.f32 %v1609_v49, %v7802_v37  ;;  %vm9097_vm9 = vmmov %vm9096_vm5 }
 0x30a   : > { %vm9098_vm10 = vmmov %vm9096_vm5 }
 0x30b   : > { %v6760_v51 = vpack.i.bf16 %v7999_v48, %v7993_v42  ;;  %v6765_v52 = vpack.i.bf16 %v8002_v50, %v7996_v5 }
 0x30d   : > { %6761 = vrot.lane.b32.xlu0 %v6760_v51, %s7359_s22  ;;  %6766 = vrot.lane.b32.xlu1 %v6765_v52, %s7359_s22 }
 0x311   : > { %6771 = vrot.lane.b32.xlu0 %v6760_v51, %s7363_s25  ;;  %6776 = vrot.lane.b32.xlu1 %v6765_v52, %s7363_s25 }
 0x315   : > { %6781 = vrot.lane.b32.xlu0 %v6760_v51, %s7358_s21  ;;  %6786 = vrot.lane.b32.xlu1 %v6765_v52, %s7358_s21 }
 0x319   : > { %6791 = vrot.lane.b32.xlu0 %v6760_v51, %s7360_s2  ;;  %6796 = vrot.lane.b32.xlu1 %v6765_v52, %s7360_s2 }
 0x31d   : > { %6801 = vrot.lane.b32.xlu0 %v6760_v51, %s7361_s23  ;;  %6806 = vrot.lane.b32.xlu1 %v6765_v52, %s7361_s23 }
 0x321   : > { %6811 = vrot.lane.b32.xlu0 %v6760_v51, %s7357_s20  ;;  %6816 = vrot.lane.b32.xlu1 %v6765_v52, %s7357_s20 }
 0x325   : > { %6821 = vrot.lane.b32.xlu0 %v6760_v51, %s7362_s24  ;;  %6826 = vrot.lane.b32.xlu1 %v6765_v52, %s7362_s24 }
 0x329   : > { %6831 = vrot.lane.b32.xlu0 %v6760_v51, %s7364_s26  ;;  %6841 = vrot.lane.b32.xlu1 %v6765_v52, %s7364_s26 }
 0x32d   : > { %6836 = vrot.lane.b32.xlu0 %v7822_v47, %s9019_s19  ;;  %6846 = vrot.lane.b32.xlu1 %v7818_v46, %s9019_s19 }
 0x331   : > { %6851 = vrot.lane.b32.xlu0 %v7822_v47, %s9017_s1  ;;  %6856 = vrot.lane.b32.xlu1 %v7818_v46, %s9017_s1  ;;  %s7373_s1 = smov 21  }
 0x335   : > { %6861 = vrot.lane.b32.xlu0 %v7822_v47, %s7370_s30  ;;  %6866 = vrot.lane.b32.xlu1 %v7818_v46, %s7370_s30 }
 0x339   : > { %6871 = vrot.lane.b32.xlu0 %v7822_v47, %s7371_s0  ;;  %6876 = vrot.lane.b32.xlu1 %v7818_v46, %s7371_s0 }
 0x37f   : > { %v6762_v53 = vpop.permute.xlu0 %6761  ;;  %v6767_v54 = vpop.permute.xlu1 %6766 }
 0x380   : > { %v6764_v55 = vunpack.i.h.bf16 %v6762_v53  ;;  %v6763_v60 = vunpack.i.l.bf16 %v6762_v53  ;;  %v6769_v61 = vunpack.i.h.bf16 %v6767_v54  ;;  %v6768_v62 = vunpack.i.l.bf16 %v6767_v54 }
 0x382   : > { %v1622_v63 = vsel %vm9091_vm8, %v6768_v62, %v6769_v61  ;;  %v1623_v10 = vsel %vm9092_vm7, %v6764_v55, %v6768_v62  ;;  %v1624_v12 = vsel %vm9093_vm11, %v6763_v60, %v6764_v55  ;;  %v1625_v47 = vsel %vm9094_vm13, %v6769_v61, %v6763_v60 }
 0x383   : > { %v6772_v11 = vpop.permute.xlu0 %6771  ;;  %v6777_v46 = vpop.permute.xlu1 %6776  ;;  %vm9099_vm8 = vcmp.lt.s32.totalorder %v7547_v25, 90 }
 0x384   : > { %v6774_v18 = vunpack.i.h.bf16 %v6772_v11  ;;  %v6773_v19 = vunpack.i.l.bf16 %v6772_v11  ;;  %v6779_v20 = vunpack.i.h.bf16 %v6777_v46  ;;  %v6778_v22 = vunpack.i.l.bf16 %v6777_v46  ;;  %vm9100_vm7 = vmmov %vm9099_vm8 }
 0x385   : > { %vm9101_vm11 = vmmov %vm9100_vm7 }
 0x386   : > { %v1654_v26 = vsel %vm649_vm3, %v6773_v19, %v6774_v18  ;;  %v1652_v31 = vsel %vm649_vm3, %v6778_v22, %v6779_v20  ;;  %v1653_v32 = vsel %vm649_vm3, %v6774_v18, %v6778_v22  ;;  %v1655_v14 = vsel %vm649_vm3, %v6779_v20, %v6773_v19  ;;  %vm9102_vm13 = vmmov %vm9100_vm7 }
 0x387   : > { %v6782_v33 = vpop.permute.xlu0 %6781  ;;  %v6787_v38 = vpop.permute.xlu1 %6786  ;;  %v7237_v23 = vpack.c.bf16 %v1654_v26, %v1624_v12  ;;  %v7238_v49 = vpack.c.bf16 %v1652_v31, %v1622_v63  ;;  %v7239_v51 = vpack.c.bf16 %v1655_v14, %v1625_v47  ;;  %v7240_v55 = vpack.c.bf16 %v1653_v32, %v1623_v10 }
 0x388   : > { %v6784_v39 = vunpack.i.h.bf16 %v6782_v33  ;;  %v6783_v43 = vunpack.i.l.bf16 %v6782_v33  ;;  %v6789_v45 = vunpack.i.h.bf16 %v6787_v38  ;;  %v6788_v21 = vunpack.i.l.bf16 %v6787_v38 }
 0x389   : > { %1996 = vmatprep.subr.bf16.mxu0 %v7237_v23  ;;  %2037 = vmatprep.subr.bf16.mxu1 %v7238_v49 }
 0x38a   : > { %v1682_v52 = vsel %vm9095_vm6, %v6788_v21, %v6789_v45  ;;  %v1683_v53 = vsel %vm9096_vm5, %v6784_v39, %v6788_v21  ;;  %v1684_v60 = vsel %vm9097_vm9, %v6783_v43, %v6784_v39  ;;  %v1685_v61 = vsel %vm9098_vm10, %v6789_v45, %v6783_v43  ;;  %1997 = vmatpush1.bf16.msra.mxu0 %v7239_v51 }
 0x38b   : > { %v6792_v54 = vpop.permute.xlu0 %6791  ;;  %v6797_v62 = vpop.permute.xlu1 %6796  ;;  %2038 = vmatpush1.bf16.msra.mxu1 %v7240_v55  ;;  %vm9022_vm6 = vcmp.lt.s32.totalorder %v7547_v25, 108  ;;  %vm9021_vm5 = vcmp.lt.s32.totalorder %v7547_v25, 107  ;;  %vm2238_vm9 = vcmask 261120  }
 0x38c   : > { %v6794_v11 = vunpack.i.h.bf16 %v6792_v54  ;;  %v6793_v46 = vunpack.i.l.bf16 %v6792_v54  ;;  %v6799_v63 = vunpack.i.h.bf16 %v6797_v62  ;;  %v6798_v12 = vunpack.i.l.bf16 %v6797_v62 }
 0x38e   : > { %v1714_v47 = vsel %vm739_vm12, %v6793_v46, %v6794_v11  ;;  %v1712_v10 = vsel %vm739_vm12, %v6798_v12, %v6799_v63  ;;  %v1713_v18 = vsel %vm739_vm12, %v6794_v11, %v6798_v12  ;;  %v1715_v19 = vsel %vm739_vm12, %v6799_v63, %v6793_v46 }
 0x38f   : > { %v6802_v20 = vpop.permute.xlu0 %6801  ;;  %v6807_v22 = vpop.permute.xlu1 %6806  ;;  %v7241_v38 = vpack.c.bf16 %v1714_v47, %v1684_v60  ;;  %v7242_v39 = vpack.c.bf16 %v1712_v10, %v1682_v52  ;;  %v7243_v43 = vpack.c.bf16 %v1715_v19, %v1685_v61  ;;  %v7244_v51 = vpack.c.bf16 %v1713_v18, %v1683_v53 }
 0x390   : > { %v6804_v26 = vunpack.i.h.bf16 %v6802_v20  ;;  %v6803_v31 = vunpack.i.l.bf16 %v6802_v20  ;;  %v6809_v32 = vunpack.i.h.bf16 %v6807_v22  ;;  %v6808_v14 = vunpack.i.l.bf16 %v6807_v22 }
 0x391   : > { %1998 = vmatprep.subr.bf16.mxu0 %v7241_v38  ;;  %2039 = vmatprep.subr.bf16.mxu1 %v7242_v39 }
 0x392   : > { %v1762_v33 = vsel %vm818_vm1, %v6803_v31, %v6804_v26  ;;  %v1760_v45 = vsel %vm818_vm1, %v6808_v14, %v6809_v32  ;;  %v1761_v21 = vsel %vm818_vm1, %v6804_v26, %v6808_v14  ;;  %v1763_v23 = vsel %vm818_vm1, %v6809_v32, %v6803_v31  ;;  %1999 = vmatpush1.bf16.msra.mxu0 %v7243_v43 }
 0x393   : > { %v6812_v49 = vpop.permute.xlu0 %6811  ;;  %v6817_v54 = vpop.permute.xlu1 %6816  ;;  %2040 = vmatpush1.bf16.msra.mxu1 %v7244_v51  ;;  %v7245_v52 = vpack.c.bf16 %v1761_v21, %v7999_v48  ;;  %v7246_v61 = vpack.c.bf16 %v1763_v23, %v8002_v50  ;;  %v7247_v46 = vpack.c.bf16 %v1762_v33, %v7993_v42  ;;  %v7248_v47 = vpack.c.bf16 %v1760_v45, %v7996_v5 }
 0x394   : > { %v6814_v55 = vunpack.i.h.bf16 %v6812_v49  ;;  %v6813_v62 = vunpack.i.l.bf16 %v6812_v49  ;;  %v6819_v11 = vunpack.i.h.bf16 %v6817_v54  ;;  %v6818_v60 = vunpack.i.l.bf16 %v6817_v54 }
 0x395   : > { %2000 = vmatprep.subr.bf16.mxu0 %v7245_v52  ;;  %2041 = vmatprep.subr.bf16.mxu1 %v7246_v61  ;;  %v7249_v45 = vpack.c.bf16 %v7963_v7, %v7811_v44 }
 0x396   : > { %v1791_v63 = vsel %vm9099_vm8, %v6814_v55, %v6818_v60  ;;  %v1792_v53 = vsel %vm9100_vm7, %v6813_v62, %v6814_v55  ;;  %v1790_v10 = vsel %vm9101_vm11, %v6818_v60, %v6819_v11  ;;  %v1793_v18 = vsel %vm9102_vm13, %v6819_v11, %v6813_v62  ;;  %2001 = vmatpush1.bf16.msra.mxu0 %v7247_v46 }
 0x397   : > { %v6822_v12 = vpop.permute.xlu0 %6821  ;;  %v6827_v48 = vpop.permute.xlu1 %6826  ;;  %2042 = vmatpush1.bf16.msra.mxu1 %v7248_v47  ;;  %vm2503_vm13 = vcmp.lt.s32.totalorder %v7547_v25, 1 }
 0x398   : > { %v6824_v19 = vunpack.i.h.bf16 %v6822_v12  ;;  %v6823_v50 = vunpack.i.l.bf16 %v6822_v12  ;;  %v6829_v42 = vunpack.i.h.bf16 %v6827_v48  ;;  %v6828_v20 = vunpack.i.l.bf16 %v6827_v48 }
 0x39a   : > { %v1822_v22 = vsel %vm910_vm2, %v6823_v50, %v6824_v19  ;;  %v1820_v5 = vsel %vm910_vm2, %v6828_v20, %v6829_v42  ;;  %v1821_v26 = vsel %vm910_vm2, %v6824_v19, %v6828_v20  ;;  %v1823_v31 = vsel %vm910_vm2, %v6829_v42, %v6823_v50 }
 0x39b   : > { %v6832_v32 = vpop.permute.xlu0 %6831  ;;  %v6842_v14 = vpop.permute.xlu1 %6841  ;;  %v7250_v23 = vpack.c.bf16 %v1821_v26, %v1791_v63  ;;  %v7251_v49 = vpack.c.bf16 %v1823_v31, %v1793_v18  ;;  %v7252_v51 = vpack.c.bf16 %v1822_v22, %v1792_v53  ;;  %v7253_v60 = vpack.c.bf16 %v1820_v5, %v1790_v10 }
 0x39c   : > { %v6834_v33 = vunpack.i.h.bf16 %v6832_v32  ;;  %v6833_v38 = vunpack.i.l.bf16 %v6832_v32  ;;  %v6844_v39 = vunpack.i.h.bf16 %v6842_v14  ;;  %v6843_v43 = vunpack.i.l.bf16 %v6842_v14 }
 0x39d   : > { %2002 = vmatprep.subr.bf16.mxu0 %v7250_v23  ;;  %2043 = vmatprep.subr.bf16.mxu1 %v7251_v49  ;;  %v7254_v53 = vpack.c.bf16 %v7971_v9, %v7814_v3  ;;  %v1872_v23 = vld [vmem:[%s8999_s6] sm:$0xf] }
 0x39e   : > { %v1852_v21 = vsel %vm958_vm14, %v6833_v38, %v6834_v33  ;;  %v1850_v54 = vsel %vm958_vm14, %v6843_v43, %v6844_v39  ;;  %v1851_v55 = vsel %vm958_vm14, %v6834_v33, %v6843_v43  ;;  %v1853_v62 = vsel %vm958_vm14, %v6844_v39, %v6833_v38  ;;  %2003 = vmatpush1.bf16.msra.mxu0 %v7252_v51 }
 0x39f   : > { %v6837_v11 = vpop.permute.xlu0 %6836  ;;  %v6847_v52 = vpop.permute.xlu1 %6846  ;;  %2044 = vmatpush1.bf16.msra.mxu1 %v7253_v60  ;;  %v7255_v18 = vpack.c.bf16 %v1851_v55, %v1851_v55  ;;  %v7256_v10 = vpack.c.bf16 %v1853_v62, %v1853_v62  ;;  %v7257_v48 = vpack.c.bf16 %v1852_v21, %v1852_v21  ;;  %v7258_v22 = vpack.c.bf16 %v1850_v54, %v1850_v54 }
 0x3a0   : > { %v6839_v61 = vunpack.i.h.bf16 %v6837_v11  ;;  %v6838_v46 = vunpack.i.l.bf16 %v6837_v11  ;;  %v6849_v12 = vunpack.i.h.bf16 %v6847_v52  ;;  %v6848_v63 = vunpack.i.l.bf16 %v6847_v52 }
 0x3a1   : > { %6150 = vmatprep.subr.msk.bf16.mxu0 %vm1010_vm0, %v7255_v18  ;;  %6152 = vmatprep.subr.msk.bf16.mxu1 %vm1010_vm0, %v7256_v10  ;;  %v1985_v39 = vsel %vm1010_vm0, %v7257_v48, 0  ;;  %v1991_v43 = vsel %vm1010_vm0, %v7258_v22, 0  ;;  %v7259_v55 = vpack.c.bf16 %v7967_v8, %v7805_v40  ;;  %v7260_v62 = vpack.c.bf16 %v7959_v6, %v7808_v41 }
 0x3a2   : > { %v8116_v47 = vsel %vm9022_vm6, %v6838_v46, %v6839_v61  ;;  %v8120_v19 = vsel %vm9022_vm6, %v6848_v63, %v6849_v12  ;;  %v8124_v50 = vsel %vm9022_vm6, %v6839_v61, %v6848_v63  ;;  %v8128_v42 = vsel %vm9022_vm6, %v6849_v12, %v6838_v46  ;;  %2005 = vmatpush1.bf16.msra.mxu0 %v1985_v39  ;;  %v2189_v61 = vld [vmem:[%s9000_s7] sm:$0x1] }
 0x3a3   : > { %v6852_v20 = vpop.permute.xlu0 %6851  ;;  %v6474_v5 = vpack.c.bf16 %v8124_v50, %v8116_v47  ;;  %v6475_v26 = vpack.c.bf16 %v8128_v42, %v8120_v19  ;;  %v6857_v31 = vpop.permute.xlu1 %6856  ;;  %2046 = vmatpush1.bf16.msra.mxu1 %v1991_v43  ;;  %2242 = vmatprep.subr.bf16.mxu0 %v7249_v45 }
 0x3a4   : > { %v6854_v32 = vunpack.i.h.bf16 %v6852_v20  ;;  %v6853_v14 = vunpack.i.l.bf16 %v6852_v20  ;;  %v6859_v33 = vunpack.i.h.bf16 %v6857_v31  ;;  %v6858_v38 = vunpack.i.l.bf16 %v6857_v31  ;;  %2283 = vmatprep.subr.bf16.mxu1 %v7254_v53 }
 0x3a5   : > { %3266 = vst [vmem:[#allocation2 + $0x20] sm:$0xff] %v6474_v5  ;;  %3267 = vst [vmem:[#allocation2 + $0x28] sm:$0xff] %v6475_v26  ;;  %6151 = vmatmul.mubr.msk.bf16.vlgmr.msra.gmra.mrb[8].mxu0 %vm1500_vm15, %v1872_v23 }
 0x3a6   : > { %v2169_v21 = vsel %vm9021_vm5, %v6853_v14, %v6854_v32  ;;  %v2167_v49 = vsel %vm9021_vm5, %v6858_v38, %v6859_v33  ;;  %v2168_v51 = vsel %vm9021_vm5, %v6854_v32, %v6858_v38  ;;  %v2170_v54 = vsel %vm9021_vm5, %v6859_v33, %v6853_v14  ;;  %6153 = vmatmul.mubr.msk.bf16.vlgmr.msra.gmra.mrb[8].mxu1 %vm1500_vm15, %v1872_v23 }
 0x3a7   : > { %2243 = vmatpush1.bf16.msra.mxu0 %v7259_v55  ;;  %2284 = vmatpush1.bf16.msra.mxu1 %v7260_v62  ;;  %v7261_v11 = vpack.c.bf16 %v2168_v51, %v8124_v50  ;;  %v7262_v60 = vpack.c.bf16 %v2170_v54, %v8128_v42  ;;  %v7263_v52 = vpack.c.bf16 %v2169_v21, %v8116_v47  ;;  %v6867_v46 = vpop.permute.xlu1 %6866  ;;  %v6862_v12 = vpop.permute.xlu0 %6861  ;;  %vm9103_vm5 = vcmask 1040384  }
 0x3a8   : > { %2274 = vmatprep.mubr.bf16.mxu0 %v7365_v24  ;;  %v7264_v45 = vpack.c.bf16 %v2167_v49, %v8120_v19  ;;  %2315 = vmatprep.mubr.bf16.mxu1 %v7365_v24  ;;  %v6864_v20 = vunpack.i.h.bf16 %v6862_v12  ;;  %v6863_v31 = vunpack.i.l.bf16 %v6862_v12  ;;  %v6869_v39 = vunpack.i.h.bf16 %v6867_v46  ;;  %vm9104_vm6 = vmmov %vm9103_vm5 }
 0x3a9   : > { %2244 = vmatprep.subr.bf16.mxu0 %v7261_v11  ;;  %2285 = vmatprep.subr.bf16.mxu1 %v7262_v60  ;;  %v6868_v11 = vunpack.i.l.bf16 %v6867_v46 }
 0x3ab   : > { %2245 = vmatpush1.bf16.msra.mxu0 %v7263_v52  ;;  %2286 = vmatpush1.bf16.msra.mxu1 %v7264_v45  ;;  %v2751_v52 = vsel %vm2503_vm13, %v6863_v31, %v6864_v20  ;;  %v2752_v45 = vsel %vm2503_vm13, %v6869_v39, %v6863_v31  ;;  %v2749_v46 = vsel %vm2503_vm13, %v6868_v11, %v6869_v39  ;;  %v6872_v59 = vpop.permute.xlu0 %6871  ;;  %v6877_v8 = vpop.permute.xlu1 %6876 }
 0x3ae   : > { %6168 = vmatmul.mubr.msk.bf16.vlgmr.msra.gmra.mrb[12].mxu0 %vm2238_vm9, %v2189_v61  ;;  %6169 = vmatmul.mubr.msk.bf16.vlgmr.msra.gmra.mrb[12].mxu1 %vm2238_vm9, %v2189_v61 }
 0x3af   : > { %2390 = vmatprep.mubr.bf16.mxu0 %v7365_v24  ;;  %2431 = vmatprep.mubr.bf16.mxu1 %v7365_v24 }
 0x478   : > { %v2030_v63 = vpop.f32.mrb[8].mxu0 }
 0x479   : > { %v2071_v53 = vpop.f32.mrb[8].mxu1  ;;  %vm2078_vm10 = vcmp.ge.f32.partialorder %v2030_v63, 0.0  ;;  %v2082_v18 = vmul.f32 0.1, %v2030_v63  ;;  %v2032_v10 = vpop.f32.mrb[9].mxu0 }
 0x47a   : > { %vm2080_vm8 = vcmp.ge.f32.partialorder %v2071_v53, 0.0  ;;  %v2073_v48 = vpop.f32.mrb[9].mxu1  ;;  %vm2079_vm7 = vcmp.ge.f32.partialorder %v2032_v10, 0.0  ;;  %v2083_v22 = vmul.f32 0.1, %v2032_v10  ;;  %v2034_v26 = vpop.f32.mrb[10].mxu0 }
 0x47b   : > { %v2084_v5 = vmul.f32 0.1, %v2071_v53  ;;  %v2086_v32 = vsel %vm2078_vm10, %v2030_v63, %v2082_v18  ;;  %vm2081_vm11 = vcmp.ge.f32.partialorder %v2073_v48, 0.0  ;;  %v2085_v14 = vmul.f32 0.1, %v2073_v48  ;;  %v2035_v33 = vpop.f32.mrb[11].mxu0 }
 0x47c   : > { %v2075_v38 = vpop.f32.mrb[10].mxu1  ;;  %v2090_v43 = vmul.f32 %v2086_v32, %v7791_v34  ;;  %v2087_v21 = vsel %vm2079_vm7, %v2032_v10, %v2083_v22  ;;  %v2750_v22 = vsel %vm2503_vm13, %v6864_v20, %v6868_v11  ;;  %v8188_v20 = vld [vmem:[#allocation2 + $0x10] sm:$0xff] }
 0x47d   : > { %v2088_v23 = vsel %vm2080_vm8, %v2071_v53, %v2084_v5  ;;  %v2076_v49 = vpop.f32.mrb[11].mxu1  ;;  %v2091_v51 = vmul.f32 %v2087_v21, %v7798_v36  ;;  %v2089_v55 = vsel %vm2081_vm11, %v2073_v48, %v2085_v14  ;;  %v6478_v5 = vpack.c.bf16 %v2751_v52, %v2752_v45 }
 0x47e   : > { %v2092_v54 = vmul.f32 %v2088_v23, %v7794_v35  ;;  %v2093_v62 = vmul.f32 %v2089_v55, %v7802_v37  ;;  %v6479_v55 = vpack.c.bf16 %v2749_v46, %v2750_v22 }
 0x47f   : > { %v8174_v60 = vpack.c.bf16 %v2091_v51, %v2090_v43  ;;  %v6183_v11 = vcombine.high %v6478_v5, %v8188_v20 }
 0x480   : > { %v8180_v61 = vpack.c.bf16 %v2093_v62, %v2092_v54 }
 0x481   : > { %v2276_v12 = vpop.f32.mrb[12].mxu0  ;;  %v2317_v53 = vpop.f32.mrb[12].mxu1 }
 0x482   : > { %vm2324_vm10 = vcmp.ge.f32.partialorder %v2276_v12, 0.0  ;;  %v2328_v63 = vmul.f32 0.1, %v2276_v12  ;;  %v2278_v18 = vpop.f32.mrb[13].mxu0  ;;  %vm2326_vm8 = vcmp.ge.f32.partialorder %v2317_v53, 0.0  ;;  %v2319_v31 = vpop.f32.mrb[13].mxu1 }
 0x483   : > { %v2330_v10 = vmul.f32 0.1, %v2317_v53  ;;  %vm2325_vm7 = vcmp.ge.f32.partialorder %v2278_v18, 0.0  ;;  %v2329_v48 = vmul.f32 0.1, %v2278_v18  ;;  %v2280_v32 = vpop.f32.mrb[14].mxu0 }
 0x484   : > { %v2332_v26 = vsel %vm2324_vm10, %v2276_v12, %v2328_v63  ;;  %vm2327_vm11 = vcmp.ge.f32.partialorder %v2319_v31, 0.0  ;;  %v2281_v43 = vpop.f32.mrb[15].mxu0  ;;  %v2321_v21 = vpop.f32.mrb[14].mxu1  ;;  %v2331_v51 = vmul.f32 0.1, %v2319_v31  ;;  %vm9105_vm10 = vmmov %vm9103_vm5  ;;  %v8196_v63 = vld [vmem:[#allocation2 + $0x18] sm:$0xff] }
 0x485   : > { %v2337_v14 = vpack.c.bf16 %v2332_v26, %v2332_v26  ;;  %v2334_v33 = vsel %vm2326_vm8, %v2317_v53, %v2330_v10  ;;  %v2333_v38 = vsel %vm2325_vm7, %v2278_v18, %v2329_v48  ;;  %v2322_v54 = vpop.f32.mrb[15].mxu1  ;;  %v2336_v12 = vld [vmem:[%s9001_s8] sm:$0xf]  ;;  %vm2341_vm8 = vcmask 15360   ;;  %vm9106_vm7 = vmmov %vm9103_vm5 }
 0x486   : > { %v2339_v23 = vpack.c.bf16 %v2334_v33, %v2334_v33  ;;  %v2338_v49 = vpack.c.bf16 %v2333_v38, %v2333_v38  ;;  %v2335_v62 = vsel %vm2327_vm11, %v2319_v31, %v2331_v51  ;;  %v6185_v53 = vcombine.high %v6479_v55, %v8196_v63  ;;  %v2777_v48 = vld [vmem:[%s9002_s9] sm:$0x3] }
 0x487   : > { %v2347_v39 = vsel %vm9103_vm5, %v2337_v14, 0  ;;  %v2340_v52 = vpack.c.bf16 %v2335_v62, %v2335_v62  ;;  %v6182_v18 = vcombine.low %v6478_v5, %v8188_v20  ;;  %v6184_v10 = vcombine.low %v6479_v55, %v8196_v63 }
 0x488   : > { %6170 = vmatprep.subr.msk.bf16.mxu0 %vm9104_vm6, %v2338_v49  ;;  %v2353_v45 = vsel %vm9105_vm10, %v2339_v23, 0  ;;  %v6879_v5 = vunpack.i.h.bf16 %v6877_v8  ;;  %v6873_v26 = vunpack.i.l.bf16 %v6872_v59  ;;  %v6878_v33 = vunpack.i.l.bf16 %v6877_v8 }
 0x489   : > { %2359 = vmatpush1.bf16.msra.mxu0 %v2347_v39  ;;  %6172 = vmatprep.subr.msk.bf16.mxu1 %vm9106_vm7, %v2340_v52 }
 0x48a   : > { %2829 = vmatprep.subr.bf16.mxu0 %v6183_v11  ;;  %2400 = vmatpush1.bf16.msra.mxu1 %v2353_v45 }
 0x48b   : > { %2870 = vmatprep.subr.bf16.mxu1 %v6185_v53 }
 0x48c   : > { %6171 = vmatmul.mubr.msk.bf16.vlgmr.msra.gmra.mrb[16].mxu0 %vm2341_vm8, %v2336_v12 }
 0x48d   : > { %2830 = vmatpush1.bf16.msra.mxu0 %v6182_v18  ;;  %2861 = vmatprep.mubr.bf16.mxu0 %v7365_v24 }
 0x48e   : > { %2831 = vmatprep.subr.bf16.mxu0 %v7233_v13  ;;  %6173 = vmatmul.mubr.msk.bf16.vlgmr.msra.gmra.mrb[16].mxu1 %vm2341_vm8, %v2336_v12  ;;  %vm2569_vm8 = vcmp.lt.s32.totalorder %v7547_v25, 20 }
 0x48f   : > { %2871 = vmatpush1.bf16.msra.mxu1 %v6184_v10  ;;  %2902 = vmatprep.mubr.bf16.mxu1 %v7365_v24  ;;  %v3245_v49 = vsel %vm2569_vm8, %v6879_v5, %v6873_v26  ;;  %v3242_v62 = vsel %vm2569_vm8, %v6878_v33, %v6879_v5 }
 0x490   : > { %2872 = vmatprep.subr.bf16.mxu1 %v7234_v15 }
 0x491   : > { %2832 = vmatpush1.bf16.msra.mxu0 %v7235_v16  ;;  %v6874_v16 = vunpack.i.h.bf16 %v6872_v59 }
 0x493   : > { %2873 = vmatpush1.bf16.msra.mxu1 %v7236_v17  ;;  %v3244_v23 = vsel %vm2569_vm8, %v6873_v26, %v6874_v16  ;;  %v3243_v11 = vsel %vm2569_vm8, %v6874_v16, %v6878_v33  ;;  %v2923_v26 = vld [vmem:[%s9003_s10] sm:$0xf] }
 0x494   : > { %6190 = vmatmul.mubr.msk.bf16.vlgmr.msra.gmra.mrb[20].mxu0 %vm2238_vm9, %v2777_v48  ;;  %v6480_v53 = vpack.c.bf16 %v3244_v23, %v3245_v49 }
 0x495   : > { %2977 = vmatprep.mubr.bf16.mxu0 %v7365_v24 }
 0x496   : > { %6191 = vmatmul.mubr.msk.bf16.vlgmr.msra.gmra.mrb[20].mxu1 %vm2238_vm9, %v2777_v48 }
 0x497   : > { %3018 = vmatprep.mubr.bf16.mxu1 %v7365_v24 }
 0x55f   : > { %v2392_v57 = vpop.f32.mrb[16].mxu0 }
 0x560   : > { %vm2440_vm6 = vcmp.ge.f32.partialorder %v2392_v57, 0.0  ;;  %v2444_v58 = vmul.f32 0.1, %v2392_v57  ;;  %v2394_v7 = vpop.f32.mrb[17].mxu0 }
 0x561   : > { %vm2441_vm5 = vcmp.ge.f32.partialorder %v2394_v7, 0.0  ;;  %v2445_v9 = vmul.f32 0.1, %v2394_v7  ;;  %v2396_v13 = vpop.f32.mrb[18].mxu0  ;;  %v2433_v56 = vpop.f32.mrb[16].mxu1 }
 0x562   : > { %v8222_v15 = vsel %vm2440_vm6, %v2392_v57, %v2444_v58  ;;  %v2397_v6 = vpop.f32.mrb[19].mxu0  ;;  %vm2442_vm11 = vcmp.ge.f32.partialorder %v2433_v56, 0.0  ;;  %v2446_v17 = vmul.f32 0.1, %v2433_v56  ;;  %v2435_v22 = vpop.f32.mrb[17].mxu1 }
 0x563   : > { %v8224_v46 = vsel %vm2441_vm5, %v2394_v7, %v2445_v9  ;;  %2495 = vrot.lane.b32.xlu0 %v8222_v15, %s7370_s30  ;;  %vm2443_vm10 = vcmp.ge.f32.partialorder %v2435_v22, 0.0  ;;  %v2447_v31 = vmul.f32 0.1, %v2435_v22  ;;  %v2437_v32 = vpop.f32.mrb[18].mxu1  ;;  %v6481_v7 = vpack.c.bf16 %v3242_v62, %v3243_v11 }
 0x564   : > { %2497 = vrot.lane.b32.xlu1 %v8224_v46, %s7370_s30  ;;  %v2438_v14 = vpop.f32.mrb[19].mxu1  ;;  %v8231_v38 = vsel %vm2442_vm11, %v2433_v56, %v2446_v17  ;;  %vm2932_vm11 = vcmask 1041408   ;;  %v6204_v32 = vcombine.low %v6480_v53, %v8188_v20 }
 0x565   : > { %v8233_v43 = vsel %vm2443_vm10, %v2435_v22, %v2447_v31  ;;  %v6205_v22 = vcombine.high %v6480_v53, %v8188_v20  ;;  %v6207_v31 = vcombine.high %v6481_v7, %v8196_v63  ;;  %v7265_v14 = vpack.c.bf16 %v7934_v28, %v8124_v50  ;;  %v3270_v50 = vld [vmem:[%s9002_s9] sm:$0x3] }
 0x566   : > { %v6206_v33 = vcombine.low %v6481_v7, %v8196_v63  ;;  %v7267_v20 = vpack.c.bf16 %v7938_v29, %v8116_v47  ;;  %v7268_v28 = vpack.c.bf16 %v7930_v27, %v8120_v19  ;;  %v7372_v29 = vmov 1983009808  }
 0x567   : > { %2499 = vrot.lane.b32.xlu0 %v8231_v38, %s7370_s30  ;;  %v2863_v21 = vpop.f32.mrb[20].mxu0  ;;  %v2457_v7 = vcombine.low %v8222_v15, %v8224_v46 }
 0x568   : > { %vm2911_vm7 = vcmp.ge.f32.partialorder %v2863_v21, 0.0  ;;  %v2915_v51 = vmul.f32 0.1, %v2863_v21  ;;  %2501 = vrot.lane.b32.xlu1 %v8233_v43, %s7370_s30  ;;  %v2865_v54 = vpop.f32.mrb[21].mxu0 }
 0x569   : > { %vm2912_vm6 = vcmp.ge.f32.partialorder %v2865_v54, 0.0  ;;  %v2916_v55 = vmul.f32 0.1, %v2865_v54  ;;  %v2867_v39 = vpop.f32.mrb[22].mxu0  ;;  %v2904_v52 = vpop.f32.mrb[20].mxu1 }
 0x56a   : > { %v2919_v45 = vsel %vm2911_vm7, %v2863_v21, %v2915_v51  ;;  %v2868_v12 = vpop.f32.mrb[23].mxu0  ;;  %vm2913_vm5 = vcmp.ge.f32.partialorder %v2904_v52, 0.0  ;;  %v2917_v18 = vmul.f32 0.1, %v2904_v52  ;;  %v2906_v10 = vpop.f32.mrb[21].mxu1  ;;  %vm2928_vm7 = vcmask 31744  }
 0x56b   : > { %2561 = vrot.lane.b32.xlu0 %v8222_v15, %s7371_s0  ;;  %v2924_v48 = vpack.c.bf16 %v2919_v45, %v2919_v45  ;;  %vm2914_vm10 = vcmp.ge.f32.partialorder %v2906_v10, 0.0  ;;  %v2918_v57 = vmul.f32 0.1, %v2906_v10  ;;  %v2920_v59 = vsel %vm2912_vm6, %v2865_v54, %v2916_v55  ;;  %v2908_v58 = vpop.f32.mrb[22].mxu1  ;;  %v8300_v39 = vld [vmem:[%s8996_s3] sm:$0xff] }
 0x56c   : > { %2563 = vrot.lane.b32.xlu1 %v8224_v46, %s7371_s0  ;;  %v2921_v8 = vsel %vm2913_vm5, %v2904_v52, %v2917_v18  ;;  %v2925_v9 = vpack.c.bf16 %v2920_v59, %v2920_v59  ;;  %v2909_v13 = vpop.f32.mrb[23].mxu1  ;;  %v7266_v21 = vpack.c.bf16 %v7942_v30, %v8128_v42  ;;  %v2460_v30 = vunpack.c.l.s4 %v7372_v29 }
 0x56d   : > { %v2926_v56 = vpack.c.bf16 %v2921_v8, %v2921_v8  ;;  %v2922_v6 = vsel %vm2914_vm10, %v2906_v10, %v2918_v57  ;;  %v2934_v16 = vsel %vm2932_vm11, %v2924_v48, 0  ;;  %v2509_v12 = vrot.slane %v8300_v39, 7 }
 0x56e   : > { %v2927_v17 = vpack.c.bf16 %v2922_v6, %v2922_v6  ;;  %6192 = vmatprep.subr.msk.bf16.mxu0 %vm2932_vm11, %v2925_v9  ;;  %v2461_v63 = vunpack.c.0.s8 %v2460_v30  ;;  %v2458_v8 = vcombine.low %v8231_v38, %v8233_v43  ;;  %v2477_v6 = vcombine.high %v8231_v38, %v8233_v43 }
 0x56f   : > { %2565 = vrot.lane.b32.xlu0 %v8231_v38, %s7371_s0  ;;  %v2940_v5 = vsel %vm2932_vm11, %v2926_v56, 0  ;;  %2946 = vmatpush1.bf16.msra.mxu0 %v2934_v16  ;;  %v2476_v56 = vcombine.high %v8222_v15, %v8224_v46 }
 0x570   : > { %2567 = vrot.lane.b32.xlu1 %v8233_v43, %s7371_s0  ;;  %6194 = vmatprep.subr.msk.bf16.mxu1 %vm2932_vm11, %v2927_v17  ;;  %v8291_v51 = vsub.s32 %v2461_v63, %v7483_v1  ;;  %v2510_v17 = vrot.slane %v2509_v12, 2 }
 0x571   : > { %3322 = vmatprep.subr.bf16.mxu0 %v6205_v22  ;;  %2987 = vmatpush1.bf16.msra.mxu1 %v2940_v5 }
 0x572   : > { %3363 = vmatprep.subr.bf16.mxu1 %v6207_v31  ;;  %6193 = vmatmul.mubr.msk.bf16.vlgmr.msra.gmra.mrb[24].mxu0 %vm2928_vm7, %v2923_v26 }
 0x573   : > { %3323 = vmatpush1.bf16.msra.mxu0 %v6204_v32  ;;  %3354 = vmatprep.mubr.bf16.mxu0 %v7365_v24  ;;  %v2465_v32 = vrot.slane %v2457_v7, %v8291_v51 }
 0x574   : > { %6195 = vmatmul.mubr.msk.bf16.vlgmr.msra.gmra.mrb[24].mxu1 %vm2928_vm7, %v2923_v26  ;;  %3324 = vmatprep.subr.bf16.mxu0 %v7265_v14  ;;  %v2472_v14 = vrot.slane %v2458_v8, %v8291_v51 }
 0x575   : > { %3364 = vmatpush1.bf16.msra.mxu1 %v6206_v33  ;;  %3395 = vmatprep.mubr.bf16.mxu1 %v7365_v24 }
 0x576   : > { %3365 = vmatprep.subr.bf16.mxu1 %v7266_v21 }
 0x577   : > { %3325 = vmatpush1.bf16.msra.mxu0 %v7267_v20  ;;  %v2484_v20 = vrot.slane %v2476_v56, %v8291_v51 }
 0x579   : > { %3366 = vmatpush1.bf16.msra.mxu1 %v7268_v28  ;;  %v2491_v28 = vrot.slane %v2477_v6, %v8291_v51 }
 0x57a   : > { %6212 = vmatmul.mubr.msk.bf16.vlgmr.msra.gmra.mrb[28].mxu0 %vm2238_vm9, %v3270_v50 }
 0x57b   : > { %3468 = vmatprep.mubr.bf16.mxu0 %v7365_v24 }
 0x57c   : > { %6213 = vmatmul.mubr.msk.bf16.vlgmr.msra.gmra.mrb[28].mxu1 %vm2238_vm9, %v3270_v50  ;;  %v8330_v50 = vld [vmem:[%s9107_s29] sm:$0xff] }
 0x57d   : > { %3509 = vmatprep.mubr.bf16.mxu1 %v7365_v24 }
 0x5d5   : > { %v2496_v47 = vpop.permute.xlu0 %2495 }
 0x5d6   : > { %v2498_v42 = vpop.permute.xlu1 %2497 }
 0x5d7   : > { %v2506_v27 = vsel %vm2503_vm13, %v2496_v47, %v2498_v42 }
 0x5d9   : > { %v2500_v19 = vpop.permute.xlu0 %2499 }
 0x5da   : > { %v2505_v23 = vsel %vm2503_vm13, %v2498_v42, %v2500_v19  ;;  %v2502_v49 = vpop.permute.xlu1 %2501 }
 0x5db   : > { %v2504_v54 = vsel %vm2503_vm13, %v2500_v19, %v2502_v49  ;;  %v2507_v55 = vsel %vm2503_vm13, %v2502_v49, %v2496_v47  ;;  %v2512_v47 = vmul.f32 %v2510_v17, %v8330_v50 }
 0x5dc   : > { %v2517_v62 = vcombine.low %v2507_v55, %v2506_v27  ;;  %v2518_v11 = vcombine.low %v2505_v23, %v2504_v54  ;;  %v2539_v52 = vcombine.high %v2507_v55, %v2506_v27  ;;  %v2540_v45 = vcombine.high %v2505_v23, %v2504_v54 }
 0x5dd   : > { %v2562_v53 = vpop.permute.xlu0 %2561  ;;  %v2473_v54 = vcombine.low %v2465_v32, %v2472_v14  ;;  %v8339_v55 = vmul.f32 %v8300_v39, %v8330_v50 }
 0x5de   : > { %v2525_v18 = vrot.slane %v2517_v62, %v8291_v51  ;;  %v2532_v10 = vrot.slane %v2518_v11, %v8291_v51  ;;  %v2547_v48 = vrot.slane %v2539_v52, %v8291_v51  ;;  %v2554_v57 = vrot.slane %v2540_v45, %v8291_v51  ;;  %v2564_v59 = vpop.permute.xlu1 %2563 }
 0x5df   : > { %v2572_v58 = vsel %vm2569_vm8, %v2562_v53, %v2564_v59  ;;  %v2575_v62 = vmul.f32 %v2509_v12, %v8330_v50  ;;  %v2492_v52 = vcombine.low %v2484_v20, %v2491_v28 }
 0x5e0   : > { %v2533_v9 = vcombine.low %v2525_v18, %v2532_v10  ;;  %v2555_v13 = vcombine.low %v2547_v48, %v2554_v57  ;;  %v2475_v57 = vmul.f32 %v2473_v54, %v8339_v55 }
 0x5e1   : > { %v2566_v16 = vpop.permute.xlu0 %2565 }
 0x5e2   : > { %v2571_v22 = vsel %vm2569_vm8, %v2564_v59, %v2566_v16  ;;  %v2568_v5 = vpop.permute.xlu1 %2567  ;;  %v6174_v42 = vrot.slane %v2533_v9, 9  ;;  %v6175_v19 = vrot.slane %v2555_v13, 9 }
 0x5e3   : > { %v2570_v26 = vsel %vm2569_vm8, %v2566_v16, %v2568_v5  ;;  %v2573_v31 = vsel %vm2569_vm8, %v2568_v5, %v2562_v53 }
 0x5e4   : > { %v2580_v33 = vcombine.low %v2573_v31, %v2572_v58  ;;  %v2581_v21 = vcombine.low %v2571_v22, %v2570_v26  ;;  %v2605_v29 = vcombine.high %v2573_v31, %v2572_v58  ;;  %v2606_v30 = vcombine.high %v2571_v22, %v2570_v26 }
 0x5e5   : > { %v2537_v53 = vmul.f32 %v6174_v42, %v2512_v47  ;;  %v2559_v10 = vmul.f32 %v6175_v19, %v2512_v47  ;;  %v2494_v58 = vmul.f32 %v2492_v52, %v8339_v55 }
 0x5e6   : > { %v2588_v63 = vrot.slane %v2580_v33, %v8291_v51  ;;  %v2595_v27 = vrot.slane %v2581_v21, %v8291_v51  ;;  %v2613_v23 = vrot.slane %v2605_v29, %v8291_v51  ;;  %v2620_v49 = vrot.slane %v2606_v30, %v8291_v51 }
 0x5e7   : > { %v2538_v8 = vadd.f32 %v2537_v53, %v2475_v57  ;;  %v2560_v13 = vadd.f32 %v2559_v10, %v2494_v58 }
 0x5e8   : > { %v2596_v11 = vcombine.high %v2588_v63, %v2595_v27  ;;  %v2621_v45 = vcombine.high %v2613_v23, %v2620_v49 }
 0x5ea   : > { %v2597_v18 = vrot.slane %v2596_v11, 7  ;;  %v2622_v48 = vrot.slane %v2621_v45, 7 }
 0x5ec   : > { %v2599_v59 = vmul.f32 %v2597_v18, %v2575_v62  ;;  %v2624_v7 = vmul.f32 %v2622_v48, %v2575_v62 }
 0x5ee   : > { %v6176_v9 = vrot.slane %v2599_v59, 9  ;;  %v6177_v56 = vrot.slane %v2624_v7, 9 }
 0x5f0   : > { %v8344_v6 = vadd.f32 %v6176_v9, %v2538_v8  ;;  %v8346_v12 = vadd.f32 %v6177_v56, %v2560_v13 }
 0x645   : > { %v2979_v16 = vpop.f32.mrb[24].mxu0 }
 0x646   : > { %vm3027_vm9 = vcmp.ge.f32.partialorder %v2979_v16, 0.0  ;;  %v3031_v17 = vmul.f32 0.1, %v2979_v16  ;;  %v2981_v22 = vpop.f32.mrb[25].mxu0 }
 0x647   : > { %v3020_v5 = vpop.f32.mrb[24].mxu1  ;;  %vm3028_vm6 = vcmp.ge.f32.partialorder %v2981_v22, 0.0  ;;  %v3032_v26 = vmul.f32 0.1, %v2981_v22  ;;  %v2983_v31 = vpop.f32.mrb[26].mxu0 }
 0x648   : > { %vm3029_vm5 = vcmp.ge.f32.partialorder %v3020_v5, 0.0  ;;  %v3033_v32 = vmul.f32 0.1, %v3020_v5  ;;  %v3022_v14 = vpop.f32.mrb[25].mxu1  ;;  %v2984_v33 = vpop.f32.mrb[27].mxu0  ;;  %v3035_v21 = vsel %vm3027_vm9, %v2979_v16, %v3031_v17 }
 0x649   : > { %vm3030_vm10 = vcmp.ge.f32.partialorder %v3022_v14, 0.0  ;;  %v3034_v20 = vmul.f32 0.1, %v3022_v14  ;;  %v3024_v28 = vpop.f32.mrb[26].mxu1  ;;  %3073 = vrot.lane.b32.xlu0 %v3035_v21, %s7370_s30  ;;  %v3036_v29 = vsel %vm3028_vm6, %v2981_v22, %v3032_v26 }
 0x64a   : > { %v3025_v30 = vpop.f32.mrb[27].mxu1  ;;  %3075 = vrot.lane.b32.xlu1 %v3036_v29, %s7370_s30  ;;  %v3043_v47 = vcombine.low %v3035_v21, %v3036_v29  ;;  %v3037_v42 = vsel %vm3029_vm5, %v3020_v5, %v3033_v32  ;;  %v3416_v32 = vld [vmem:[%s9003_s10] sm:$0xf] }
 0x64b   : > { %v3038_v63 = vsel %vm3030_vm10, %v3022_v14, %v3034_v20 }
 0x64c   : > { %v3051_v27 = vrot.slane %v3043_v47, %v8291_v51  ;;  %v3044_v19 = vcombine.low %v3037_v42, %v3038_v63 }
 0x64d   : > { %3077 = vrot.lane.b32.xlu0 %v3037_v42, %s7370_s30  ;;  %v3356_v23 = vpop.f32.mrb[28].mxu0 }
 0x64e   : > { %vm3404_vm4 = vcmp.ge.f32.partialorder %v3356_v23, 0.0  ;;  %v3408_v49 = vmul.f32 0.1, %v3356_v23  ;;  %v3058_v54 = vrot.slane %v3044_v19, %v8291_v51  ;;  %3079 = vrot.lane.b32.xlu1 %v3038_v63, %s7370_s30  ;;  %v3358_v62 = vpop.f32.mrb[29].mxu0 }
 0x64f   : > { %v3397_v11 = vpop.f32.mrb[28].mxu1  ;;  %vm3405_vm9 = vcmp.ge.f32.partialorder %v3358_v62, 0.0  ;;  %v3409_v52 = vmul.f32 0.1, %v3358_v62  ;;  %v3360_v45 = vpop.f32.mrb[30].mxu0 }
 0x650   : > { %vm3406_vm6 = vcmp.ge.f32.partialorder %v3397_v11, 0.0  ;;  %v3410_v53 = vmul.f32 0.1, %v3397_v11  ;;  %v3412_v18 = vsel %vm3404_vm4, %v3356_v23, %v3408_v49  ;;  %v3399_v10 = vpop.f32.mrb[29].mxu1  ;;  %v3059_v48 = vcombine.low %v3051_v27, %v3058_v54  ;;  %v3361_v57 = vpop.f32.mrb[31].mxu0 }
 0x651   : > { %v3417_v59 = vpack.c.bf16 %v3412_v18, %v3412_v18  ;;  %vm3407_vm5 = vcmp.ge.f32.partialorder %v3399_v10, 0.0  ;;  %v3411_v58 = vmul.f32 0.1, %v3399_v10  ;;  %v3066_v7 = vcombine.high %v3051_v27, %v3058_v54  ;;  %v3401_v8 = vpop.f32.mrb[30].mxu1 }
 0x652   : > { %v3414_v9 = vsel %vm3406_vm6, %v3397_v11, %v3410_v53  ;;  %v3413_v13 = vsel %vm3405_vm9, %v3358_v62, %v3409_v52  ;;  %v3402_v56 = vpop.f32.mrb[31].mxu1  ;;  %v6196_v23 = vrot.slane %v3059_v48, 9  ;;  %vm3229_vm4 = vcmask 1042432  }
 0x653   : > { %v3419_v16 = vpack.c.bf16 %v3414_v9, %v3414_v9  ;;  %v3415_v17 = vsel %vm3407_vm5, %v3399_v10, %v3411_v58  ;;  %v3418_v5 = vpack.c.bf16 %v3413_v13, %v3413_v13  ;;  %v3425_v26 = vsel %vm2932_vm11, %v3417_v59, 0 }
 0x654   : > { %v3420_v22 = vpack.c.bf16 %v3415_v17, %v3415_v17  ;;  %v6197_v49 = vrot.slane %v3066_v7, 9  ;;  %v3065_v18 = vmul.f32 %v6196_v23, %v8300_v39  ;;  %v3061_v9 = vmul.f32 %v3059_v48, %v8300_v39 }
 0x655   : > { %v3431_v31 = vsel %vm2932_vm11, %v3419_v16, 0  ;;  %6214 = vmatprep.subr.msk.bf16.mxu0 %vm2932_vm11, %v3418_v5  ;;  %v3068_v13 = vmul.f32 %v3066_v7, %v8300_v39  ;;  %v8384_v56 = vsub.s32 4, %v7483_v1  ;;  %v8387_v16 = vsub.s32 6, %v7483_v1 }
 0x656   : > { %6216 = vmatprep.subr.msk.bf16.mxu1 %vm2932_vm11, %v3420_v22  ;;  %3437 = vmatpush1.bf16.msra.mxu0 %v3425_v26  ;;  %v3072_v10 = vmul.f32 %v6197_v49, %v8300_v39 }
 0x657   : > { %3478 = vmatpush1.bf16.msra.mxu1 %v3431_v31 }
 0x659   : > { %6215 = vmatmul.mubr.msk.bf16.vlgmr.msra.gmra.mrb[32].mxu0 %vm2928_vm7, %v3416_v32 }
 0x65a   : > { %6217 = vmatmul.mubr.msk.bf16.vlgmr.msra.gmra.mrb[32].mxu1 %vm2928_vm7, %v3416_v32  ;;  %3891 = vmatprep.mubr.bf16.mxu0 %v7365_v24  ;;  %vm9108_vm7 = vcmask 1040384  }
 0x65b   : > { %3932 = vmatprep.mubr.bf16.mxu1 %v7365_v24  ;;  %vm9109_vm10 = vmmov %vm9108_vm7 }
 0x65c   : > { %vm9110_vm9 = vmmov %vm9108_vm7 }
 0x65d   : > { %vm9111_vm6 = vmmov %vm9108_vm7 }
 0x6bb   : > { %v3074_v14 = vpop.permute.xlu0 %3073 }
 0x6bc   : > { %v3076_v33 = vpop.permute.xlu1 %3075 }
 0x6bd   : > { %v3083_v29 = vsel %vm2503_vm13, %v3074_v14, %v3076_v33 }
 0x6bf   : > { %v3078_v21 = vpop.permute.xlu0 %3077 }
 0x6c0   : > { %v3082_v20 = vsel %vm2503_vm13, %v3076_v33, %v3078_v21  ;;  %v3080_v28 = vpop.permute.xlu1 %3079 }
 0x6c1   : > { %v3081_v30 = vsel %vm2503_vm13, %v3078_v21, %v3080_v28  ;;  %v3084_v47 = vsel %vm2503_vm13, %v3080_v28, %v3074_v14 }
 0x6c2   : > { %v3089_v42 = vcombine.high %v3084_v47, %v3083_v29  ;;  %v3090_v63 = vcombine.high %v3082_v20, %v3081_v30 }
 0x6c4   : > { %v3097_v27 = vrot.slane %v3089_v42, %v8291_v51  ;;  %v3104_v19 = vrot.slane %v3090_v63, %v8291_v51 }
 0x6c6   : > { %v3105_v54 = vcombine.low %v3097_v27, %v3104_v19  ;;  %v3121_v62 = vcombine.high %v3097_v27, %v3104_v19 }
 0x6c8   : > { %v3106_v11 = vrot.slane %v3105_v54, 7  ;;  %v3115_v52 = vmul.f32 %v3105_v54, %v8300_v39  ;;  %v3122_v45 = vrot.slane %v3121_v62, 7  ;;  %v3131_v53 = vmul.f32 %v3121_v62, %v8300_v39 }
 0x6ca   : > { %v3108_v57 = vmul.f32 %v3106_v11, %v8300_v39  ;;  %v6199_v59 = vrot.slane %v3115_v52, 9  ;;  %v3124_v58 = vmul.f32 %v3122_v45, %v8300_v39  ;;  %v6201_v8 = vrot.slane %v3131_v53, 9 }
 0x6cc   : > { %v6198_v17 = vrot.slane %v3108_v57, 9  ;;  %v3120_v22 = vadd.f32 %v6199_v59, %v3065_v18  ;;  %v6200_v5 = vrot.slane %v3124_v58, 9  ;;  %v3136_v26 = vadd.f32 %v6201_v8, %v3072_v10 }
 0x6ce   : > { %v3113_v31 = vadd.f32 %v6198_v17, %v3061_v9  ;;  %v3129_v32 = vadd.f32 %v6200_v5, %v3068_v13  ;;  %v3162_v14 = vrot.slane %v3120_v22, %v7487_v2  ;;  %v3166_v33 = vrot.slane %v3120_v22, %v7491_v4 }
 0x6cf   : > { %v3170_v48 = vrot.slane %v3120_v22, %v8384_v56  ;;  %v3174_v39 = vrot.slane %v3120_v22, %v8387_v16  ;;  %v3204_v7 = vrot.slane %v3136_v26, %v7487_v2  ;;  %v3208_v21 = vrot.slane %v3136_v26, %v7491_v4 }
 0x6d0   : > { %v3141_v20 = vrot.slane %v3113_v31, %v7487_v2  ;;  %v3145_v28 = vrot.slane %v3113_v31, %v7491_v4  ;;  %v3149_v29 = vrot.slane %v3113_v31, %v8384_v56  ;;  %v3153_v30 = vrot.slane %v3113_v31, %v8387_v16 }
 0x6d1   : > { %v3183_v47 = vrot.slane %v3129_v32, %v7487_v2  ;;  %v3187_v42 = vrot.slane %v3129_v32, %v7491_v4  ;;  %v3191_v63 = vrot.slane %v3129_v32, %v8384_v56  ;;  %v3195_v27 = vrot.slane %v3129_v32, %v8387_v16 }
 0x6d2   : > { %v3212_v19 = vrot.slane %v3136_v26, %v8384_v56  ;;  %v3216_v23 = vrot.slane %v3136_v26, %v8387_v16  ;;  %v3221_v49 = vsel %vm9108_vm7, %v3141_v20, %v3162_v14  ;;  %v3222_v54 = vsel %vm9109_vm10, %v3145_v28, %v3166_v33 }
 0x6d3   : > { %v3223_v62 = vsel %vm9110_vm9, %v3149_v29, %v3170_v48  ;;  %v3224_v11 = vsel %vm9111_vm6, %v3153_v30, %v3174_v39  ;;  %v3225_v52 = vsel %vm2932_vm11, %v3221_v49, %v3183_v47  ;;  %v3226_v45 = vsel %vm2932_vm11, %v3222_v54, %v3187_v42 }
 0x6d4   : > { %v3227_v53 = vsel %vm2932_vm11, %v3223_v62, %v3191_v63  ;;  %v3228_v18 = vsel %vm2932_vm11, %v3224_v11, %v3195_v27  ;;  %v3230_v10 = vsel %vm3229_vm4, %v3225_v52, %v3204_v7  ;;  %v3231_v57 = vsel %vm3229_vm4, %v3226_v45, %v3208_v21 }
 0x6d5   : > { %v3232_v59 = vsel %vm3229_vm4, %v3227_v53, %v3212_v19  ;;  %v3233_v58 = vsel %vm3229_vm4, %v3228_v18, %v3216_v23  ;;  %v6486_v8 = vpack.c.bf16 %v3231_v57, %v3230_v10  ;;  %vm2638_vm6 = vcmp.lt.s32.totalorder %v7547_v25, 21 }
 0x6d6   : > { %v6487_v9 = vpack.c.bf16 %v3233_v58, %v3232_v59 }
 0x6d7   : > { %v3774_v13 = vrot.slane %v6486_v8, 7 }
 0x6d8   : > { %v3775_v17 = vrot.slane %v6487_v9, 7 }
 0x6d9   : > { %3778 = vst [vmem:[#allocation2 + $0x10] sm:$0x66] %v3774_v13 }
 0x6da   : > { %3779 = vst [vmem:[#allocation2 + $0x18] sm:$0x66] %v3775_v17 }
 0x72c   : > { %v3470_v22 = vpop.f32.mrb[32].mxu0 }
 0x72d   : > { %v3511_v5 = vpop.f32.mrb[32].mxu1  ;;  %vm3518_vm5 = vcmp.ge.f32.partialorder %v3470_v22, 0.0  ;;  %v3522_v26 = vmul.f32 0.1, %v3470_v22  ;;  %v3472_v32 = vpop.f32.mrb[33].mxu0 }
 0x72e   : > { %vm3520_vm7 = vcmp.ge.f32.partialorder %v3511_v5, 0.0  ;;  %v3524_v31 = vmul.f32 0.1, %v3511_v5  ;;  %v3513_v14 = vpop.f32.mrb[33].mxu1  ;;  %vm3519_vm10 = vcmp.ge.f32.partialorder %v3472_v32, 0.0  ;;  %v3474_v39 = vpop.f32.mrb[34].mxu0 }
 0x72f   : > { %v3523_v33 = vmul.f32 0.1, %v3472_v32  ;;  %vm3521_vm9 = vcmp.ge.f32.partialorder %v3513_v14, 0.0  ;;  %v3525_v48 = vmul.f32 0.1, %v3513_v14  ;;  %v3515_v7 = vpop.f32.mrb[34].mxu1  ;;  %v3526_v21 = vsel %vm3518_vm5, %v3470_v22, %v3522_v26 }
 0x730   : > { %v3528_v20 = vsel %vm3520_vm7, %v3511_v5, %v3524_v31  ;;  %v3475_v28 = vpop.f32.mrb[35].mxu0  ;;  %v3516_v29 = vpop.f32.mrb[35].mxu1  ;;  %3564 = vrot.lane.b32.xlu0 %v3526_v21, %s7371_s0  ;;  %vm9112_vm5 = vcmask 1040384  }
 0x731   : > { %v3527_v30 = vsel %vm3519_vm10, %v3472_v32, %v3523_v33  ;;  %v3529_v47 = vsel %vm3521_vm9, %v3513_v14, %v3525_v48  ;;  %vm9113_vm7 = vmmov %vm9112_vm5 }
 0x732   : > { %3566 = vrot.lane.b32.xlu1 %v3527_v30, %s7371_s0  ;;  %v3534_v42 = vcombine.low %v3526_v21, %v3527_v30  ;;  %v3535_v63 = vcombine.low %v3528_v20, %v3529_v47  ;;  %vm9114_vm10 = vmmov %vm9112_vm5 }
 0x733   : > { %vm9115_vm9 = vmmov %vm9112_vm5 }
 0x734   : > { %v3542_v27 = vrot.slane %v3534_v42, %v8291_v51  ;;  %v3549_v19 = vrot.slane %v3535_v63, %v8291_v51  ;;  %3568 = vrot.lane.b32.xlu0 %v3528_v20, %s7371_s0 }
 0x736   : > { %3570 = vrot.lane.b32.xlu1 %v3529_v47, %s7371_s0  ;;  %v3550_v23 = vcombine.low %v3542_v27, %v3549_v19  ;;  %v3557_v49 = vcombine.high %v3542_v27, %v3549_v19 }
 0x738   : > { %2630 = vrot.lane.b32.xlu0 %v8222_v15, %s7373_s1  ;;  %v6218_v10 = vrot.slane %v3550_v23, 9  ;;  %v3552_v17 = vmul.f32 %v3550_v23, %v8330_v50  ;;  %v3559_v5 = vmul.f32 %v3557_v49, %v8330_v50 }
 0x73a   : > { %2632 = vrot.lane.b32.xlu1 %v8224_v46, %s7373_s1  ;;  %v3556_v22 = vmul.f32 %v6218_v10, %v8330_v50 }
 0x73c   : > { %2634 = vrot.lane.b32.xlu0 %v8231_v38, %s7373_s1 }
 0x73e   : > { %2636 = vrot.lane.b32.xlu1 %v8233_v43, %s7373_s1  ;;  %v6219_v43 = vrot.slane %v3557_v49, 9 }
 0x740   : > { %v3563_v26 = vmul.f32 %v6219_v43, %v8330_v50 }
 0x7a2   : > { %v3565_v54 = vpop.permute.xlu0 %3564 }
 0x7a4   : > { %v3567_v62 = vpop.permute.xlu1 %3566 }
 0x7a5   : > { %v3574_v53 = vsel %vm2569_vm8, %v3565_v54, %v3567_v62 }
 0x7a6   : > { %v3569_v11 = vpop.permute.xlu0 %3568 }
 0x7a7   : > { %v3573_v52 = vsel %vm2569_vm8, %v3567_v62, %v3569_v11 }
 0x7a8   : > { %v3571_v45 = vpop.permute.xlu1 %3570 }
 0x7a9   : > { %v3572_v15 = vsel %vm2569_vm8, %v3569_v11, %v3571_v45  ;;  %v3575_v46 = vsel %vm2569_vm8, %v3571_v45, %v3565_v54 }
 0x7aa   : > { %v3580_v38 = vcombine.high %v3575_v46, %v3574_v53  ;;  %v3581_v18 = vcombine.high %v3573_v52, %v3572_v15  ;;  %v2631_v57 = vpop.permute.xlu0 %2630 }
 0x7ac   : > { %v3588_v59 = vrot.slane %v3580_v38, %v8291_v51  ;;  %v3595_v58 = vrot.slane %v3581_v18, %v8291_v51  ;;  %v2633_v8 = vpop.permute.xlu1 %2632 }
 0x7ad   : > { %v2641_v7 = vsel %vm2638_vm6, %v2631_v57, %v2633_v8 }
 0x7ae   : > { %v3596_v9 = vcombine.low %v3588_v59, %v3595_v58  ;;  %v3612_v13 = vcombine.high %v3588_v59, %v3595_v58  ;;  %v2635_v31 = vpop.permute.xlu0 %2634 }
 0x7af   : > { %v2640_v21 = vsel %vm2638_vm6, %v2633_v8, %v2635_v31 }
 0x7b0   : > { %v3597_v32 = vrot.slane %v3596_v9, 7  ;;  %v3606_v14 = vmul.f32 %v3596_v9, %v8330_v50  ;;  %v3613_v33 = vrot.slane %v3612_v13, 7  ;;  %v3622_v48 = vmul.f32 %v3612_v13, %v8330_v50  ;;  %v2637_v39 = vpop.permute.xlu1 %2636 }
 0x7b1   : > { %v2639_v20 = vsel %vm2638_vm6, %v2635_v31, %v2637_v39  ;;  %v2642_v28 = vsel %vm2638_vm6, %v2637_v39, %v2631_v57 }
 0x7b2   : > { %v3599_v29 = vmul.f32 %v3597_v32, %v8330_v50  ;;  %v6221_v30 = vrot.slane %v3606_v14, 9  ;;  %v3615_v47 = vmul.f32 %v3613_v33, %v8330_v50  ;;  %v6223_v42 = vrot.slane %v3622_v48, 9 }
 0x7b3   : > { %v2647_v63 = vcombine.low %v2642_v28, %v2641_v7  ;;  %v2648_v27 = vcombine.low %v2640_v21, %v2639_v20  ;;  %v2671_v19 = vcombine.high %v2642_v28, %v2641_v7  ;;  %v2672_v23 = vcombine.high %v2640_v21, %v2639_v20 }
 0x7b4   : > { %v6220_v49 = vrot.slane %v3599_v29, 9  ;;  %v3611_v54 = vadd.f32 %v6221_v30, %v3556_v22  ;;  %v6222_v62 = vrot.slane %v3615_v47, 9  ;;  %v3627_v11 = vadd.f32 %v6223_v42, %v3563_v26 }
 0x7b5   : > { %v2655_v52 = vrot.slane %v2647_v63, %v8291_v51  ;;  %v2662_v45 = vrot.slane %v2648_v27, %v8291_v51  ;;  %v2679_v53 = vrot.slane %v2671_v19, %v8291_v51  ;;  %v2686_v15 = vrot.slane %v2672_v23, %v8291_v51 }
 0x7b6   : > { %v3604_v46 = vadd.f32 %v6220_v49, %v3552_v17  ;;  %v3620_v38 = vadd.f32 %v6222_v62, %v3559_v5  ;;  %v3653_v50 = vrot.slane %v3611_v54, %v7487_v2  ;;  %v3657_v18 = vrot.slane %v3611_v54, %v7491_v4 }
 0x7b7   : > { %v3661_v10 = vrot.slane %v3611_v54, %v8384_v56  ;;  %v3665_v43 = vrot.slane %v3611_v54, %v8387_v16  ;;  %v3695_v57 = vrot.slane %v3627_v11, %v7487_v2  ;;  %v3699_v59 = vrot.slane %v3627_v11, %v7491_v4 }
 0x7b8   : > { %v3632_v58 = vrot.slane %v3604_v46, %v7487_v2  ;;  %v3636_v8 = vrot.slane %v3604_v46, %v7491_v4  ;;  %v3640_v51 = vrot.slane %v3604_v46, %v8384_v56  ;;  %v3644_v9 = vrot.slane %v3604_v46, %v8387_v16 }
 0x7b9   : > { %v3674_v13 = vrot.slane %v3620_v38, %v7487_v2  ;;  %v3678_v17 = vrot.slane %v3620_v38, %v7491_v4  ;;  %v3682_v22 = vrot.slane %v3620_v38, %v8384_v56  ;;  %v3686_v5 = vrot.slane %v3620_v38, %v8387_v16 }
 0x7ba   : > { %v3703_v26 = vrot.slane %v3627_v11, %v8384_v56  ;;  %v3707_v31 = vrot.slane %v3627_v11, %v8387_v16  ;;  %v3712_v32 = vsel %vm9112_vm5, %v3632_v58, %v3653_v50  ;;  %v3713_v14 = vsel %vm9113_vm7, %v3636_v8, %v3657_v18 }
 0x7bb   : > { %v3714_v33 = vsel %vm9114_vm10, %v3640_v51, %v3661_v10  ;;  %v3715_v48 = vsel %vm9115_vm9, %v3644_v9, %v3665_v43  ;;  %v3716_v39 = vsel %vm2932_vm11, %v3712_v32, %v3674_v13  ;;  %v3717_v7 = vsel %vm2932_vm11, %v3713_v14, %v3678_v17 }
 0x7bc   : > { %v3718_v21 = vsel %vm2932_vm11, %v3714_v33, %v3682_v22  ;;  %v3719_v20 = vsel %vm2932_vm11, %v3715_v48, %v3686_v5  ;;  %v3720_v28 = vsel %vm3229_vm4, %v3716_v39, %v3695_v57  ;;  %v3721_v29 = vsel %vm3229_vm4, %v3717_v7, %v3699_v59  ;;  %vm9116_vm11 = vmmov %vm9112_vm5 }
 0x7bd   : > { %v3722_v30 = vsel %vm3229_vm4, %v3718_v21, %v3703_v26  ;;  %v3723_v47 = vsel %vm3229_vm4, %v3719_v20, %v3707_v31  ;;  %v6488_v42 = vpack.c.bf16 %v3721_v29, %v3720_v28  ;;  %v2663_v63 = vcombine.high %v2655_v52, %v2662_v45  ;;  %vm9117_vm4 = vmmov %vm9112_vm5 }
 0x7be   : > { %v6489_v27 = vpack.c.bf16 %v3723_v47, %v3722_v30  ;;  %v2687_v19 = vcombine.high %v2679_v53, %v2686_v15  ;;  %vm9118_vm5 = vmmov %vm9117_vm4 }
 0x7bf   : > { %v3794_v23 = vrot.slane %v6488_v42, 5  ;;  %v2665_v49 = vmul.f32 %v2663_v63, %v8339_v55  ;;  %vm9119_vm7 = vmmov %vm9117_vm4 }
 0x7c0   : > { %v3795_v54 = vrot.slane %v6489_v27, 5  ;;  %v2689_v62 = vmul.f32 %v2687_v19, %v8339_v55  ;;  %vm9120_vm10 = vmmov %vm9117_vm4 }
 0x7c1   : > { %v3796_v11 = vrot.slane %v3794_v23, 4  ;;  %3802 = vst [vmem:[#allocation2 + $0x10] sm:$0x88] %v3794_v23  ;;  %v6178_v46 = vrot.slane %v2665_v49, 9  ;;  %vm9121_vm9 = vmmov %vm9117_vm4 }
 0x7c2   : > { %v3797_v38 = vrot.slane %v3795_v54, 4  ;;  %3803 = vst [vmem:[#allocation2 + $0x18] sm:$0x88] %v3795_v54  ;;  %v6179_v50 = vrot.slane %v2689_v62, 9 }
 0x7c3   : > { %3804 = vst [vmem:[#allocation2 + $0x20] sm:$0x11] %v3796_v11  ;;  %v2670_v18 = vadd.f32 %v6178_v46, %v8344_v6 }
 0x7c4   : > { %3805 = vst [vmem:[#allocation2 + $0x28] sm:$0x11] %v3797_v38  ;;  %v2694_v52 = vadd.f32 %v6179_v50, %v8346_v12 }
 0x7c5   : > { %v2699_v45 = vrot.slane %v2670_v18, %v7487_v2  ;;  %v2703_v53 = vrot.slane %v2670_v18, %v7491_v4  ;;  %v2707_v15 = vrot.slane %v2670_v18, %v8384_v56  ;;  %v2711_v55 = vrot.slane %v2670_v18, %v8387_v16 }
 0x7c6   : > { %v2720_v10 = vrot.slane %v2694_v52, %v7487_v2  ;;  %v2724_v43 = vrot.slane %v2694_v52, %v7491_v4  ;;  %v2728_v57 = vrot.slane %v2694_v52, %v8384_v56  ;;  %v2732_v59 = vrot.slane %v2694_v52, %v8387_v16 }
 0x7c8   : > { %v2737_v6 = vsel %vm9116_vm11, %v2699_v45, %v2720_v10  ;;  %v2738_v12 = vsel %vm9117_vm4, %v2703_v53, %v2724_v43  ;;  %v2739_v58 = vsel %vm9118_vm5, %v2707_v15, %v2728_v57  ;;  %v2740_v8 = vsel %vm9119_vm7, %v2711_v55, %v2732_v59  ;;  %vm9122_vm11 = vmmov %vm9117_vm4 }
 0x7c9   : > { %v6484_v51 = vpack.c.bf16 %v2738_v12, %v2737_v6  ;;  %v6485_v9 = vpack.c.bf16 %v2740_v8, %v2739_v58  ;;  %vm3843_vm5 = vcmask 146432  }
 0x7ca   : > { %v3811_v13 = vld [vmem:[#allocation2 + $0x20] sm:$0x11] }
 0x7cb   : > { %3758 = vst [vmem:[#allocation2 + $0x10] sm:$0x11] %v6484_v51  ;;  %3759 = vst [vmem:[#allocation2 + $0x18] sm:$0x11] %v6485_v9  ;;  %v3812_v4 = vld [vmem:[#allocation2 + $0x28] sm:$0x11]  ;;  %v6237_v26 = vcombine.high %v3811_v13, %v3811_v13  ;;  %v6236_v32 = vcombine.low %v3811_v13, %v3811_v13 }
 0x7cc   : > { %v6239_v31 = vcombine.high %v3812_v4, %v3812_v4  ;;  %v6238_v14 = vcombine.low %v3812_v4, %v3812_v4 }
 0x7cd   : > { %v3848_v33 = vsel %vm9122_vm11, %v6236_v32, 0 }
 0x7ce   : > { %v3854_v48 = vsel %vm9117_vm4, %v6238_v14, 0  ;;  %vm9123_vm4 = vcmp.lt.s32.totalorder %v7547_v25, 42 }
 0x7d2   : > { %v3809_v2 = vld [vmem:[#allocation2 + $0x10] sm:$0xff]  ;;  %v3810_v17 = vld [vmem:[#allocation2 + $0x18] sm:$0xff] }
 0x7d3   : > { %v6233_v56 = vcombine.high %v8174_v60, %v3809_v2  ;;  %v6235_v16 = vcombine.high %v8180_v61, %v3810_v17  ;;  %v6232_v22 = vcombine.low %v8174_v60, %v3809_v2  ;;  %v6234_v5 = vcombine.low %v8180_v61, %v3810_v17  ;;  %v3806_v60 = vld [vmem:[%s9004_s11] sm:$0xf] }
 0x7d5   : > { %3859 = vmatprep.subr.bf16.mxu0 %v6233_v56  ;;  %3900 = vmatprep.subr.bf16.mxu1 %v6235_v16 }
 0x7d6   : > { %3860 = vmatpush1.bf16.msra.mxu0 %v6232_v22  ;;  %3901 = vmatpush1.bf16.msra.mxu1 %v6234_v5 }
 0x7d7   : > { %6240 = vmatprep.subr.msk.bf16.mxu0 %vm9120_vm10, %v6237_v26  ;;  %6242 = vmatprep.subr.msk.bf16.mxu1 %vm9121_vm9, %v6239_v31 }
 0x7da   : > { %3862 = vmatpush1.bf16.msra.mxu0 %v3848_v33  ;;  %3903 = vmatpush1.bf16.msra.mxu1 %v3854_v48 }
 0x7dd   : > { %6241 = vmatmul.mubr.msk.bf16.vlgmr.msra.gmra.mrb[36].mxu0 %vm3843_vm5, %v3806_v60  ;;  %6243 = vmatmul.mubr.msk.bf16.vlgmr.msra.gmra.mrb[36].mxu1 %vm3843_vm5, %v3806_v60  ;;  %vm9124_vm5 = vmmov %vm9123_vm4 }
 0x7de   : > { %4367 = vmatprep.mubr.bf16.mxu0 %v7365_v24  ;;  %4408 = vmatprep.mubr.bf16.mxu1 %v7365_v24 }
 0x8b0   : > { %v3893_v61 = vpop.f32.mrb[36].mxu0  ;;  %v3934_v39 = vpop.f32.mrb[36].mxu1 }
 0x8b1   : > { %vm3941_vm7 = vcmp.ge.f32.partialorder %v3893_v61, 0.0  ;;  %v3945_v7 = vmul.f32 0.1, %v3893_v61  ;;  %vm3943_vm10 = vcmp.ge.f32.partialorder %v3934_v39, 0.0  ;;  %v3947_v21 = vmul.f32 0.1, %v3934_v39 }
 0x8b2   : > { %v3895_v20 = vpop.f32.mrb[37].mxu0  ;;  %v3936_v28 = vpop.f32.mrb[37].mxu1 }
 0x8b3   : > { %v8519_v29 = vsel %vm3941_vm7, %v3893_v61, %v3945_v7  ;;  %vm3942_vm9 = vcmp.ge.f32.partialorder %v3895_v20, 0.0  ;;  %v3946_v30 = vmul.f32 0.1, %v3895_v20  ;;  %v3897_v47 = vpop.f32.mrb[38].mxu0  ;;  %v3938_v42 = vpop.f32.mrb[38].mxu1  ;;  %v8521_v63 = vsel %vm3943_vm10, %v3934_v39, %v3947_v21  ;;  %vm9125_vm7 = vmmov %vm9123_vm4 }
 0x8b4   : > { %vm3944_vm11 = vcmp.ge.f32.partialorder %v3936_v28, 0.0  ;;  %v3948_v27 = vmul.f32 0.1, %v3936_v28  ;;  %v3898_v19 = vpop.f32.mrb[39].mxu0  ;;  %v3939_v23 = vpop.f32.mrb[39].mxu1  ;;  %vm9126_vm10 = vmmov %vm9123_vm4 }
 0x8b5   : > { %v8523_v49 = vsel %vm3942_vm9, %v3895_v20, %v3946_v30  ;;  %vm9127_vm9 = vcmp.lt.s32.totalorder %v7547_v25, 38 }
 0x8b6   : > { %v8525_v54 = vsel %vm3944_vm11, %v3936_v28, %v3948_v27  ;;  %v6880_v62 = vpack.i.bf16 %v8523_v49, %v8519_v29  ;;  %vm9128_vm11 = vmmov %vm9127_vm9 }
 0x8b7   : > { %v6885_v11 = vpack.i.bf16 %v8525_v54, %v8521_v63 }
 0x8b8   : > { %6881 = vrot.lane.b32.xlu0 %v6880_v62, %s7359_s22 }
 0x8b9   : > { %6886 = vrot.lane.b32.xlu1 %v6885_v11, %s7359_s22 }
 0x8bc   : > { %6891 = vrot.lane.b32.xlu0 %v6880_v62, %s7363_s25 }
 0x8bd   : > { %6896 = vrot.lane.b32.xlu1 %v6885_v11, %s7363_s25 }
 0x8c0   : > { %6901 = vrot.lane.b32.xlu0 %v6880_v62, %s7358_s21 }
 0x8c1   : > { %6906 = vrot.lane.b32.xlu1 %v6885_v11, %s7358_s21 }
 0x8c4   : > { %6911 = vrot.lane.b32.xlu0 %v6880_v62, %s7360_s2 }
 0x8c5   : > { %6916 = vrot.lane.b32.xlu1 %v6885_v11, %s7360_s2 }
 0x8c8   : > { %6921 = vrot.lane.b32.xlu0 %v6880_v62, %s7361_s23 }
 0x8c9   : > { %6926 = vrot.lane.b32.xlu1 %v6885_v11, %s7361_s23 }
 0x8cc   : > { %6931 = vrot.lane.b32.xlu0 %v6880_v62, %s7357_s20 }
 0x8cd   : > { %6936 = vrot.lane.b32.xlu1 %v6885_v11, %s7357_s20 }
 0x8d0   : > { %6941 = vrot.lane.b32.xlu0 %v6880_v62, %s7362_s24 }
 0x8d1   : > { %6946 = vrot.lane.b32.xlu1 %v6885_v11, %s7362_s24 }
 0x8d4   : > { %6951 = vrot.lane.b32.xlu0 %v6880_v62, %s7364_s26 }
 0x8d5   : > { %6956 = vrot.lane.b32.xlu1 %v6885_v11, %s7364_s26 }
 0x92a   : > { %v6882_v46 = vpop.permute.xlu0 %6881 }
 0x92b   : > { %v6887_v38 = vpop.permute.xlu1 %6886  ;;  %v6884_v50 = vunpack.i.h.bf16 %v6882_v46  ;;  %v6883_v18 = vunpack.i.l.bf16 %v6882_v46 }
 0x92c   : > { %v6889_v52 = vunpack.i.h.bf16 %v6887_v38  ;;  %v6888_v45 = vunpack.i.l.bf16 %v6887_v38 }
 0x92d   : > { %v3963_v10 = vsel %vm9125_vm7, %v6883_v18, %v6884_v50  ;;  %vm9131_vm7 = vcmp.lt.s32.totalorder %v7547_v25, 90 }
 0x92e   : > { %v3961_v53 = vsel %vm9123_vm4, %v6888_v45, %v6889_v52  ;;  %v3962_v15 = vsel %vm9124_vm5, %v6884_v50, %v6888_v45  ;;  %v6892_v55 = vpop.permute.xlu0 %6891  ;;  %v3964_v43 = vsel %vm9126_vm10, %v6889_v52, %v6883_v18  ;;  %vm9129_vm4 = vmmov %vm9127_vm9 }
 0x92f   : > { %v6897_v57 = vpop.permute.xlu1 %6896  ;;  %v6894_v59 = vunpack.i.h.bf16 %v6892_v55  ;;  %v6893_v6 = vunpack.i.l.bf16 %v6892_v55  ;;  %vm9130_vm5 = vmmov %vm9129_vm4 }
 0x930   : > { %v6899_v12 = vunpack.i.h.bf16 %v6897_v57  ;;  %v6898_v58 = vunpack.i.l.bf16 %v6897_v57  ;;  %vm9132_vm10 = vmmov %vm9131_vm7 }
 0x931   : > { %v3993_v8 = vsel %vm649_vm3, %v6893_v6, %v6894_v59 }
 0x932   : > { %v3991_v51 = vsel %vm649_vm3, %v6898_v58, %v6899_v12  ;;  %v3992_v9 = vsel %vm649_vm3, %v6894_v59, %v6898_v58  ;;  %v3994_v13 = vsel %vm649_vm3, %v6899_v12, %v6893_v6  ;;  %v6902_v2 = vpop.permute.xlu0 %6901  ;;  %v7269_v5 = vpack.c.bf16 %v3993_v8, %v3963_v10 }
 0x933   : > { %v6907_v17 = vpop.permute.xlu1 %6906  ;;  %v6904_v4 = vunpack.i.h.bf16 %v6902_v2  ;;  %v6903_v56 = vunpack.i.l.bf16 %v6902_v2  ;;  %v7270_v26 = vpack.c.bf16 %v3991_v51, %v3961_v53  ;;  %v7271_v31 = vpack.c.bf16 %v3994_v13, %v3964_v43 }
 0x934   : > { %v6909_v16 = vunpack.i.h.bf16 %v6907_v17  ;;  %v6908_v22 = vunpack.i.l.bf16 %v6907_v17  ;;  %v7272_v48 = vpack.c.bf16 %v3992_v9, %v3962_v15  ;;  %4335 = vmatprep.subr.bf16.mxu0 %v7269_v5 }
 0x935   : > { %v4023_v60 = vsel %vm9129_vm4, %v6903_v56, %v6904_v4  ;;  %4376 = vmatprep.subr.bf16.mxu1 %v7270_v26  ;;  %4336 = vmatpush1.bf16.msra.mxu0 %v7271_v31  ;;  %vm9135_vm4 = vcmp.lt.s32.totalorder %v7547_v25, 42 }
 0x936   : > { %v4021_v32 = vsel %vm9127_vm9, %v6908_v22, %v6909_v16  ;;  %v4022_v14 = vsel %vm9128_vm11, %v6904_v4, %v6908_v22  ;;  %v6912_v33 = vpop.permute.xlu0 %6911  ;;  %v4024_v61 = vsel %vm9130_vm5, %v6909_v16, %v6903_v56  ;;  %4377 = vmatpush1.bf16.msra.mxu1 %v7272_v48  ;;  %vm9133_vm9 = vmmov %vm9131_vm7 }
 0x937   : > { %v6917_v39 = vpop.permute.xlu1 %6916  ;;  %v6914_v7 = vunpack.i.h.bf16 %v6912_v33  ;;  %v6913_v21 = vunpack.i.l.bf16 %v6912_v33  ;;  %vm9134_vm11 = vmmov %vm9131_vm7 }
 0x938   : > { %v6919_v20 = vunpack.i.h.bf16 %v6917_v39  ;;  %v6918_v28 = vunpack.i.l.bf16 %v6917_v39  ;;  %vm9136_vm5 = vmmov %vm9135_vm4 }
 0x939   : > { %v4053_v30 = vsel %vm739_vm12, %v6913_v21, %v6914_v7 }
 0x93a   : > { %v4051_v47 = vsel %vm739_vm12, %v6918_v28, %v6919_v20  ;;  %v4052_v42 = vsel %vm739_vm12, %v6914_v7, %v6918_v28  ;;  %v4054_v27 = vsel %vm739_vm12, %v6919_v20, %v6913_v21  ;;  %v6922_v19 = vpop.permute.xlu0 %6921  ;;  %v7273_v18 = vpack.c.bf16 %v4053_v30, %v4023_v60 }
 0x93b   : > { %v6927_v23 = vpop.permute.xlu1 %6926  ;;  %v6924_v62 = vunpack.i.h.bf16 %v6922_v19  ;;  %v6923_v11 = vunpack.i.l.bf16 %v6922_v19  ;;  %v7274_v52 = vpack.c.bf16 %v4051_v47, %v4021_v32  ;;  %v7275_v45 = vpack.c.bf16 %v4054_v27, %v4024_v61 }
 0x93c   : > { %v6929_v46 = vunpack.i.h.bf16 %v6927_v23  ;;  %v6928_v38 = vunpack.i.l.bf16 %v6927_v23  ;;  %v7276_v43 = vpack.c.bf16 %v4052_v42, %v4022_v14  ;;  %4337 = vmatprep.subr.bf16.mxu0 %v7273_v18 }
 0x93d   : > { %v4101_v50 = vsel %vm818_vm1, %v6923_v11, %v6924_v62  ;;  %4378 = vmatprep.subr.bf16.mxu1 %v7274_v52  ;;  %4338 = vmatpush1.bf16.msra.mxu0 %v7275_v45 }
 0x93e   : > { %v4099_v53 = vsel %vm818_vm1, %v6928_v38, %v6929_v46  ;;  %v4100_v15 = vsel %vm818_vm1, %v6924_v62, %v6928_v38  ;;  %v4102_v55 = vsel %vm818_vm1, %v6929_v46, %v6923_v11  ;;  %v6932_v10 = vpop.permute.xlu0 %6931  ;;  %4379 = vmatpush1.bf16.msra.mxu1 %v7276_v43  ;;  %v7279_v9 = vpack.c.bf16 %v4101_v50, %v8519_v29  ;;  %v4211_v50 = vld [vmem:[%s9005_s12] sm:$0xf] }
 0x93f   : > { %v6937_v57 = vpop.permute.xlu1 %6936  ;;  %v6934_v59 = vunpack.i.h.bf16 %v6932_v10  ;;  %v6933_v6 = vunpack.i.l.bf16 %v6932_v10  ;;  %v7277_v8 = vpack.c.bf16 %v4100_v15, %v8523_v49  ;;  %v7278_v51 = vpack.c.bf16 %v4102_v55, %v8525_v54 }
 0x940   : > { %v6939_v12 = vunpack.i.h.bf16 %v6937_v57  ;;  %v6938_v58 = vunpack.i.l.bf16 %v6937_v57  ;;  %v7280_v4 = vpack.c.bf16 %v4099_v53, %v8521_v63 }
 0x941   : > { %v4131_v2 = vsel %vm9132_vm10, %v6933_v6, %v6934_v59  ;;  %4339 = vmatprep.subr.bf16.mxu0 %v7277_v8  ;;  %4380 = vmatprep.subr.bf16.mxu1 %v7278_v51  ;;  %vm9138_vm10 = vmmov %vm9135_vm4 }
 0x942   : > { %v4130_v13 = vsel %vm9131_vm7, %v6934_v59, %v6938_v58  ;;  %v6942_v17 = vpop.permute.xlu0 %6941  ;;  %v4129_v56 = vsel %vm9133_vm9, %v6938_v58, %v6939_v12  ;;  %v4132_v16 = vsel %vm9134_vm11, %v6939_v12, %v6933_v6  ;;  %4340 = vmatpush1.bf16.msra.mxu0 %v7279_v9  ;;  %4381 = vmatpush1.bf16.msra.mxu1 %v7280_v4  ;;  %vm9137_vm7 = vmmov %vm9135_vm4  ;;  %vm9139_vm9 = vcmp.lt.s32.totalorder %v7547_v25, 38 }
 0x943   : > { %v6947_v49 = vpop.permute.xlu1 %6946  ;;  %v6944_v22 = vunpack.i.h.bf16 %v6942_v17  ;;  %v6943_v54 = vunpack.i.l.bf16 %v6942_v17  ;;  %vm9140_vm11 = vmmov %vm9139_vm9 }
 0x944   : > { %v6949_v29 = vunpack.i.h.bf16 %v6947_v49  ;;  %v6948_v5 = vunpack.i.l.bf16 %v6947_v49 }
 0x945   : > { %v4161_v26 = vsel %vm910_vm2, %v6943_v54, %v6944_v22 }
 0x946   : > { %v4159_v63 = vsel %vm910_vm2, %v6948_v5, %v6949_v29  ;;  %v4160_v31 = vsel %vm910_vm2, %v6944_v22, %v6948_v5  ;;  %v4162_v32 = vsel %vm910_vm2, %v6949_v29, %v6943_v54  ;;  %v6952_v14 = vpop.permute.xlu0 %6951  ;;  %v7283_v28 = vpack.c.bf16 %v4161_v26, %v4131_v2 }
 0x947   : > { %v6957_v33 = vpop.permute.xlu1 %6956  ;;  %v6954_v48 = vunpack.i.h.bf16 %v6952_v14  ;;  %v6953_v60 = vunpack.i.l.bf16 %v6952_v14  ;;  %v7281_v21 = vpack.c.bf16 %v4160_v31, %v4130_v13  ;;  %v7282_v20 = vpack.c.bf16 %v4162_v32, %v4132_v16 }
 0x948   : > { %v6959_v61 = vunpack.i.h.bf16 %v6957_v33  ;;  %v6958_v39 = vunpack.i.l.bf16 %v6957_v33  ;;  %v7284_v27 = vpack.c.bf16 %v4159_v63, %v4129_v56 }
 0x949   : > { %v4191_v7 = vsel %vm958_vm14, %v6953_v60, %v6954_v48  ;;  %4341 = vmatprep.subr.bf16.mxu0 %v7281_v21  ;;  %4382 = vmatprep.subr.bf16.mxu1 %v7282_v20 }
 0x94a   : > { %v4189_v30 = vsel %vm958_vm14, %v6958_v39, %v6959_v61  ;;  %v4190_v47 = vsel %vm958_vm14, %v6954_v48, %v6958_v39  ;;  %v4192_v42 = vsel %vm958_vm14, %v6959_v61, %v6953_v60  ;;  %4342 = vmatpush1.bf16.msra.mxu0 %v7283_v28  ;;  %4383 = vmatpush1.bf16.msra.mxu1 %v7284_v27 }
 0x94b   : > { %v7285_v19 = vpack.c.bf16 %v4190_v47, %v4190_v47  ;;  %v7286_v23 = vpack.c.bf16 %v4192_v42, %v4192_v42  ;;  %v7287_v62 = vpack.c.bf16 %v4191_v7, %v4191_v7  ;;  %v7288_v11 = vpack.c.bf16 %v4189_v30, %v4189_v30 }
 0x94d   : > { %6282 = vmatprep.subr.msk.bf16.mxu0 %vm1010_vm0, %v7285_v19  ;;  %6284 = vmatprep.subr.msk.bf16.mxu1 %vm1010_vm0, %v7286_v23  ;;  %v4324_v46 = vsel %vm1010_vm0, %v7287_v62, 0  ;;  %v4330_v38 = vsel %vm1010_vm0, %v7288_v11, 0 }
 0x94e   : > { %4344 = vmatpush1.bf16.msra.mxu0 %v4324_v46  ;;  %4385 = vmatpush1.bf16.msra.mxu1 %v4330_v38 }
 0x951   : > { %6283 = vmatmul.mubr.msk.bf16.vlgmr.msra.gmra.mrb[40].mxu0 %vm1500_vm15, %v4211_v50  ;;  %6285 = vmatmul.mubr.msk.bf16.vlgmr.msra.gmra.mrb[40].mxu1 %vm1500_vm15, %v4211_v50 }
 0x952   : > { %4839 = vmatprep.mubr.bf16.mxu0 %v7365_v24  ;;  %4880 = vmatprep.mubr.bf16.mxu1 %v7365_v24 }
 0xa24   : > { %v4369_v18 = vpop.f32.mrb[40].mxu0  ;;  %v4410_v52 = vpop.f32.mrb[40].mxu1 }
 0xa25   : > { %v4417_v45 = vmul.f32 %v4369_v18, %v7791_v34  ;;  %v4419_v53 = vmul.f32 %v4410_v52, %v7794_v35  ;;  %v4371_v15 = vpop.f32.mrb[41].mxu0  ;;  %v4412_v55 = vpop.f32.mrb[41].mxu1 }
 0xa26   : > { %v4418_v10 = vmul.f32 %v4371_v15, %v7798_v36  ;;  %v4420_v43 = vmul.f32 %v4412_v55, %v7802_v37  ;;  %v4373_v57 = vpop.f32.mrb[42].mxu0  ;;  %v4414_v59 = vpop.f32.mrb[42].mxu1 }
 0xa27   : > { %v8631_v6 = vadd.f32 %v4417_v45, %v7805_v40  ;;  %v8634_v12 = vadd.f32 %v4419_v53, %v7808_v41  ;;  %v4374_v58 = vpop.f32.mrb[43].mxu0  ;;  %v4415_v8 = vpop.f32.mrb[43].mxu1 }
 0xa28   : > { %v8637_v51 = vadd.f32 %v4418_v10, %v7811_v44  ;;  %v8640_v9 = vadd.f32 %v4420_v43, %v7814_v3 }
 0xa2a   : > { %v6965_v13 = vpack.i.bf16 %v8640_v9, %v8634_v12  ;;  %v6960_v2 = vpack.i.bf16 %v8637_v51, %v8631_v6 }
 0xa2c   : > { %6966 = vrot.lane.b32.xlu1 %v6965_v13, %s7359_s22  ;;  %6961 = vrot.lane.b32.xlu0 %v6960_v2, %s7359_s22 }
 0xa30   : > { %6976 = vrot.lane.b32.xlu1 %v6965_v13, %s7363_s25  ;;  %6971 = vrot.lane.b32.xlu0 %v6960_v2, %s7363_s25 }
 0xa34   : > { %6986 = vrot.lane.b32.xlu1 %v6965_v13, %s7358_s21  ;;  %6981 = vrot.lane.b32.xlu0 %v6960_v2, %s7358_s21 }
 0xa38   : > { %6996 = vrot.lane.b32.xlu1 %v6965_v13, %s7360_s2  ;;  %6991 = vrot.lane.b32.xlu0 %v6960_v2, %s7360_s2 }
 0xa3c   : > { %7006 = vrot.lane.b32.xlu1 %v6965_v13, %s7361_s23  ;;  %7001 = vrot.lane.b32.xlu0 %v6960_v2, %s7361_s23 }
 0xa40   : > { %7016 = vrot.lane.b32.xlu1 %v6965_v13, %s7357_s20  ;;  %7011 = vrot.lane.b32.xlu0 %v6960_v2, %s7357_s20 }
 0xa44   : > { %7026 = vrot.lane.b32.xlu1 %v6965_v13, %s7362_s24  ;;  %7021 = vrot.lane.b32.xlu0 %v6960_v2, %s7362_s24 }
 0xa48   : > { %7036 = vrot.lane.b32.xlu1 %v6965_v13, %s7364_s26  ;;  %7031 = vrot.lane.b32.xlu0 %v6960_v2, %s7364_s26 }
 0xa9e   : > { %v6967_v17 = vpop.permute.xlu1 %6966  ;;  %v6962_v4 = vpop.permute.xlu0 %6961 }
 0xa9f   : > { %v6969_v56 = vunpack.i.h.bf16 %v6967_v17  ;;  %v6968_v16 = vunpack.i.l.bf16 %v6967_v17  ;;  %v6964_v49 = vunpack.i.h.bf16 %v6962_v4  ;;  %v6963_v22 = vunpack.i.l.bf16 %v6962_v4 }
 0xaa1   : > { %v4433_v54 = vsel %vm9135_vm4, %v6968_v16, %v6969_v56  ;;  %v4434_v29 = vsel %vm9136_vm5, %v6964_v49, %v6968_v16  ;;  %v4435_v5 = vsel %vm9137_vm7, %v6963_v22, %v6964_v49  ;;  %v4436_v26 = vsel %vm9138_vm10, %v6969_v56, %v6963_v22  ;;  %vm9141_vm4 = vmmov %vm9139_vm9 }
 0xaa2   : > { %v6977_v63 = vpop.permute.xlu1 %6976  ;;  %v6972_v31 = vpop.permute.xlu0 %6971  ;;  %vm9142_vm5 = vmmov %vm9141_vm4  ;;  %vm9143_vm7 = vcmp.lt.s32.totalorder %v7547_v25, 90 }
 0xaa3   : > { %v6979_v32 = vunpack.i.h.bf16 %v6977_v63  ;;  %v6978_v14 = vunpack.i.l.bf16 %v6977_v63  ;;  %v6974_v33 = vunpack.i.h.bf16 %v6972_v31  ;;  %v6973_v48 = vunpack.i.l.bf16 %v6972_v31  ;;  %vm9144_vm10 = vmmov %vm9143_vm7 }
 0xaa5   : > { %v4463_v60 = vsel %vm649_vm3, %v6978_v14, %v6979_v32  ;;  %v4464_v61 = vsel %vm649_vm3, %v6974_v33, %v6978_v14  ;;  %v4465_v39 = vsel %vm649_vm3, %v6973_v48, %v6974_v33  ;;  %v4466_v7 = vsel %vm649_vm3, %v6979_v32, %v6973_v48 }
 0xaa6   : > { %v6987_v21 = vpop.permute.xlu1 %6986  ;;  %v6982_v20 = vpop.permute.xlu0 %6981  ;;  %v7289_v27 = vpack.c.bf16 %v4465_v39, %v4435_v5  ;;  %v7290_v19 = vpack.c.bf16 %v4463_v60, %v4433_v54  ;;  %v7291_v23 = vpack.c.bf16 %v4466_v7, %v4436_v26  ;;  %v7292_v62 = vpack.c.bf16 %v4464_v61, %v4434_v29 }
 0xaa7   : > { %v6989_v28 = vunpack.i.h.bf16 %v6987_v21  ;;  %v6988_v30 = vunpack.i.l.bf16 %v6987_v21  ;;  %v6984_v47 = vunpack.i.h.bf16 %v6982_v20  ;;  %v6983_v42 = vunpack.i.l.bf16 %v6982_v20 }
 0xaa8   : > { %4807 = vmatprep.subr.bf16.mxu0 %v7289_v27  ;;  %4848 = vmatprep.subr.bf16.mxu1 %v7290_v19 }
 0xaa9   : > { %v4493_v11 = vsel %vm9139_vm9, %v6988_v30, %v6989_v28  ;;  %v4494_v46 = vsel %vm9140_vm11, %v6984_v47, %v6988_v30  ;;  %v4495_v38 = vsel %vm9141_vm4, %v6983_v42, %v6984_v47  ;;  %v4496_v50 = vsel %vm9142_vm5, %v6989_v28, %v6983_v42  ;;  %4808 = vmatpush1.bf16.msra.mxu0 %v7291_v23  ;;  %vm9145_vm9 = vmmov %vm9143_vm7 }
 0xaaa   : > { %v6997_v18 = vpop.permute.xlu1 %6996  ;;  %v6992_v52 = vpop.permute.xlu0 %6991  ;;  %4849 = vmatpush1.bf16.msra.mxu1 %v7292_v62  ;;  %vm9146_vm11 = vmmov %vm9143_vm7  ;;  %vm9147_vm4 = vcmp.lt.s32.totalorder %v7547_v25, 42 }
 0xaab   : > { %v6999_v45 = vunpack.i.h.bf16 %v6997_v18  ;;  %v6998_v53 = vunpack.i.l.bf16 %v6997_v18  ;;  %v6994_v15 = vunpack.i.h.bf16 %v6992_v52  ;;  %v6993_v55 = vunpack.i.l.bf16 %v6992_v52  ;;  %vm9148_vm5 = vmmov %vm9147_vm4 }
 0xaad   : > { %v4523_v10 = vsel %vm739_vm12, %v6998_v53, %v6999_v45  ;;  %v4524_v43 = vsel %vm739_vm12, %v6994_v15, %v6998_v53  ;;  %v4525_v57 = vsel %vm739_vm12, %v6993_v55, %v6994_v15  ;;  %v4526_v59 = vsel %vm739_vm12, %v6999_v45, %v6993_v55 }
 0xaae   : > { %v7007_v58 = vpop.permute.xlu1 %7006  ;;  %v7002_v8 = vpop.permute.xlu0 %7001  ;;  %v7293_v56 = vpack.c.bf16 %v4525_v57, %v4495_v38  ;;  %v7294_v16 = vpack.c.bf16 %v4523_v10, %v4493_v11  ;;  %v7295_v49 = vpack.c.bf16 %v4526_v59, %v4496_v50  ;;  %v7296_v22 = vpack.c.bf16 %v4524_v43, %v4494_v46 }
 0xaaf   : > { %v7009_v13 = vunpack.i.h.bf16 %v7007_v58  ;;  %v7008_v2 = vunpack.i.l.bf16 %v7007_v58  ;;  %v7004_v17 = vunpack.i.h.bf16 %v7002_v8  ;;  %v7003_v4 = vunpack.i.l.bf16 %v7002_v8 }
 0xab0   : > { %4809 = vmatprep.subr.bf16.mxu0 %v7293_v56  ;;  %4850 = vmatprep.subr.bf16.mxu1 %v7294_v16  ;;  %v4683_v56 = vld [vmem:[%s9006_s13] sm:$0xf] }
 0xab1   : > { %v4571_v54 = vsel %vm818_vm1, %v7008_v2, %v7009_v13  ;;  %v4572_v29 = vsel %vm818_vm1, %v7004_v17, %v7008_v2  ;;  %v4573_v5 = vsel %vm818_vm1, %v7003_v4, %v7004_v17  ;;  %v4574_v26 = vsel %vm818_vm1, %v7009_v13, %v7003_v4  ;;  %4810 = vmatpush1.bf16.msra.mxu0 %v7295_v49 }
 0xab2   : > { %v7017_v63 = vpop.permute.xlu1 %7016  ;;  %v7012_v31 = vpop.permute.xlu0 %7011  ;;  %4851 = vmatpush1.bf16.msra.mxu1 %v7296_v22  ;;  %v7297_v60 = vpack.c.bf16 %v4572_v29, %v8637_v51  ;;  %v7298_v61 = vpack.c.bf16 %v4574_v26, %v8640_v9  ;;  %v7299_v39 = vpack.c.bf16 %v4573_v5, %v8631_v6  ;;  %v7300_v7 = vpack.c.bf16 %v4571_v54, %v8634_v12 }
 0xab3   : > { %v7019_v32 = vunpack.i.h.bf16 %v7017_v63  ;;  %v7018_v14 = vunpack.i.l.bf16 %v7017_v63  ;;  %v7014_v33 = vunpack.i.h.bf16 %v7012_v31  ;;  %v7013_v48 = vunpack.i.l.bf16 %v7012_v31 }
 0xab4   : > { %4811 = vmatprep.subr.bf16.mxu0 %v7297_v60  ;;  %4852 = vmatprep.subr.bf16.mxu1 %v7298_v61 }
 0xab5   : > { %v4601_v21 = vsel %vm9143_vm7, %v7018_v14, %v7019_v32  ;;  %v4602_v20 = vsel %vm9144_vm10, %v7014_v33, %v7018_v14  ;;  %v4603_v28 = vsel %vm9145_vm9, %v7013_v48, %v7014_v33  ;;  %v4604_v30 = vsel %vm9146_vm11, %v7019_v32, %v7013_v48  ;;  %4812 = vmatpush1.bf16.msra.mxu0 %v7299_v39  ;;  %vm9149_vm7 = vmmov %vm9147_vm4 }
 0xab6   : > { %v7027_v47 = vpop.permute.xlu1 %7026  ;;  %v7022_v51 = vpop.permute.xlu0 %7021  ;;  %4853 = vmatpush1.bf16.msra.mxu1 %v7300_v7  ;;  %vm9150_vm10 = vmmov %vm9147_vm4  ;;  %vm9151_vm9 = vcmp.lt.s32.totalorder %v7547_v25, 38 }
 0xab7   : > { %v7029_v9 = vunpack.i.h.bf16 %v7027_v47  ;;  %v7028_v6 = vunpack.i.l.bf16 %v7027_v47  ;;  %v7024_v42 = vunpack.i.h.bf16 %v7022_v51  ;;  %v7023_v12 = vunpack.i.l.bf16 %v7022_v51  ;;  %vm9152_vm11 = vmmov %vm9151_vm9 }
 0xab9   : > { %v4631_v27 = vsel %vm910_vm2, %v7028_v6, %v7029_v9  ;;  %v4632_v19 = vsel %vm910_vm2, %v7024_v42, %v7028_v6  ;;  %v4633_v23 = vsel %vm910_vm2, %v7023_v12, %v7024_v42  ;;  %v4634_v62 = vsel %vm910_vm2, %v7029_v9, %v7023_v12 }
 0xaba   : > { %v7037_v11 = vpop.permute.xlu1 %7036  ;;  %v7032_v46 = vpop.permute.xlu0 %7031  ;;  %v7301_v45 = vpack.c.bf16 %v4632_v19, %v4602_v20  ;;  %v7302_v53 = vpack.c.bf16 %v4634_v62, %v4604_v30  ;;  %v7303_v15 = vpack.c.bf16 %v4633_v23, %v4603_v28  ;;  %v7304_v55 = vpack.c.bf16 %v4631_v27, %v4601_v21 }
 0xabb   : > { %v7039_v38 = vunpack.i.h.bf16 %v7037_v11  ;;  %v7038_v50 = vunpack.i.l.bf16 %v7037_v11  ;;  %v7034_v18 = vunpack.i.h.bf16 %v7032_v46  ;;  %v7033_v52 = vunpack.i.l.bf16 %v7032_v46 }
 0xabc   : > { %4813 = vmatprep.subr.bf16.mxu0 %v7301_v45  ;;  %4854 = vmatprep.subr.bf16.mxu1 %v7302_v53 }
 0xabd   : > { %v4661_v10 = vsel %vm958_vm14, %v7038_v50, %v7039_v38  ;;  %v4662_v43 = vsel %vm958_vm14, %v7034_v18, %v7038_v50  ;;  %v4663_v57 = vsel %vm958_vm14, %v7033_v52, %v7034_v18  ;;  %v4664_v59 = vsel %vm958_vm14, %v7039_v38, %v7033_v52  ;;  %4814 = vmatpush1.bf16.msra.mxu0 %v7303_v15 }
 0xabe   : > { %4855 = vmatpush1.bf16.msra.mxu1 %v7304_v55  ;;  %v7305_v58 = vpack.c.bf16 %v4662_v43, %v4662_v43  ;;  %v7306_v8 = vpack.c.bf16 %v4664_v59, %v4664_v59  ;;  %v7307_v13 = vpack.c.bf16 %v4663_v57, %v4663_v57  ;;  %v7308_v2 = vpack.c.bf16 %v4661_v10, %v4661_v10 }
 0xac0   : > { %6324 = vmatprep.subr.msk.bf16.mxu0 %vm1010_vm0, %v7305_v58  ;;  %6326 = vmatprep.subr.msk.bf16.mxu1 %vm1010_vm0, %v7306_v8  ;;  %v4796_v17 = vsel %vm1010_vm0, %v7307_v13, 0  ;;  %v4802_v4 = vsel %vm1010_vm0, %v7308_v2, 0 }
 0xac1   : > { %4816 = vmatpush1.bf16.msra.mxu0 %v4796_v17 }
 0xac2   : > { %4857 = vmatpush1.bf16.msra.mxu1 %v4802_v4 }
 0xac4   : > { %6325 = vmatmul.mubr.msk.bf16.vlgmr.msra.gmra.mrb[44].mxu0 %vm1500_vm15, %v4683_v56 }
 0xac5   : > { %6327 = vmatmul.mubr.msk.bf16.vlgmr.msra.gmra.mrb[44].mxu1 %vm1500_vm15, %v4683_v56  ;;  %5311 = vmatprep.mubr.bf16.mxu0 %v7365_v24 }
 0xac6   : > { %5352 = vmatprep.mubr.bf16.mxu1 %v7365_v24 }
 0xb97   : > { %v4841_v16 = vpop.f32.mrb[44].mxu0 }
 0xb98   : > { %v4882_v49 = vpop.f32.mrb[44].mxu1  ;;  %v4889_v22 = vmul.f32 %v4841_v16, %v7791_v34  ;;  %v4843_v29 = vpop.f32.mrb[45].mxu0 }
 0xb99   : > { %v4891_v54 = vmul.f32 %v4882_v49, %v7794_v35  ;;  %v4884_v5 = vpop.f32.mrb[45].mxu1  ;;  %v4890_v26 = vmul.f32 %v4843_v29, %v7798_v36  ;;  %v4845_v31 = vpop.f32.mrb[46].mxu0 }
 0xb9a   : > { %v4892_v63 = vmul.f32 %v4884_v5, %v7802_v37  ;;  %v4886_v32 = vpop.f32.mrb[46].mxu1  ;;  %v8746_v14 = vadd.f32 %v4889_v22, %v7805_v40  ;;  %v4846_v48 = vpop.f32.mrb[47].mxu0 }
 0xb9b   : > { %v8749_v33 = vadd.f32 %v4891_v54, %v7808_v41  ;;  %v4887_v60 = vpop.f32.mrb[47].mxu1  ;;  %v8752_v61 = vadd.f32 %v4890_v26, %v7811_v44 }
 0xb9c   : > { %v8755_v39 = vadd.f32 %v4892_v63, %v7814_v3 }
 0xb9d   : > { %v7040_v21 = vpack.i.bf16 %v8752_v61, %v8746_v14 }
 0xb9e   : > { %v7045_v7 = vpack.i.bf16 %v8755_v39, %v8749_v33 }
 0xb9f   : > { %7041 = vrot.lane.b32.xlu0 %v7040_v21, %s7359_s22 }
 0xba0   : > { %7046 = vrot.lane.b32.xlu1 %v7045_v7, %s7359_s22  ;;  %s7374_s22 = smov 19  }
 0xba3   : > { %7051 = vrot.lane.b32.xlu0 %v7040_v21, %s7363_s25 }
 0xba4   : > { %7056 = vrot.lane.b32.xlu1 %v7045_v7, %s7363_s25  ;;  %s9161_s25 = smov 107  }
 0xba7   : > { %7061 = vrot.lane.b32.xlu0 %v7040_v21, %s7358_s21 }
 0xba8   : > { %7066 = vrot.lane.b32.xlu1 %v7045_v7, %s7358_s21 }
 0xbab   : > { %7071 = vrot.lane.b32.xlu0 %v7040_v21, %s7360_s2 }
 0xbac   : > { %7076 = vrot.lane.b32.xlu1 %v7045_v7, %s7360_s2  ;;  %s9159_s2 = smov 127  }
 0xbaf   : > { %7081 = vrot.lane.b32.xlu0 %v7040_v21, %s7361_s23 }
 0xbb0   : > { %7086 = vrot.lane.b32.xlu1 %v7045_v7, %s7361_s23  ;;  %s7375_s23 = smov 109  }
 0xbb3   : > { %7091 = vrot.lane.b32.xlu0 %v7040_v21, %s7357_s20 }
 0xbb4   : > { %7096 = vrot.lane.b32.xlu1 %v7045_v7, %s7357_s20  ;;  %s9174_s20 = sshll.u32 %s9176_s28, 2 }
 0xbb7   : > { %7101 = vrot.lane.b32.xlu0 %v7040_v21, %s7362_s24 }
 0xbb8   : > { %7106 = vrot.lane.b32.xlu1 %v7045_v7, %s7362_s24  ;;  %s9160_s24 = smov 108  }
 0xbbb   : > { %7111 = vrot.lane.b32.xlu0 %v7040_v21, %s7364_s26 }
 0xbbc   : > { %7116 = vrot.lane.b32.xlu1 %v7045_v7, %s7364_s26 }
 0xc11   : > { %v7042_v28 = vpop.permute.xlu0 %7041 }
 0xc12   : > { %v7047_v20 = vpop.permute.xlu1 %7046  ;;  %v7044_v51 = vunpack.i.h.bf16 %v7042_v28  ;;  %v7043_v9 = vunpack.i.l.bf16 %v7042_v28 }
 0xc13   : > { %v7049_v30 = vunpack.i.h.bf16 %v7047_v20  ;;  %v7048_v47 = vunpack.i.l.bf16 %v7047_v20 }
 0xc14   : > { %v4907_v12 = vsel %vm9149_vm7, %v7043_v9, %v7044_v51 }
 0xc15   : > { %v4905_v6 = vsel %vm9147_vm4, %v7048_v47, %v7049_v30  ;;  %v4906_v42 = vsel %vm9148_vm5, %v7044_v51, %v7048_v47  ;;  %v4908_v27 = vsel %vm9150_vm10, %v7049_v30, %v7043_v9  ;;  %v7052_v23 = vpop.permute.xlu0 %7051  ;;  %vm9153_vm4 = vmmov %vm9151_vm9  ;;  %vm5546_vm10 = vcmp.lt.s32.totalorder %v7547_v25, 109 }
 0xc16   : > { %v7057_v19 = vpop.permute.xlu1 %7056  ;;  %v7054_v46 = vunpack.i.h.bf16 %v7052_v23  ;;  %v7053_v38 = vunpack.i.l.bf16 %v7052_v23 }
 0xc17   : > { %v7059_v62 = vunpack.i.h.bf16 %v7057_v19  ;;  %v7058_v11 = vunpack.i.l.bf16 %v7057_v19 }
 0xc18   : > { %v4937_v52 = vsel %vm649_vm3, %v7053_v38, %v7054_v46 }
 0xc19   : > { %v4935_v50 = vsel %vm649_vm3, %v7058_v11, %v7059_v62  ;;  %v4936_v18 = vsel %vm649_vm3, %v7054_v46, %v7058_v11  ;;  %v4938_v45 = vsel %vm649_vm3, %v7059_v62, %v7053_v38  ;;  %v7062_v15 = vpop.permute.xlu0 %7061  ;;  %v7309_v59 = vpack.c.bf16 %v4937_v52, %v4907_v12  ;;  %vm9154_vm3 = vmmov %vm9153_vm4 }
 0xc1a   : > { %v7067_v53 = vpop.permute.xlu1 %7066  ;;  %v7064_v43 = vunpack.i.h.bf16 %v7062_v15  ;;  %v7063_v57 = vunpack.i.l.bf16 %v7062_v15  ;;  %v7310_v58 = vpack.c.bf16 %v4935_v50, %v4905_v6  ;;  %v7311_v8 = vpack.c.bf16 %v4938_v45, %v4908_v27 }
 0xc1b   : > { %v7069_v55 = vunpack.i.h.bf16 %v7067_v53  ;;  %v7068_v10 = vunpack.i.l.bf16 %v7067_v53  ;;  %v7312_v13 = vpack.c.bf16 %v4936_v18, %v4906_v42  ;;  %5279 = vmatprep.subr.bf16.mxu0 %v7309_v59 }
 0xc1c   : > { %v4967_v4 = vsel %vm9153_vm4, %v7063_v57, %v7064_v43  ;;  %5320 = vmatprep.subr.bf16.mxu1 %v7310_v58  ;;  %5280 = vmatpush1.bf16.msra.mxu0 %v7311_v8 }
 0xc1d   : > { %v4965_v2 = vsel %vm9151_vm9, %v7068_v10, %v7069_v55  ;;  %v4966_v17 = vsel %vm9152_vm11, %v7064_v43, %v7068_v10  ;;  %v4968_v56 = vsel %vm9154_vm3, %v7069_v55, %v7063_v57  ;;  %v7072_v49 = vpop.permute.xlu0 %7071  ;;  %5321 = vmatpush1.bf16.msra.mxu1 %v7312_v13  ;;  %vm9166_vm9 = vcmp.lt.s32.totalorder %v7547_v25, 108 }
 0xc1e   : > { %v7077_v16 = vpop.permute.xlu1 %7076  ;;  %v7074_v29 = vunpack.i.h.bf16 %v7072_v49  ;;  %v7073_v5 = vunpack.i.l.bf16 %v7072_v49  ;;  %vm9167_vm11 = vmmov %vm9166_vm9 }
 0xc1f   : > { %v7079_v22 = vunpack.i.h.bf16 %v7077_v16  ;;  %v7078_v54 = vunpack.i.l.bf16 %v7077_v16  ;;  %vm9168_vm4 = vmmov %vm9166_vm9 }
 0xc20   : > { %v4997_v31 = vsel %vm739_vm12, %v7073_v5, %v7074_v29  ;;  %vm9169_vm3 = vmmov %vm9168_vm4 }
 0xc21   : > { %v4995_v26 = vsel %vm739_vm12, %v7078_v54, %v7079_v22  ;;  %v4996_v63 = vsel %vm739_vm12, %v7074_v29, %v7078_v54  ;;  %v4998_v32 = vsel %vm739_vm12, %v7079_v22, %v7073_v5  ;;  %v7082_v60 = vpop.permute.xlu0 %7081  ;;  %v7313_v30 = vpack.c.bf16 %v4997_v31, %v4967_v4 }
 0xc22   : > { %v7087_v48 = vpop.permute.xlu1 %7086  ;;  %v7084_v20 = vunpack.i.h.bf16 %v7082_v60  ;;  %v7083_v28 = vunpack.i.l.bf16 %v7082_v60  ;;  %v7314_v47 = vpack.c.bf16 %v4995_v26, %v4965_v2  ;;  %v7315_v51 = vpack.c.bf16 %v4998_v32, %v4968_v56 }
 0xc23   : > { %v7089_v7 = vunpack.i.h.bf16 %v7087_v48  ;;  %v7088_v21 = vunpack.i.l.bf16 %v7087_v48  ;;  %v7316_v9 = vpack.c.bf16 %v4996_v63, %v4966_v17  ;;  %5281 = vmatprep.subr.bf16.mxu0 %v7313_v30  ;;  %vm9155_vm12 = vcmp.lt.s32.totalorder %v7547_v25, 90  ;;  %v5155_v30 = vld [vmem:[%s9007_s14] sm:$0xf] }
 0xc24   : > { %v5045_v12 = vsel %vm818_vm1, %v7083_v28, %v7084_v20  ;;  %5322 = vmatprep.subr.bf16.mxu1 %v7314_v47  ;;  %5282 = vmatpush1.bf16.msra.mxu0 %v7315_v51 }
 0xc25   : > { %v5043_v6 = vsel %vm818_vm1, %v7088_v21, %v7089_v7  ;;  %v5044_v42 = vsel %vm818_vm1, %v7084_v20, %v7088_v21  ;;  %v5046_v27 = vsel %vm818_vm1, %v7089_v7, %v7083_v28  ;;  %v7092_v23 = vpop.permute.xlu0 %7091  ;;  %5323 = vmatpush1.bf16.msra.mxu1 %v7316_v9  ;;  %v7319_v52 = vpack.c.bf16 %v5045_v12, %v8746_v14  ;;  %vm9156_vm1 = vmmov %vm9155_vm12 }
 0xc26   : > { %v7097_v19 = vpop.permute.xlu1 %7096  ;;  %v7094_v46 = vunpack.i.h.bf16 %v7092_v23  ;;  %v7093_v38 = vunpack.i.l.bf16 %v7092_v23  ;;  %v7317_v50 = vpack.c.bf16 %v5044_v42, %v8752_v61  ;;  %v7318_v18 = vpack.c.bf16 %v5046_v27, %v8755_v39  ;;  %vm9157_vm5 = vmmov %vm9156_vm1 }
 0xc27   : > { %v7099_v62 = vunpack.i.h.bf16 %v7097_v19  ;;  %v7098_v11 = vunpack.i.l.bf16 %v7097_v19  ;;  %v7320_v45 = vpack.c.bf16 %v5043_v6, %v8749_v33  ;;  %vm9158_vm7 = vmmov %vm9156_vm1 }
 0xc28   : > { %v5075_v55 = vsel %vm9157_vm5, %v7093_v38, %v7094_v46  ;;  %5283 = vmatprep.subr.bf16.mxu0 %v7317_v50  ;;  %5324 = vmatprep.subr.bf16.mxu1 %v7318_v18 }
 0xc29   : > { %v5073_v53 = vsel %vm9155_vm12, %v7098_v11, %v7099_v62  ;;  %v5074_v15 = vsel %vm9156_vm1, %v7094_v46, %v7098_v11  ;;  %v5076_v10 = vsel %vm9158_vm7, %v7099_v62, %v7093_v38  ;;  %v7102_v61 = vpop.permute.xlu0 %7101  ;;  %5284 = vmatpush1.bf16.msra.mxu0 %v7319_v52  ;;  %5325 = vmatpush1.bf16.msra.mxu1 %v7320_v45  ;;  %vm9170_vm12 = vcmp.lt.s32.totalorder %v7547_v25, 107 }
 0xc2a   : > { %v7107_v43 = vpop.permute.xlu1 %7106  ;;  %v7104_v57 = vunpack.i.h.bf16 %v7102_v61  ;;  %v7103_v33 = vunpack.i.l.bf16 %v7102_v61  ;;  %vm9171_vm1 = vmmov %vm9170_vm12 }
 0xc2b   : > { %v7109_v39 = vunpack.i.h.bf16 %v7107_v43  ;;  %v7108_v14 = vunpack.i.l.bf16 %v7107_v43  ;;  %vm9172_vm5 = vmmov %vm9171_vm1 }
 0xc2c   : > { %v5105_v8 = vsel %vm910_vm2, %v7103_v33, %v7104_v57  ;;  %vm9173_vm7 = vmmov %vm9171_vm1 }
 0xc2d   : > { %v5103_v59 = vsel %vm910_vm2, %v7108_v14, %v7109_v39  ;;  %v5104_v58 = vsel %vm910_vm2, %v7104_v57, %v7108_v14  ;;  %v5106_v13 = vsel %vm910_vm2, %v7109_v39, %v7103_v33  ;;  %v7112_v17 = vpop.permute.xlu0 %7111  ;;  %v7323_v29 = vpack.c.bf16 %v5105_v8, %v5075_v55 }
 0xc2e   : > { %v7117_v2 = vpop.permute.xlu1 %7116  ;;  %v7114_v16 = vunpack.i.h.bf16 %v7112_v17  ;;  %v7113_v49 = vunpack.i.l.bf16 %v7112_v17  ;;  %v7321_v22 = vpack.c.bf16 %v5104_v58, %v5074_v15  ;;  %v7322_v54 = vpack.c.bf16 %v5106_v13, %v5076_v10 }
 0xc2f   : > { %v7119_v4 = vunpack.i.h.bf16 %v7117_v2  ;;  %v7118_v56 = vunpack.i.l.bf16 %v7117_v2  ;;  %v7324_v5 = vpack.c.bf16 %v5103_v59, %v5073_v53  ;;  %vm5437_vm2 = vcmp.lt.s32.totalorder %v7547_v25, 19 }
 0xc30   : > { %v5135_v31 = vsel %vm958_vm14, %v7113_v49, %v7114_v16  ;;  %5285 = vmatprep.subr.bf16.mxu0 %v7321_v22  ;;  %5326 = vmatprep.subr.bf16.mxu1 %v7322_v54 }
 0xc31   : > { %v5133_v26 = vsel %vm958_vm14, %v7118_v56, %v7119_v4  ;;  %v5134_v63 = vsel %vm958_vm14, %v7114_v16, %v7118_v56  ;;  %v5136_v32 = vsel %vm958_vm14, %v7119_v4, %v7113_v49  ;;  %5286 = vmatpush1.bf16.msra.mxu0 %v7323_v29  ;;  %5327 = vmatpush1.bf16.msra.mxu1 %v7324_v5  ;;  %vm9162_vm14 = vcmp.lt.s32.totalorder %v7547_v25, 127  ;;  %v5629_v25 = vld [vmem:[%s9008_s15] sm:$0xf] }
 0xc32   : > { %v7325_v48 = vpack.c.bf16 %v5134_v63, %v5134_v63  ;;  %v7326_v60 = vpack.c.bf16 %v5136_v32, %v5136_v32  ;;  %v7327_v7 = vpack.c.bf16 %v5135_v31, %v5135_v31  ;;  %v7328_v21 = vpack.c.bf16 %v5133_v26, %v5133_v26 }
 0xc34   : > { %6366 = vmatprep.subr.msk.bf16.mxu0 %vm1010_vm0, %v7325_v48  ;;  %6368 = vmatprep.subr.msk.bf16.mxu1 %vm1010_vm0, %v7326_v60  ;;  %v5268_v20 = vsel %vm1010_vm0, %v7327_v7, 0  ;;  %v5274_v28 = vsel %vm1010_vm0, %v7328_v21, 0 }
 0xc35   : > { %5288 = vmatpush1.bf16.msra.mxu0 %v5268_v20  ;;  %5329 = vmatpush1.bf16.msra.mxu1 %v5274_v28 }
 0xc38   : > { %6367 = vmatmul.mubr.msk.bf16.vlgmr.msra.gmra.mrb[48].mxu0 %vm1500_vm15, %v5155_v30  ;;  %6369 = vmatmul.mubr.msk.bf16.vlgmr.msra.gmra.mrb[48].mxu1 %vm1500_vm15, %v5155_v30 }
 0xc39   : > { %5791 = vmatprep.mubr.bf16.mxu0 %v7365_v24  ;;  %5832 = vmatprep.mubr.bf16.mxu1 %v7365_v24 }
 0xd0b   : > { %v5313_v47 = vpop.f32.mrb[48].mxu0  ;;  %v5354_v51 = vpop.f32.mrb[48].mxu1 }
 0xd0c   : > { %v5361_v9 = vmul.f32 %v5313_v47, %v7791_v34  ;;  %v5363_v6 = vmul.f32 %v5354_v51, %v7794_v35  ;;  %v5315_v42 = vpop.f32.mrb[49].mxu0  ;;  %v5356_v12 = vpop.f32.mrb[49].mxu1 }
 0xd0d   : > { %v5362_v27 = vmul.f32 %v5315_v42, %v7798_v36  ;;  %v5364_v19 = vmul.f32 %v5356_v12, %v7802_v37  ;;  %v5317_v23 = vpop.f32.mrb[50].mxu0  ;;  %v5358_v62 = vpop.f32.mrb[50].mxu1 }
 0xd0e   : > { %v8861_v11 = vadd.f32 %v5361_v9, %v7805_v40  ;;  %v8864_v46 = vadd.f32 %v5363_v6, %v7808_v41  ;;  %v5318_v38 = vpop.f32.mrb[51].mxu0  ;;  %v5359_v50 = vpop.f32.mrb[51].mxu1  ;;  %v5648_v40 = vld [vmem:[%s9009_s16] sm:$0xff] }
 0xd0f   : > { %v8867_v18 = vadd.f32 %v5362_v27, %v7811_v44  ;;  %v8870_v52 = vadd.f32 %v5364_v19, %v7814_v3 }
 0xd11   : > { %v7125_v45 = vpack.i.bf16 %v8870_v52, %v8864_v46  ;;  %v7120_v53 = vpack.i.bf16 %v8867_v18, %v8861_v11 }
 0xd13   : > { %7126 = vrot.lane.b32.xlu1 %v7125_v45, %s7373_s1  ;;  %7121 = vrot.lane.b32.xlu0 %v7120_v53, %s7373_s1 }
 0xd17   : > { %7136 = vrot.lane.b32.xlu1 %v7125_v45, %s7371_s0  ;;  %7131 = vrot.lane.b32.xlu0 %v7120_v53, %s7371_s0 }
 0xd1b   : > { %7146 = vrot.lane.b32.xlu1 %v7125_v45, %s7374_s22  ;;  %7141 = vrot.lane.b32.xlu0 %v7120_v53, %s7374_s22 }
 0xd1f   : > { %7156 = vrot.lane.b32.xlu1 %v7125_v45, %s7370_s30  ;;  %7151 = vrot.lane.b32.xlu0 %v7120_v53, %s7370_s30 }
 0xd23   : > { %7166 = vrot.lane.b32.xlu1 %v7125_v45, %s9159_s2  ;;  %7161 = vrot.lane.b32.xlu0 %v7120_v53, %s9159_s2  ;;  %s570_s2 = scalar_lea.vmem %s9011_s18, %s9174_s20 }
 0xd27   : > { %7176 = vrot.lane.b32.xlu1 %v7125_v45, %s7375_s23  ;;  %7171 = vrot.lane.b32.xlu0 %v7120_v53, %s7375_s23 }
 0xd2b   : > { %7186 = vrot.lane.b32.xlu1 %v7125_v45, %s9160_s24  ;;  %7181 = vrot.lane.b32.xlu0 %v7120_v53, %s9160_s24 }
 0xd2f   : > { %7196 = vrot.lane.b32.xlu1 %v7125_v45, %s9161_s25  ;;  %7191 = vrot.lane.b32.xlu0 %v7120_v53, %s9161_s25 }
 0xd33   : > { %5651 = vperm.xlu0 %7200, %v5648_v40  }
 0xd85   : > { %v7127_v41 = vpop.permute.xlu1 %7126  ;;  %v7122_v44 = vpop.permute.xlu0 %7121 }
 0xd86   : > { %v7129_v3 = vunpack.i.h.bf16 %v7127_v41  ;;  %v7128_v15 = vunpack.i.l.bf16 %v7127_v41  ;;  %v7124_v55 = vunpack.i.h.bf16 %v7122_v44  ;;  %v7123_v10 = vunpack.i.l.bf16 %v7122_v44 }
 0xd88   : > { %v5377_v43 = vsel %vm2638_vm6, %v7128_v15, %v7129_v3  ;;  %v5378_v61 = vsel %vm2638_vm6, %v7124_v55, %v7128_v15  ;;  %v5379_v39 = vsel %vm2638_vm6, %v7123_v10, %v7124_v55  ;;  %v5380_v14 = vsel %vm2638_vm6, %v7129_v3, %v7123_v10 }
 0xd89   : > { %v6545_v57 = vpack.c.bf16 %v5377_v43, %v5378_v61  ;;  %v6544_v33 = vpack.c.bf16 %v5379_v39, %v5380_v14  ;;  %v7137_v59 = vpop.permute.xlu1 %7136  ;;  %v7132_v58 = vpop.permute.xlu0 %7131 }
 0xd8a   : > { %v7139_v8 = vunpack.i.h.bf16 %v7137_v59  ;;  %v7138_v13 = vunpack.i.l.bf16 %v7137_v59  ;;  %v7134_v2 = vunpack.i.h.bf16 %v7132_v58  ;;  %v7133_v17 = vunpack.i.l.bf16 %v7132_v58 }
 0xd8b   : > { %5397 = vst [vmem:[#allocation2] sm:$0xff] %v6544_v33  ;;  %5398 = vst [vmem:[#allocation2 + $0x8] sm:$0xff] %v6545_v57 }
 0xd8c   : > { %v5407_v4 = vsel %vm2569_vm8, %v7138_v13, %v7139_v8  ;;  %v5408_v56 = vsel %vm2569_vm8, %v7134_v2, %v7138_v13  ;;  %v5409_v16 = vsel %vm2569_vm8, %v7133_v17, %v7134_v2  ;;  %v5410_v49 = vsel %vm2569_vm8, %v7139_v8, %v7133_v17  ;;  %vm9163_vm8 = vmmov %vm9162_vm14 }
 0xd8d   : > { %v6547_v22 = vpack.c.bf16 %v5407_v4, %v5408_v56  ;;  %v6546_v54 = vpack.c.bf16 %v5409_v16, %v5410_v49  ;;  %v7147_v29 = vpop.permute.xlu1 %7146  ;;  %v7142_v5 = vpop.permute.xlu0 %7141  ;;  %v7329_v48 = vpack.c.bf16 %v5410_v49, %v5380_v14  ;;  %v7330_v60 = vpack.c.bf16 %v5409_v16, %v5379_v39  ;;  %vm9164_vm6 = vmmov %vm9163_vm8 }
 0xd8e   : > { %v7149_v26 = vunpack.i.h.bf16 %v7147_v29  ;;  %v7148_v63 = vunpack.i.l.bf16 %v7147_v29  ;;  %v7144_v31 = vunpack.i.h.bf16 %v7142_v5  ;;  %v7143_v32 = vunpack.i.l.bf16 %v7142_v5 }
 0xd8f   : > { %5428 = vst [vmem:[#allocation2 + $0x18] sm:$0xff] %v6547_v22  ;;  %5427 = vst [vmem:[#allocation2 + $0x10] sm:$0xff] %v6546_v54  ;;  %v7331_v7 = vpack.c.bf16 %v5408_v56, %v5378_v61  ;;  %v7332_v21 = vpack.c.bf16 %v5407_v4, %v5377_v43  ;;  %5759 = vmatprep.subr.bf16.mxu0 %v7330_v60 }
 0xd90   : > { %v5438_v20 = vsel %vm5437_vm2, %v7148_v63, %v7149_v26  ;;  %v5439_v28 = vsel %vm5437_vm2, %v7144_v31, %v7148_v63  ;;  %v5440_v30 = vsel %vm5437_vm2, %v7143_v32, %v7144_v31  ;;  %v5441_v47 = vsel %vm5437_vm2, %v7149_v26, %v7143_v32  ;;  %5760 = vmatpush1.bf16.msra.mxu0 %v7329_v48 }
 0xd91   : > { %v6549_v51 = vpack.c.bf16 %v5438_v20, %v5439_v28  ;;  %v6548_v9 = vpack.c.bf16 %v5440_v30, %v5441_v47  ;;  %v7157_v6 = vpop.permute.xlu1 %7156  ;;  %v7152_v42 = vpop.permute.xlu0 %7151  ;;  %5800 = vmatprep.subr.bf16.mxu1 %v7332_v21 }
 0xd92   : > { %v7159_v12 = vunpack.i.h.bf16 %v7157_v6  ;;  %v7158_v27 = vunpack.i.l.bf16 %v7157_v6  ;;  %v7154_v19 = vunpack.i.h.bf16 %v7152_v42  ;;  %v7153_v23 = vunpack.i.l.bf16 %v7152_v42  ;;  %5801 = vmatpush1.bf16.msra.mxu1 %v7331_v7 }
 0xd93   : > { %5459 = vst [vmem:[#allocation2 + $0x28] sm:$0xff] %v6549_v51  ;;  %5458 = vst [vmem:[#allocation2 + $0x20] sm:$0xff] %v6548_v9 }
 0xd94   : > { %v5468_v62 = vsel %vm2503_vm13, %v7158_v27, %v7159_v12  ;;  %v5469_v38 = vsel %vm2503_vm13, %v7154_v19, %v7158_v27  ;;  %v5470_v50 = vsel %vm2503_vm13, %v7153_v23, %v7154_v19  ;;  %v5471_v45 = vsel %vm2503_vm13, %v7159_v12, %v7153_v23  ;;  %vm9165_vm13 = vmmov %vm9164_vm6 }
 0xd95   : > { %v7167_v53 = vpop.permute.xlu1 %7166  ;;  %v7162_v40 = vpop.permute.xlu0 %7161  ;;  %v7333_v55 = vpack.c.bf16 %v5471_v45, %v5441_v47  ;;  %v7334_v10 = vpack.c.bf16 %v5470_v50, %v5440_v30  ;;  %v7335_v43 = vpack.c.bf16 %v5469_v38, %v5439_v28  ;;  %v7336_v61 = vpack.c.bf16 %v5468_v62, %v5438_v20 }
 0xd96   : > { %v7169_v41 = vunpack.i.h.bf16 %v7167_v53  ;;  %v7168_v44 = vunpack.i.l.bf16 %v7167_v53  ;;  %v7164_v3 = vunpack.i.h.bf16 %v7162_v40  ;;  %v7163_v15 = vunpack.i.l.bf16 %v7162_v40 }
 0xd97   : > { %5761 = vmatprep.subr.bf16.mxu0 %v7334_v10  ;;  %5802 = vmatprep.subr.bf16.mxu1 %v7336_v61 }
 0xd98   : > { %v5516_v39 = vsel %vm9162_vm14, %v7168_v44, %v7169_v41  ;;  %v5517_v14 = vsel %vm9163_vm8, %v7164_v3, %v7168_v44  ;;  %v5518_v57 = vsel %vm9164_vm6, %v7163_v15, %v7164_v3  ;;  %v5519_v33 = vsel %vm9165_vm13, %v7169_v41, %v7163_v15  ;;  %5762 = vmatpush1.bf16.msra.mxu0 %v7333_v55 }
 0xd99   : > { %v7177_v59 = vpop.permute.xlu1 %7176  ;;  %v7172_v58 = vpop.permute.xlu0 %7171  ;;  %5803 = vmatpush1.bf16.msra.mxu1 %v7335_v43  ;;  %v7337_v4 = vpack.c.bf16 %v5518_v57, %v8861_v11  ;;  %v7338_v56 = vpack.c.bf16 %v5517_v14, %v8867_v18  ;;  %v7339_v16 = vpack.c.bf16 %v5516_v39, %v8864_v46  ;;  %v7340_v49 = vpack.c.bf16 %v5519_v33, %v8870_v52 }
 0xd9a   : > { %v7179_v8 = vunpack.i.h.bf16 %v7177_v59  ;;  %v7178_v13 = vunpack.i.l.bf16 %v7177_v59  ;;  %v7174_v2 = vunpack.i.h.bf16 %v7172_v58  ;;  %v7173_v17 = vunpack.i.l.bf16 %v7172_v58 }
 0xd9b   : > { %5763 = vmatprep.subr.bf16.mxu0 %v7338_v56  ;;  %5804 = vmatprep.subr.bf16.mxu1 %v7340_v49 }
 0xd9c   : > { %v5547_v22 = vsel %vm5546_vm10, %v7178_v13, %v7179_v8  ;;  %v5548_v54 = vsel %vm5546_vm10, %v7174_v2, %v7178_v13  ;;  %v5549_v29 = vsel %vm5546_vm10, %v7173_v17, %v7174_v2  ;;  %v5550_v5 = vsel %vm5546_vm10, %v7179_v8, %v7173_v17  ;;  %5764 = vmatpush1.bf16.msra.mxu0 %v7337_v4 }
 0xd9d   : > { %v7187_v26 = vpop.permute.xlu1 %7186  ;;  %v7182_v11 = vpop.permute.xlu0 %7181  ;;  %5805 = vmatpush1.bf16.msra.mxu1 %v7339_v16 }
 0xd9e   : > { %v7189_v18 = vunpack.i.h.bf16 %v7187_v26  ;;  %v7188_v46 = vunpack.i.l.bf16 %v7187_v26  ;;  %v7184_v63 = vunpack.i.h.bf16 %v7182_v11  ;;  %v7183_v52 = vunpack.i.l.bf16 %v7182_v11 }
 0xda0   : > { %v5577_v31 = vsel %vm9166_vm9, %v7188_v46, %v7189_v18  ;;  %v5578_v32 = vsel %vm9167_vm11, %v7184_v63, %v7188_v46  ;;  %v5579_v48 = vsel %vm9168_vm4, %v7183_v52, %v7184_v63  ;;  %v5580_v60 = vsel %vm9169_vm3, %v7189_v18, %v7183_v52 }
 0xda1   : > { %v7197_v7 = vpop.permute.xlu1 %7196  ;;  %v7192_v21 = vpop.permute.xlu0 %7191  ;;  %v7341_v51 = vpack.c.bf16 %v5579_v48, %v5549_v29  ;;  %v7342_v9 = vpack.c.bf16 %v5578_v32, %v5548_v54  ;;  %v7343_v6 = vpack.c.bf16 %v5577_v31, %v5547_v22  ;;  %v7344_v42 = vpack.c.bf16 %v5580_v60, %v5550_v5  ;;  %v5845_v22 = vld [vmem:[%s9010_s17] sm:$0x1] }
 0xda2   : > { %v7199_v20 = vunpack.i.h.bf16 %v7197_v7  ;;  %v7198_v28 = vunpack.i.l.bf16 %v7197_v7  ;;  %v7194_v30 = vunpack.i.h.bf16 %v7192_v21  ;;  %v7193_v47 = vunpack.i.l.bf16 %v7192_v21 }
 0xda3   : > { %5765 = vmatprep.subr.bf16.mxu0 %v7342_v9  ;;  %5806 = vmatprep.subr.bf16.mxu1 %v7344_v42  ;;  %v7376_v54 = vmov 1966171168  }
 0xda4   : > { %v5607_v12 = vsel %vm9170_vm12, %v7198_v28, %v7199_v20  ;;  %v5608_v27 = vsel %vm9171_vm1, %v7194_v30, %v7198_v28  ;;  %v5609_v19 = vsel %vm9172_vm5, %v7193_v47, %v7194_v30  ;;  %v5610_v23 = vsel %vm9173_vm7, %v7199_v20, %v7193_v47  ;;  %5766 = vmatpush1.bf16.msra.mxu0 %v7341_v51 }
 0xda5   : > { %5807 = vmatpush1.bf16.msra.mxu1 %v7343_v6  ;;  %v7345_v62 = vpack.c.bf16 %v5608_v27, %v5608_v27  ;;  %v7346_v38 = vpack.c.bf16 %v5610_v23, %v5610_v23  ;;  %v7347_v50 = vpack.c.bf16 %v5609_v19, %v5609_v19  ;;  %v7348_v45 = vpack.c.bf16 %v5607_v12, %v5607_v12 }
 0xda6   : > { %v5959_v29 = vunpack.c.l.s4 %v7376_v54 }
 0xda7   : > { %6408 = vmatprep.subr.msk.bf16.mxu0 %vm1010_vm0, %v7345_v62  ;;  %6410 = vmatprep.subr.msk.bf16.mxu1 %vm1010_vm0, %v7346_v38  ;;  %v5748_v53 = vsel %vm1010_vm0, %v7347_v50, 0  ;;  %v5754_v40 = vsel %vm1010_vm0, %v7348_v45, 0 }
 0xda8   : > { %5768 = vmatpush1.bf16.msra.mxu0 %v5748_v53  ;;  %v5960_v5 = vunpack.c.0.s8 %v5959_v29 }
 0xda9   : > { %5809 = vmatpush1.bf16.msra.mxu1 %v5754_v40 }
 0xdaa   : > { %v5963_v32 = vsub.s32 %v5960_v5, %v7483_v1 }
 0xdab   : > { %6409 = vmatmul.mubr.msk.bf16.vlgmr.msra.gmra.mrb[52].mxu0 %vm1500_vm15, %v5629_v25 }
 0xdac   : > { %6411 = vmatmul.mubr.msk.bf16.vlgmr.msra.gmra.mrb[52].mxu1 %vm1500_vm15, %v5629_v25  ;;  %5898 = vmatprep.mubr.bf16.mxu0 %v7365_v24  ;;  %vm5850_vm15 = vcmask 64512  }
 0xdad   : > { %5939 = vmatprep.mubr.bf16.mxu1 %v7365_v24 }
 0xdb2   : > { %v5652_v41 = vpop.permute.xlu0 %5651 }
 0xe7e   : > { %v5793_v44 = vpop.f32.mrb[52].mxu0 }
 0xe7f   : > { %v5834_v3 = vpop.f32.mrb[52].mxu1  ;;  %v5794_v15 = vadd.f32 %v5793_v44, %v5652_v41  ;;  %v5795_v10 = vpop.f32.mrb[53].mxu0 }
 0xe80   : > { %v5835_v55 = vadd.f32 %v5834_v3, %v5652_v41  ;;  %v5836_v43 = vpop.f32.mrb[53].mxu1  ;;  %v5796_v61 = vadd.f32 %v5795_v10, %v5652_v41  ;;  %v5797_v14 = vpop.f32.mrb[54].mxu0 }
 0xe81   : > { %v5837_v39 = vadd.f32 %v5836_v43, %v5652_v41  ;;  %v5838_v57 = vpop.f32.mrb[54].mxu1  ;;  %v5841_v33 = vmax.f32 %v5794_v15, 0.0  ;;  %v5798_v58 = vpop.f32.mrb[55].mxu0 }
 0xe82   : > { %v5843_v59 = vmax.f32 %v5835_v55, 0.0  ;;  %v5839_v8 = vpop.f32.mrb[55].mxu1  ;;  %v5842_v13 = vmax.f32 %v5796_v61, 0.0 }
 0xe83   : > { %v5844_v2 = vmax.f32 %v5837_v39, 0.0  ;;  %v5846_v17 = vpack.c.bf16 %v5841_v33, %v5841_v33 }
 0xe84   : > { %v5848_v4 = vpack.c.bf16 %v5843_v59, %v5843_v59  ;;  %v5847_v24 = vpack.c.bf16 %v5842_v13, %v5842_v13 }
 0xe85   : > { %v5849_v56 = vpack.c.bf16 %v5844_v2, %v5844_v2  ;;  %v5855_v16 = vsel %vm1010_vm0, %v5846_v17, 0 }
 0xe86   : > { %v5861_v49 = vsel %vm1010_vm0, %v5848_v4, 0  ;;  %6412 = vmatprep.subr.msk.bf16.mxu0 %vm1010_vm0, %v5847_v24 }
 0xe87   : > { %6414 = vmatprep.subr.msk.bf16.mxu1 %vm1010_vm0, %v5849_v56  ;;  %5867 = vmatpush1.bf16.msra.mxu0 %v5855_v16  ;;  %vm5983_vm0 = vcmp.lt.s32.totalorder %v577_v0, 512 }
 0xe88   : > { %5908 = vmatpush1.bf16.msra.mxu1 %v5861_v49 }
 0xe8a   : > { %6413 = vmatmul.mubr.msk.bf16.vlgmr.msra.gmra.mrb[56].mxu0 %vm5850_vm15, %v5845_v22 }
 0xe8b   : > { %6415 = vmatmul.mubr.msk.bf16.vlgmr.msra.gmra.mrb[56].mxu1 %vm5850_vm15, %v5845_v22 }
 0xf5d   : > { %v5900_v26 = vpop.f32.mrb[56].mxu0 }
 0xf5e   : > { %v5941_v11 = vpop.f32.mrb[56].mxu1  ;;  %v5948_v18 = vmul.f32 %v5900_v26, %v7791_v34  ;;  %v5902_v63 = vpop.f32.mrb[57].mxu0 }
 0xf5f   : > { %v5950_v46 = vmul.f32 %v5941_v11, %v7794_v35  ;;  %v5943_v52 = vpop.f32.mrb[57].mxu1  ;;  %v5949_v31 = vmul.f32 %v5902_v63, %v7798_v36  ;;  %v5904_v60 = vpop.f32.mrb[58].mxu0 }
 0xf60   : > { %v5951_v48 = vmul.f32 %v5943_v52, %v7802_v37  ;;  %v5945_v7 = vpop.f32.mrb[58].mxu1  ;;  %v5905_v21 = vpop.f32.mrb[59].mxu0 }
 0xf61   : > { %v5946_v20 = vpop.f32.mrb[59].mxu1  ;;  %v5956_v28 = vcombine.low %v5948_v18, %v5949_v31 }
 0xf62   : > { %v5957_v30 = vcombine.low %v5950_v46, %v5951_v48 }
 0xf63   : > { %v5964_v47 = vrot.slane %v5956_v28, %v5963_v32 }
 0xf64   : > { %v5971_v51 = vrot.slane %v5957_v30, %v5963_v32 }
 0xf66   : > { %v5972_v34 = vcombine.low %v5964_v47, %v5971_v51 }
 0xf68   : > { %v5979_v35 = vrot.slane %v5972_v34, %v5963_v32 }
 0xf6a   : > { %5985 = vst.msk [vmem:[%s570_s2] sm:$0xf] %vm5983_vm0, %v5979_v35 }
 0xf6b PF: > { %s28_s27 = sadd.s32 1, %s7355_s27  }
 0xf6c   : > { %p25_p4 = scmp.ge.s32.totalorder %s28_s27, 4  }
 0xf6e   :  { %27 = sbr.rel (!%p25_p4) target bundleno = 4 (0x4), region = 122 }

</bundles_post_ra>
